<compile_context>
chip_gen: v6e
topology: v6e:2x2x1
jax: 0.10.0
libtpu: 0.0.40
codegen_flags: <defaults>
</compile_context>

<pallas_src>
import numpy as np

import jax
import jax.numpy as jnp
from jax.experimental import pallas as pl
from jax.experimental.pallas import tpu as pltpu

# ----------------------------- model hyper-params ---------------------------
NUM_NODES = 64      # fc1 is Linear(num_nodes, 256)
NUM_EDGES = 128
NUM_ATTRS = 8
IN_CH = 4           # matches the `nan_val * 4` mask in forward()
HID = 32
OUT_CH = 4
NUM_LAYERS = 3
PERIODS = 1         # tgnn input is x.unsqueeze(2) -> last dim == 1

XMAX = 23.91
XMIN = -1.21        # nan_to_num_map['london']
SQRT_2_OVER_PI = float(np.sqrt(2.0 / np.pi))

# ----------------------------- packed-slab row offsets ----------------------
# 32-lane weight slab (f32, [K32, HID])
O_ATTR_LIN = 0      # attr_lin        [8, 32]
O_ATTR1_0 = 8       # attr_lin1[0]    [8, 32]
O_ATTR1_1 = 16      # attr_lin1[2]    [32, 32]
O_CONV1 = 48        # conv1_{0,1,2}   3 x [32, 32]
O_GCN1_A = 144      # gcn_lin1 (src half)  [4, 32] padded  (8-row slot)
O_GCN1_B = 152      # gcn_lin1 (dst half)  [4, 32] padded  (8-row slot)
O_GCN2_A = 160      # gcn_lin2 (src half)  [32, 32]
O_GCN2_B = 192      # gcn_lin2 (dst half)  [32, 32]
O_LINZ = 224        # TGCN lin_z (top half, h_prev == 0)   [32, 32]
O_LINH = 256        # TGCN lin_h (top half)                [32, 32]
O_LIN0 = 288        # head lin0 split into 6 x [32, 32]
O_LIN1 = 480        # head lin1    [32, 32]
O_LIN2 = 512        # head lin2    [32, 4] padded to 32 cols
K32 = 544
# 64-lane weight slab (f32, [K64, 64])
O_FC23 = 0          # fc2 | fc3 fused     [256, 64]
O_FC5 = 256         # fc5                 [256, 64]
O_GATES = 512       # TGCN conv_z | conv_h [4, 64] padded to 32 rows
K64 = 544
# 256-lane weight slab (f32, [K256, 256])
O_FC1 = 0           # fc1 [64, 256]
O_FC4 = 64          # fc4 [32, 256]
K256 = 96
# bias slab rows (f32, [N_BIAS, 256], each bias left-aligned & zero padded)
B_FC1, B_FC4, B_FC23, B_FC5, B_GATES = 0, 1, 2, 3, 4
B_ATTR, B_ATTR1_0, B_ATTR1_1 = 5, 6, 7
B_CONV1 = 8                                  # rows 8, 9, 10
B_GCN1, B_GCN2, B_LINZ, B_LINH = 11, 12, 13, 14
B_LIN0, B_LIN1, B_LIN2 = 15, 16, 17
N_BIAS = 18

_N_INPUTS = 14


# ----------------------------- in-kernel helpers ----------------------------
def _gelu(x):
    # the module's custom tanh-gelu
    return 0.5 * x * (1.0 + jnp.tanh(SQRT_2_OVER_PI * (x + 0.044715 * x * x * x)))


# ----------------------------- the fused kernel ------------------------------
def _fused_kernel(x_t_ref, eps_ref, ratio_ref, drop_t_ref,
                  attr_ref, emb3_ref, node_embed_ref,
                  g_both_ref, scat_ref, self_all_ref,
                  w32_ref, w64_ref, w256_ref, bias_ref,
                  x_rec_t_ref, xf_ref):
    E, N, H = NUM_EDGES, NUM_NODES, HID

    def bias(row, width):
        return bias_ref[row:row + 1, :width]           # static slice -> free

    def mm(a, w):
        return jnp.dot(a, w, preferred_element_type=jnp.float32)

    # ---------------- VAE: normalize -> encode -> reparameterize -> decode ----
    x_t = x_t_ref[...]                                            # [C, N]
    ratio = ratio_ref[...]                                        # [1, 1]
    # TODO(synk): exact float equality mask, as in the PyTorch reference.
    mask_t = (jnp.sum(x_t, axis=0, keepdims=True)
              != XMIN * IN_CH).astype(jnp.float32)                # [1, N]
    x_norm_t = (x_t - XMIN) * (1.0 / (XMAX - XMIN)) * ratio * drop_t_ref[...]

    h = _gelu(mm(x_norm_t, w256_ref[O_FC1:O_FC1 + NUM_NODES, :]) + bias(B_FC1, 256))
    ml = mm(h, w64_ref[O_FC23:O_FC23 + 256, :]) + bias(B_FC23, 2 * H)   # mu | log_var
    z = ml[:, :H] + eps_ref[...] * jnp.exp(0.5 * ml[:, H:])             # reparameterize
    h2 = _gelu(mm(z, w256_ref[O_FC4:O_FC4 + H, :]) + bias(B_FC4, 256))
    x_rec_t = ((mm(h2, w64_ref[O_FC5:O_FC5 + 256, :]) + bias(B_FC5, NUM_NODES))
               / ratio) * (XMAX - XMIN) + XMIN                    # [C, N]
    x_rec_t_ref[...] = x_rec_t
    x_rec1_t = mask_t * x_t + (1.0 - mask_t) * x_rec_t            # blend, [C, N]

    # ---------------- node-embedding GCN stack (3 x GCNConv) ------------------
    g_both = g_both_ref[...]                                      # [2E, N] (src | dst one-hot)
    g_src = g_both[:E]                                            # [E, N]
    scat = scat_ref[...]
    s_n = scat[:N]                                                # [N, E] norm-folded scatter
    s_e = scat[N:]                                                # [E, E]
    self_all = self_all_ref[...]
    self_n = self_all[:N]                                         # [N, 1]
    self_e = self_all[N:]                                         # [E, 1]

    attr = attr_ref[...]                                          # [E, A]
    attr1 = mm(attr, w32_ref[O_ATTR_LIN:O_ATTR_LIN + NUM_ATTRS, :]) + bias(B_ATTR, H)
    node_h = node_embed_ref[...]                                  # [N, H]
    pre = node_h                                                  # residual uses the ORIGINAL embedding (as in reference)
    # TODO(synk): GCNConv(edge_dim=...) is an external class; the symmetric
    # normalization / self-loop handling folded into s_n, self_n is a guess.
    for i in range(3):
        o = O_CONV1 + H * i
        hlin = mm(node_h, w32_ref[o:o + H, :])                    # [N, H]
        msg = mm(g_src, hlin) + attr1                             # gather src + edge attr
        out = mm(s_n, msg) + hlin * self_n + bias(B_CONV1 + i, H)
        node_h = _gelu(out) + pre

    # --------- edge inputs from the VAE reconstruction (stacked gather) -------
    xi_xj = jax.lax.dot_general(g_both, x_rec1_t, (((1,), (1,)), ((), ())),
                                preferred_element_type=jnp.float32)   # [2E, C]
    xt0 = (mm(xi_xj[:E], w32_ref[O_GCN1_A:O_GCN1_A + IN_CH, :])
           + mm(xi_xj[E:], w32_ref[O_GCN1_B:O_GCN1_B + IN_CH, :])
           + bias(B_GCN1, H))                                     # [E, H] (cols >= 4 are zero)

    # ---------------- A3TGCN (PERIODS == 1, h0 == 0, att == 1.0) --------------
    # TODO(synk): A3TGCN is an external class; specialized for PERIODS == 1
    # (h_prev == 0 -> r-gate dead, att = softmax(len-1 vector) == 1.0).
    hg = mm(xt0, w64_ref[O_GATES:O_GATES + H, :])                 # [E, 2H] : z-pre | h-pre
    msg_g = mm(g_src, hg[:N, :])                                  # messages use node rows < N
    c = mm(s_e, msg_g) + hg * self_e + bias(B_GATES, 2 * H)
    zg = jax.nn.sigmoid(mm(c[:, :H], w32_ref[O_LINZ:O_LINZ + H, :]) + bias(B_LINZ, H))
    h_tilde = jnp.tanh(mm(c[:, H:], w32_ref[O_LINH:O_LINH + H, :]) + bias(B_LINH, H))
    xe = jnp.maximum((1.0 - zg) * h_tilde, 0.0)                   # .relu()

    # ---------------- edge features from refined node embeddings --------------
    ni_nj = mm(g_both, node_h)                                    # [2E, H] stacked gather
    x1 = (mm(ni_nj[:E], w32_ref[O_GCN2_A:O_GCN2_A + H, :])
          + mm(ni_nj[E:], w32_ref[O_GCN2_B:O_GCN2_B + H, :])
          + bias(B_GCN2, H))

    # ---------------- attr_lin1 MLP --------------------------------------------
    ah = mm(attr, w32_ref[O_ATTR1_0:O_ATTR1_0 + NUM_ATTRS, :]) + bias(B_ATTR1_0, H)
    ah = jnp.where(ah > 0, ah, 0.01 * ah)                         # LeakyReLU(0.01)
    ah = mm(ah, w32_ref[O_ATTR1_1:O_ATTR1_1 + H, :]) + bias(B_ATTR1_1, H)

    # ---------------- head: split lin0 weights (no 192-lane concat) ------------
    emb3 = emb3_ref[...]                                          # [3E, H] = embed | time | week
    feats = (emb3[:E], ah, xe, x1, emb3[E:2 * E], emb3[2 * E:])
    hh = bias(B_LIN0, H)
    for i, f in enumerate(feats):
        hh = hh + mm(f, w32_ref[O_LIN0 + H * i:O_LIN0 + H * (i + 1), :])
    hh = _gelu(hh)
    hh = _gelu(mm(hh, w32_ref[O_LIN1:O_LIN1 + H, :]) + bias(B_LIN1, H))
    out = mm(hh, w32_ref[O_LIN2:O_LIN2 + H, :]) + bias(B_LIN2, H)   # [E, H]; only first OUT_CH cols valid
    xf_ref[...] = out[:, :OUT_CH]


# ----------------------------- one-time preparation --------------------------
def _graph_operators(edge_index, n_nodes, n_edges):
    # Gather / scatter-add turned into one-hot matrices; (guessed) symmetric
    # normalization and self-loop coefficients folded in.  Computed once.
    src, dst = edge_index[0], edge_index[1]
    g_src = jax.nn.one_hot(src, n_nodes, dtype=jnp.float32)       # [E, N]
    g_dst = jax.nn.one_hot(dst, n_nodes, dtype=jnp.float32)       # [E, N]

    deg_n = jnp.ones((n_nodes,), jnp.float32).at[dst].add(1.0)
    inv_n = jax.lax.rsqrt(deg_n)
    norm_n = inv_n[src] * inv_n[dst]
    s_n = g_dst.T * norm_n[None, :]                               # [N, E]
    self_n = (1.0 / deg_n)[:, None]

    # A3TGCN's conv acts on the E-row edge-feature matrix (node indices < N)
    deg_e = jnp.ones((n_edges,), jnp.float32).at[dst].add(1.0)
    inv_e = jax.lax.rsqrt(deg_e)
    norm_e = inv_e[src] * inv_e[dst]
    s_e = jax.nn.one_hot(dst, n_edges, dtype=jnp.float32).T * norm_e[None, :]  # [E, E]
    self_e = (1.0 / deg_e)[:, None]

    g_both = jnp.concatenate([g_src, g_dst], axis=0)              # [2E, N]
    scat = jnp.concatenate([s_n, s_e], axis=0)                    # [N+E, E]
    self_all = jnp.concatenate([self_n, self_e], axis=0)          # [N+E, 1]
    return g_both, scat, self_all


def prepare(params, edge_index):
    """One-time prep: graph operators + packed f32 weight / bias slabs."""
    f32 = lambda a: jnp.asarray(a, jnp.float32)
    H = HID

    def pad_to(w, rows, cols):
        w = f32(w)
        return jnp.pad(w, ((0, rows - w.shape[0]), (0, cols - w.shape[1])))

    lin0_blocks = [f32(params["lin0_w"][H * i:H * (i + 1)]) for i in range(6)]
    w32 = jnp.concatenate([
        f32(params["attr_lin_w"]),                        # O_ATTR_LIN
        f32(params["attr_lin1_w0"]),                      # O_ATTR1_0
        f32(params["attr_lin1_w1"]),                      # O_ATTR1_1
        f32(params["conv1_0_w"]),                         # O_CONV1
        f32(params["conv1_1_w"]),
        f32(params["conv1_2_w"]),
        pad_to(params["gcn_lin1_w"][:IN_CH], 8, H),       # O_GCN1_A (4 used rows)
        pad_to(params["gcn_lin1_w"][IN_CH:], 8, H),       # O_GCN1_B
        f32(params["gcn_lin2_w"][:H]),                    # O_GCN2_A
        f32(params["gcn_lin2_w"][H:]),                    # O_GCN2_B
        f32(params["lin_z_w"][:H]),                       # O_LINZ (h_prev == 0 -> top half only)
        f32(params["lin_h_w"][:H]),                       # O_LINH
        *lin0_blocks,                                     # O_LIN0
        f32(params["lin1_w"]),                            # O_LIN1
        pad_to(params["lin2_w"], H, H),                   # O_LIN2 (4 used cols)
    ], axis=0)
    assert w32.shape == (K32, H)

    gates_w = jnp.concatenate([f32(params["conv_z_w"]), f32(params["conv_h_w"])], axis=1)
    w64 = jnp.concatenate([
        jnp.concatenate([f32(params["fc2_w"]), f32(params["fc3_w"])], axis=1),  # O_FC23
        f32(params["fc5_w"]),                                                   # O_FC5
        pad_to(gates_w, H, 2 * H),                                              # O_GATES (4 used rows)
    ], axis=0)
    assert w64.shape == (K64, 2 * H)

    w256 = jnp.concatenate([f32(params["fc1_w"]), f32(params["fc4_w"])], axis=0)
    assert w256.shape == (K256, 256)

    def brow(b):
        b = f32(b).reshape(1, -1)
        return jnp.pad(b, ((0, 0), (0, 256 - b.shape[1])))

    bias = jnp.concatenate([
        brow(params["fc1_b"]), brow(params["fc4_b"]),
        brow(jnp.concatenate([params["fc2_b"], params["fc3_b"]])),
        brow(params["fc5_b"]),
        brow(jnp.concatenate([params["conv_z_b"], params["conv_h_b"]])),
        brow(params["attr_lin_b"]), brow(params["attr_lin1_b0"]), brow(params["attr_lin1_b1"]),
        brow(params["conv1_0_b"]), brow(params["conv1_1_b"]), brow(params["conv1_2_b"]),
        brow(params["gcn_lin1_b"]), brow(params["gcn_lin2_b"]),
        brow(params["lin_z_b"]), brow(params["lin_h_b"]),
        brow(params["lin0_b"]), brow(params["lin1_b"]), brow(params["lin2_b"]),
    ], axis=0)
    assert bias.shape == (N_BIAS, 256)

    g_both, scat, self_all = _graph_operators(edge_index, NUM_NODES, NUM_EDGES)

    # NOTE: params["att"] is constant-folded (softmax of a length-1 vector == 1);
    # conv_r / lin_r are dead for PERIODS == 1 (h_prev == 0).
    return {
        "w32": w32, "w64": w64, "w256": w256, "bias": bias,
        "g_both": g_both, "scat": scat, "self_all": self_all,
        "node_embed": f32(params["node_embed"]),
        "embed": f32(params["embed"]),
        "time_embed": f32(params["time_embed"]),
        "week_embed": f32(params["week_embed"]),
    }


# ----------------------------- per-call forward -------------------------------
def forward(prep, index, x, attr, cur_t, cur_w, key):
    """Per-call path: RNG draws + embedding gathers + one fused pallas_call."""
    kr, kd, ke = jax.random.split(key, 3)
    n_nodes, c = x.shape

    ratio = (0.8 + 0.4 * jax.random.uniform(kr, ())).reshape(1, 1).astype(jnp.float32)
    drop_t = (jax.random.uniform(kd, (1, n_nodes)) > 0.4).astype(jnp.float32)
    eps = jax.random.normal(ke, (c, HID), jnp.float32)
    x_t = x.T                                                     # [C, N]

    emb3 = jnp.concatenate([prep["embed"][index],
                            prep["time_embed"][cur_t],
                            prep["week_embed"][cur_w]], axis=0)   # [3E, H]

    vmem_spec = pl.BlockSpec(memory_space=pltpu.MemorySpace.VMEM)
    x_rec_t, xf = pl.pallas_call(
        _fused_kernel,
        out_shape=(jax.ShapeDtypeStruct((c, n_nodes), jnp.float32),
                   jax.ShapeDtypeStruct((NUM_EDGES, OUT_CH), jnp.float32)),
        in_specs=[vmem_spec] * _N_INPUTS,
        out_specs=(vmem_spec, vmem_spec),
    )(x_t, eps, ratio, drop_t, attr, emb3,
      prep["node_embed"], prep["g_both"], prep["scat"], prep["self_all"],
      prep["w32"], prep["w64"], prep["w256"], prep["bias"])

    x_rec = x_rec_t.T                                             # [N, C]
    return xf, x_rec


# ----------------------------- parameter init --------------------------------
def init_params(key):
    keys = iter(jax.random.split(key, 64))

    def nrm(shape):
        return jax.random.normal(next(keys), shape, jnp.float32)

    def lin(in_f, out_f):
        k = 1.0 / np.sqrt(in_f)
        w = jax.random.uniform(next(keys), (in_f, out_f), jnp.float32, -k, k)
        b = jax.random.uniform(next(keys), (out_f,), jnp.float32, -k, k)
        return w, b

    p = {}
    p["embed"] = nrm((NUM_EDGES, HID))
    p["node_embed"] = nrm((NUM_NODES, HID))
    p["time_embed"] = nrm((96, HID))
    p["week_embed"] = nrm((7, HID))
    p["att"] = nrm((PERIODS,))
    p["attr_lin_w"], p["attr_lin_b"] = lin(NUM_ATTRS, HID)
    p["attr_lin1_w0"], p["attr_lin1_b0"] = lin(NUM_ATTRS, HID)
    p["attr_lin1_w1"], p["attr_lin1_b1"] = lin(HID, HID)
    p["fc1_w"], p["fc1_b"] = lin(NUM_NODES, 256)
    p["fc2_w"], p["fc2_b"] = lin(256, 32)
    p["fc3_w"], p["fc3_b"] = lin(256, 32)
    p["fc4_w"], p["fc4_b"] = lin(32, 256)
    p["fc5_w"], p["fc5_b"] = lin(256, NUM_NODES)
    p["gcn_lin1_w"], p["gcn_lin1_b"] = lin(2 * IN_CH, IN_CH)
    p["gcn_lin2_w"], p["gcn_lin2_b"] = lin(2 * HID, HID)
    for i in range(3):
        p[f"conv1_{i}_w"], p[f"conv1_{i}_b"] = lin(HID, HID)
    p["lin0_w"], p["lin0_b"] = lin(6 * HID, HID)
    p["lin1_w"], p["lin1_b"] = lin(HID, HID)
    p["lin2_w"], p["lin2_b"] = lin(HID, OUT_CH)
    p["conv_z_w"], p["conv_z_b"] = lin(IN_CH, HID)
    p["conv_r_w"], p["conv_r_b"] = lin(IN_CH, HID)   # dead for PERIODS == 1
    p["conv_h_w"], p["conv_h_b"] = lin(IN_CH, HID)
    p["lin_z_w"], p["lin_z_b"] = lin(2 * HID, HID)
    p["lin_r_w"], p["lin_r_b"] = lin(2 * HID, HID)   # dead (h_prev == 0), kept for parity
    p["lin_h_w"], p["lin_h_b"] = lin(2 * HID, HID)
    return p


# ----------------------------- main -------------------------------------------
if __name__ == "__main__":
    root = jax.random.PRNGKey(0)
    pkey, dkey, fkey = jax.random.split(root, 3)
    params = init_params(pkey)

    k1, k2, k3, k4, k5 = jax.random.split(dkey, 5)
    index = jnp.arange(NUM_EDGES, dtype=jnp.int32)                       # edge ids
    edge_index = jax.random.randint(k1, (2, NUM_EDGES), 0, NUM_NODES)    # [2, E]
    x = jax.random.uniform(k2, (NUM_NODES, IN_CH), jnp.float32, XMIN, XMAX)
    attr = jax.random.normal(k3, (NUM_EDGES, NUM_ATTRS), jnp.float32)
    cur_t = jax.random.randint(k4, (NUM_EDGES,), 0, 96)
    cur_w = jax.random.randint(k5, (NUM_EDGES,), 0, 7)

    prep = prepare(params, edge_index)        # one-time: operators + packed weight slabs
    fwd = jax.jit(forward)
    xf, x_rec = fwd(prep, index, x, attr, cur_t, cur_w, fkey)
    jax.block_until_ready((xf, x_rec))
    assert xf.shape == (NUM_EDGES, OUT_CH)
    assert x_rec.shape == (NUM_NODES, IN_CH)
    print("KERNEL_OK")
</pallas_src>

<mosaic_0001>
module attributes {stable_mosaic.version = 11 : i64} {
  func.func @_fused_kernel(%arg0: memref<4x64xf32, #tpu.memory_space<vmem>>, %arg1: memref<4x32xf32, #tpu.memory_space<vmem>>, %arg2: memref<1x1xf32, #tpu.memory_space<vmem>>, %arg3: memref<1x64xf32, #tpu.memory_space<vmem>>, %arg4: memref<128x8xf32, #tpu.memory_space<vmem>>, %arg5: memref<384x32xf32, #tpu.memory_space<vmem>>, %arg6: memref<64x32xf32, #tpu.memory_space<vmem>>, %arg7: memref<256x64xf32, #tpu.memory_space<vmem>>, %arg8: memref<192x128xf32, #tpu.memory_space<vmem>>, %arg9: memref<192x1xf32, #tpu.memory_space<vmem>>, %arg10: memref<544x32xf32, #tpu.memory_space<vmem>>, %arg11: memref<544x64xf32, #tpu.memory_space<vmem>>, %arg12: memref<96x256xf32, #tpu.memory_space<vmem>>, %arg13: memref<18x256xf32, #tpu.memory_space<vmem>>, %arg14: memref<4x64xf32, #tpu.memory_space<vmem>>, %arg15: memref<128x4xf32, #tpu.memory_space<vmem>>) attributes {dimension_semantics = [], scalar_prefetch = 0 : i64, scratch_operands = 0 : i64, tpu.core_type = #tpu.core_type<tc>} {
    %c0 = arith.constant 0 : index
    %c0_0 = arith.constant 0 : index
    %0 = vector.load %arg0[%c0, %c0_0] : memref<4x64xf32, #tpu.memory_space<vmem>>, vector<4x64xf32>
    %c0_1 = arith.constant 0 : index
    %c0_2 = arith.constant 0 : index
    %1 = vector.load %arg2[%c0_1, %c0_2] : memref<1x1xf32, #tpu.memory_space<vmem>>, vector<1x1xf32>
    %cst = arith.constant dense<0.000000e+00> : vector<64xf32>
    %2 = vector.multi_reduction <add>, %0, %cst [0] : vector<4x64xf32> to vector<64xf32>
    %3 = vector.shape_cast %2 : vector<64xf32> to vector<1x64xf32>
    %cst_3 = arith.constant -4.840000e+00 : f32
    %4 = vector.broadcast %cst_3 : f32 to vector<1x64xf32>
    %5 = arith.cmpf one, %3, %4 : vector<1x64xf32>
    %6 = arith.extui %5 : vector<1x64xi1> to vector<1x64xi32>
    %7 = arith.sitofp %6 : vector<1x64xi32> to vector<1x64xf32>
    %cst_4 = arith.constant -1.210000e+00 : f32
    %8 = vector.broadcast %cst_4 : f32 to vector<4x64xf32>
    %9 = arith.subf %0, %8 : vector<4x64xf32>
    %cst_5 = arith.constant 0.0398089178 : f32
    %10 = vector.broadcast %cst_5 : f32 to vector<4x64xf32>
    %11 = arith.mulf %9, %10 : vector<4x64xf32>
    %12 = vector.broadcast %1 : vector<1x1xf32> to vector<4x64xf32>
    %13 = arith.mulf %11, %12 : vector<4x64xf32>
    %c0_6 = arith.constant 0 : index
    %c0_7 = arith.constant 0 : index
    %14 = vector.load %arg3[%c0_6, %c0_7] : memref<1x64xf32, #tpu.memory_space<vmem>>, vector<1x64xf32>
    %15 = vector.broadcast %14 : vector<1x64xf32> to vector<4x64xf32>
    %16 = arith.mulf %13, %15 : vector<4x64xf32>
    %c0_8 = arith.constant 0 : index
    %c0_9 = arith.constant 0 : index
    %17 = vector.load %arg12[%c0_8, %c0_9] : memref<96x256xf32, #tpu.memory_space<vmem>>, vector<64x256xf32>
    %cst_10 = arith.constant dense<0.000000e+00> : vector<4x256xf32>
    %18 = tpu.matmul %16, %17, %cst_10 {dimension_numbers = #tpu.dot_dimension_numbers<[1], [0], [0], [1], [0, 0, 1, 1], [], []>} : vector<4x64xf32>, vector<64x256xf32>, vector<4x256xf32> -> vector<4x256xf32>
    %c0_11 = arith.constant 0 : index
    %c0_12 = arith.constant 0 : index
    %19 = vector.load %arg13[%c0_11, %c0_12] : memref<18x256xf32, #tpu.memory_space<vmem>>, vector<1x256xf32>
    %20 = vector.broadcast %19 : vector<1x256xf32> to vector<4x256xf32>
    %21 = arith.addf %18, %20 : vector<4x256xf32>
    %cst_13 = arith.constant 5.000000e-01 : f32
    %22 = vector.broadcast %cst_13 : f32 to vector<4x256xf32>
    %23 = arith.mulf %22, %21 : vector<4x256xf32>
    %cst_14 = arith.constant 4.471500e-02 : f32
    %24 = vector.broadcast %cst_14 : f32 to vector<4x256xf32>
    %25 = arith.mulf %24, %21 : vector<4x256xf32>
    %26 = arith.mulf %25, %21 : vector<4x256xf32>
    %27 = arith.mulf %26, %21 : vector<4x256xf32>
    %28 = arith.addf %21, %27 : vector<4x256xf32>
    %cst_15 = arith.constant 0.797884583 : f32
    %29 = vector.broadcast %cst_15 : f32 to vector<4x256xf32>
    %30 = arith.mulf %29, %28 : vector<4x256xf32>
    %31 = math.tanh %30 : vector<4x256xf32>
    %cst_16 = arith.constant 1.000000e+00 : f32
    %32 = vector.broadcast %cst_16 : f32 to vector<4x256xf32>
    %33 = arith.addf %32, %31 : vector<4x256xf32>
    %34 = arith.mulf %23, %33 : vector<4x256xf32>
    %c0_17 = arith.constant 0 : index
    %c0_18 = arith.constant 0 : index
    %35 = vector.load %arg11[%c0_17, %c0_18] : memref<544x64xf32, #tpu.memory_space<vmem>>, vector<256x64xf32>
    %cst_19 = arith.constant dense<0.000000e+00> : vector<4x64xf32>
    %36 = tpu.matmul %34, %35, %cst_19 {dimension_numbers = #tpu.dot_dimension_numbers<[1], [0], [0], [1], [0, 0, 1, 1], [], []>} : vector<4x256xf32>, vector<256x64xf32>, vector<4x64xf32> -> vector<4x64xf32>
    %c2 = arith.constant 2 : index
    %c0_20 = arith.constant 0 : index
    %37 = vector.load %arg13[%c2, %c0_20] : memref<18x256xf32, #tpu.memory_space<vmem>>, vector<1x64xf32>
    %38 = vector.broadcast %37 : vector<1x64xf32> to vector<4x64xf32>
    %39 = arith.addf %36, %38 : vector<4x64xf32>
    %40 = vector.extract_strided_slice %39 {offsets = [0, 0], sizes = [4, 32], strides = [1, 1]} : vector<4x64xf32> to vector<4x32xf32>
    %c0_21 = arith.constant 0 : index
    %c0_22 = arith.constant 0 : index
    %41 = vector.load %arg1[%c0_21, %c0_22] : memref<4x32xf32, #tpu.memory_space<vmem>>, vector<4x32xf32>
    %42 = vector.extract_strided_slice %39 {offsets = [0, 32], sizes = [4, 32], strides = [1, 1]} : vector<4x64xf32> to vector<4x32xf32>
    %cst_23 = arith.constant 5.000000e-01 : f32
    %43 = vector.broadcast %cst_23 : f32 to vector<4x32xf32>
    %44 = arith.mulf %43, %42 : vector<4x32xf32>
    %45 = math.exp %44 : vector<4x32xf32>
    %46 = arith.mulf %41, %45 : vector<4x32xf32>
    %47 = arith.addf %40, %46 : vector<4x32xf32>
    %c64 = arith.constant 64 : index
    %c0_24 = arith.constant 0 : index
    %48 = vector.load %arg12[%c64, %c0_24] : memref<96x256xf32, #tpu.memory_space<vmem>>, vector<32x256xf32>
    %cst_25 = arith.constant dense<0.000000e+00> : vector<4x256xf32>
    %49 = tpu.matmul %47, %48, %cst_25 {dimension_numbers = #tpu.dot_dimension_numbers<[1], [0], [0], [1], [0, 0, 1, 1], [], []>} : vector<4x32xf32>, vector<32x256xf32>, vector<4x256xf32> -> vector<4x256xf32>
    %c1 = arith.constant 1 : index
    %c0_26 = arith.constant 0 : index
    %50 = vector.load %arg13[%c1, %c0_26] : memref<18x256xf32, #tpu.memory_space<vmem>>, vector<1x256xf32>
    %51 = vector.broadcast %50 : vector<1x256xf32> to vector<4x256xf32>
    %52 = arith.addf %49, %51 : vector<4x256xf32>
    %cst_27 = arith.constant 5.000000e-01 : f32
    %53 = vector.broadcast %cst_27 : f32 to vector<4x256xf32>
    %54 = arith.mulf %53, %52 : vector<4x256xf32>
    %cst_28 = arith.constant 4.471500e-02 : f32
    %55 = vector.broadcast %cst_28 : f32 to vector<4x256xf32>
    %56 = arith.mulf %55, %52 : vector<4x256xf32>
    %57 = arith.mulf %56, %52 : vector<4x256xf32>
    %58 = arith.mulf %57, %52 : vector<4x256xf32>
    %59 = arith.addf %52, %58 : vector<4x256xf32>
    %cst_29 = arith.constant 0.797884583 : f32
    %60 = vector.broadcast %cst_29 : f32 to vector<4x256xf32>
    %61 = arith.mulf %60, %59 : vector<4x256xf32>
    %62 = math.tanh %61 : vector<4x256xf32>
    %cst_30 = arith.constant 1.000000e+00 : f32
    %63 = vector.broadcast %cst_30 : f32 to vector<4x256xf32>
    %64 = arith.addf %63, %62 : vector<4x256xf32>
    %65 = arith.mulf %54, %64 : vector<4x256xf32>
    %c256 = arith.constant 256 : index
    %c0_31 = arith.constant 0 : index
    %66 = vector.load %arg11[%c256, %c0_31] : memref<544x64xf32, #tpu.memory_space<vmem>>, vector<256x64xf32>
    %cst_32 = arith.constant dense<0.000000e+00> : vector<4x64xf32>
    %67 = tpu.matmul %65, %66, %cst_32 {dimension_numbers = #tpu.dot_dimension_numbers<[1], [0], [0], [1], [0, 0, 1, 1], [], []>} : vector<4x256xf32>, vector<256x64xf32>, vector<4x64xf32> -> vector<4x64xf32>
    %c3 = arith.constant 3 : index
    %c0_33 = arith.constant 0 : index
    %68 = vector.load %arg13[%c3, %c0_33] : memref<18x256xf32, #tpu.memory_space<vmem>>, vector<1x64xf32>
    %69 = vector.broadcast %68 : vector<1x64xf32> to vector<4x64xf32>
    %70 = arith.addf %67, %69 : vector<4x64xf32>
    %71 = vector.broadcast %1 : vector<1x1xf32> to vector<4x64xf32>
    %72 = arith.divf %70, %71 : vector<4x64xf32>
    %cst_34 = arith.constant 2.512000e+01 : f32
    %73 = vector.broadcast %cst_34 : f32 to vector<4x64xf32>
    %74 = arith.mulf %72, %73 : vector<4x64xf32>
    %cst_35 = arith.constant -1.210000e+00 : f32
    %75 = vector.broadcast %cst_35 : f32 to vector<4x64xf32>
    %76 = arith.addf %74, %75 : vector<4x64xf32>
    %c0_36 = arith.constant 0 : index
    %c0_37 = arith.constant 0 : index
    %77 = vector.load %arg14[%c0_36, %c0_37] : memref<4x64xf32, #tpu.memory_space<vmem>>, vector<4x64xf32>
    tpu.vector_store %arg14[%c0_36, %c0_37], %76 {strides = array<i32>} : memref<4x64xf32, #tpu.memory_space<vmem>>, vector<4x64xf32>,
    %78 = vector.broadcast %7 : vector<1x64xf32> to vector<4x64xf32>
    %79 = arith.mulf %78, %0 : vector<4x64xf32>
    %cst_38 = arith.constant 1.000000e+00 : f32
    %80 = vector.broadcast %cst_38 : f32 to vector<1x64xf32>
    %81 = arith.subf %80, %7 : vector<1x64xf32>
    %82 = vector.broadcast %81 : vector<1x64xf32> to vector<4x64xf32>
    %83 = arith.mulf %82, %76 : vector<4x64xf32>
    %84 = arith.addf %79, %83 : vector<4x64xf32>
    %c0_39 = arith.constant 0 : index
    %c0_40 = arith.constant 0 : index
    %85 = vector.load %arg7[%c0_39, %c0_40] : memref<256x64xf32, #tpu.memory_space<vmem>>, vector<256x64xf32>
    %86 = vector.extract_strided_slice %85 {offsets = [0, 0], sizes = [128, 64], strides = [1, 1]} : vector<256x64xf32> to vector<128x64xf32>
    %c0_41 = arith.constant 0 : index
    %c0_42 = arith.constant 0 : index
    %87 = vector.load %arg8[%c0_41, %c0_42] : memref<192x128xf32, #tpu.memory_space<vmem>>, vector<192x128xf32>
    %88 = vector.extract_strided_slice %87 {offsets = [0, 0], sizes = [64, 128], strides = [1, 1]} : vector<192x128xf32> to vector<64x128xf32>
    %89 = vector.extract_strided_slice %87 {offsets = [64, 0], sizes = [128, 128], strides = [1, 1]} : vector<192x128xf32> to vector<128x128xf32>
    %c0_43 = arith.constant 0 : index
    %c0_44 = arith.constant 0 : index
    %90 = vector.load %arg9[%c0_43, %c0_44] : memref<192x1xf32, #tpu.memory_space<vmem>>, vector<192x1xf32>
    %91 = vector.extract_strided_slice %90 {offsets = [0, 0], sizes = [64, 1], strides = [1, 1]} : vector<192x1xf32> to vector<64x1xf32>
    %92 = vector.extract_strided_slice %90 {offsets = [64, 0], sizes = [128, 1], strides = [1, 1]} : vector<192x1xf32> to vector<128x1xf32>
    %c0_45 = arith.constant 0 : index
    %c0_46 = arith.constant 0 : index
    %93 = vector.load %arg4[%c0_45, %c0_46] : memref<128x8xf32, #tpu.memory_space<vmem>>, vector<128x8xf32>
    %c0_47 = arith.constant 0 : index
    %c0_48 = arith.constant 0 : index
    %94 = vector.load %arg10[%c0_47, %c0_48] : memref<544x32xf32, #tpu.memory_space<vmem>>, vector<8x32xf32>
    %cst_49 = arith.constant dense<0.000000e+00> : vector<128x32xf32>
    %95 = tpu.matmul %93, %94, %cst_49 {dimension_numbers = #tpu.dot_dimension_numbers<[1], [0], [0], [1], [0, 0, 1, 1], [], []>} : vector<128x8xf32>, vector<8x32xf32>, vector<128x32xf32> -> vector<128x32xf32>
    %c5 = arith.constant 5 : index
    %c0_50 = arith.constant 0 : index
    %96 = vector.load %arg13[%c5, %c0_50] : memref<18x256xf32, #tpu.memory_space<vmem>>, vector<1x32xf32>
    %97 = vector.broadcast %96 : vector<1x32xf32> to vector<128x32xf32>
    %98 = arith.addf %95, %97 : vector<128x32xf32>
    %c0_51 = arith.constant 0 : index
    %c0_52 = arith.constant 0 : index
    %99 = vector.load %arg6[%c0_51, %c0_52] : memref<64x32xf32, #tpu.memory_space<vmem>>, vector<64x32xf32>
    %c48 = arith.constant 48 : index
    %c0_53 = arith.constant 0 : index
    %100 = vector.load %arg10[%c48, %c0_53] : memref<544x32xf32, #tpu.memory_space<vmem>>, vector<32x32xf32>
    %cst_54 = arith.constant dense<0.000000e+00> : vector<64x32xf32>
    %101 = tpu.matmul %99, %100, %cst_54 {dimension_numbers = #tpu.dot_dimension_numbers<[1], [0], [0], [1], [0, 0, 1, 1], [], []>} : vector<64x32xf32>, vector<32x32xf32>, vector<64x32xf32> -> vector<64x32xf32>
    %cst_55 = arith.constant dense<0.000000e+00> : vector<128x32xf32>
    %102 = tpu.matmul %86, %101, %cst_55 {dimension_numbers = #tpu.dot_dimension_numbers<[1], [0], [0], [1], [0, 0, 1, 1], [], []>} : vector<128x64xf32>, vector<64x32xf32>, vector<128x32xf32> -> vector<128x32xf32>
    %103 = arith.addf %102, %98 : vector<128x32xf32>
    %cst_56 = arith.constant dense<0.000000e+00> : vector<64x32xf32>
    %104 = tpu.matmul %88, %103, %cst_56 {dimension_numbers = #tpu.dot_dimension_numbers<[1], [0], [0], [1], [0, 0, 1, 1], [], []>} : vector<64x128xf32>, vector<128x32xf32>, vector<64x32xf32> -> vector<64x32xf32>
    %105 = vector.broadcast %91 : vector<64x1xf32> to vector<64x32xf32>
    %106 = arith.mulf %101, %105 : vector<64x32xf32>
    %107 = arith.addf %104, %106 : vector<64x32xf32>
    %c8 = arith.constant 8 : index
    %c0_57 = arith.constant 0 : index
    %108 = vector.load %arg13[%c8, %c0_57] : memref<18x256xf32, #tpu.memory_space<vmem>>, vector<1x32xf32>
    %109 = vector.broadcast %108 : vector<1x32xf32> to vector<64x32xf32>
    %110 = arith.addf %107, %109 : vector<64x32xf32>
    %cst_58 = arith.constant 5.000000e-01 : f32
    %111 = vector.broadcast %cst_58 : f32 to vector<64x32xf32>
    %112 = arith.mulf %111, %110 : vector<64x32xf32>
    %cst_59 = arith.constant 4.471500e-02 : f32
    %113 = vector.broadcast %cst_59 : f32 to vector<64x32xf32>
    %114 = arith.mulf %113, %110 : vector<64x32xf32>
    %115 = arith.mulf %114, %110 : vector<64x32xf32>
    %116 = arith.mulf %115, %110 : vector<64x32xf32>
    %117 = arith.addf %110, %116 : vector<64x32xf32>
    %cst_60 = arith.constant 0.797884583 : f32
    %118 = vector.broadcast %cst_60 : f32 to vector<64x32xf32>
    %119 = arith.mulf %118, %117 : vector<64x32xf32>
    %120 = math.tanh %119 : vector<64x32xf32>
    %cst_61 = arith.constant 1.000000e+00 : f32
    %121 = vector.broadcast %cst_61 : f32 to vector<64x32xf32>
    %122 = arith.addf %121, %120 : vector<64x32xf32>
    %123 = arith.mulf %112, %122 : vector<64x32xf32>
    %124 = arith.addf %123, %99 : vector<64x32xf32>
    %c80 = arith.constant 80 : index
    %c0_62 = arith.constant 0 : index
    %125 = vector.load %arg10[%c80, %c0_62] : memref<544x32xf32, #tpu.memory_space<vmem>>, vector<32x32xf32>
    %cst_63 = arith.constant dense<0.000000e+00> : vector<64x32xf32>
    %126 = tpu.matmul %124, %125, %cst_63 {dimension_numbers = #tpu.dot_dimension_numbers<[1], [0], [0], [1], [0, 0, 1, 1], [], []>} : vector<64x32xf32>, vector<32x32xf32>, vector<64x32xf32> -> vector<64x32xf32>
    %cst_64 = arith.constant dense<0.000000e+00> : vector<128x32xf32>
    %127 = tpu.matmul %86, %126, %cst_64 {dimension_numbers = #tpu.dot_dimension_numbers<[1], [0], [0], [1], [0, 0, 1, 1], [], []>} : vector<128x64xf32>, vector<64x32xf32>, vector<128x32xf32> -> vector<128x32xf32>
    %128 = arith.addf %127, %98 : vector<128x32xf32>
    %cst_65 = arith.constant dense<0.000000e+00> : vector<64x32xf32>
    %129 = tpu.matmul %88, %128, %cst_65 {dimension_numbers = #tpu.dot_dimension_numbers<[1], [0], [0], [1], [0, 0, 1, 1], [], []>} : vector<64x128xf32>, vector<128x32xf32>, vector<64x32xf32> -> vector<64x32xf32>
    %130 = vector.broadcast %91 : vector<64x1xf32> to vector<64x32xf32>
    %131 = arith.mulf %126, %130 : vector<64x32xf32>
    %132 = arith.addf %129, %131 : vector<64x32xf32>
    %c9 = arith.constant 9 : index
    %c0_66 = arith.constant 0 : index
    %133 = vector.load %arg13[%c9, %c0_66] : memref<18x256xf32, #tpu.memory_space<vmem>>, vector<1x32xf32>
    %134 = vector.broadcast %133 : vector<1x32xf32> to vector<64x32xf32>
    %135 = arith.addf %132, %134 : vector<64x32xf32>
    %cst_67 = arith.constant 5.000000e-01 : f32
    %136 = vector.broadcast %cst_67 : f32 to vector<64x32xf32>
    %137 = arith.mulf %136, %135 : vector<64x32xf32>
    %cst_68 = arith.constant 4.471500e-02 : f32
    %138 = vector.broadcast %cst_68 : f32 to vector<64x32xf32>
    %139 = arith.mulf %138, %135 : vector<64x32xf32>
    %140 = arith.mulf %139, %135 : vector<64x32xf32>
    %141 = arith.mulf %140, %135 : vector<64x32xf32>
    %142 = arith.addf %135, %141 : vector<64x32xf32>
    %cst_69 = arith.constant 0.797884583 : f32
    %143 = vector.broadcast %cst_69 : f32 to vector<64x32xf32>
    %144 = arith.mulf %143, %142 : vector<64x32xf32>
    %145 = math.tanh %144 : vector<64x32xf32>
    %cst_70 = arith.constant 1.000000e+00 : f32
    %146 = vector.broadcast %cst_70 : f32 to vector<64x32xf32>
    %147 = arith.addf %146, %145 : vector<64x32xf32>
    %148 = arith.mulf %137, %147 : vector<64x32xf32>
    %149 = arith.addf %148, %99 : vector<64x32xf32>
    %c112 = arith.constant 112 : index
    %c0_71 = arith.constant 0 : index
    %150 = vector.load %arg10[%c112, %c0_71] : memref<544x32xf32, #tpu.memory_space<vmem>>, vector<32x32xf32>
    %cst_72 = arith.constant dense<0.000000e+00> : vector<64x32xf32>
    %151 = tpu.matmul %149, %150, %cst_72 {dimension_numbers = #tpu.dot_dimension_numbers<[1], [0], [0], [1], [0, 0, 1, 1], [], []>} : vector<64x32xf32>, vector<32x32xf32>, vector<64x32xf32> -> vector<64x32xf32>
    %cst_73 = arith.constant dense<0.000000e+00> : vector<128x32xf32>
    %152 = tpu.matmul %86, %151, %cst_73 {dimension_numbers = #tpu.dot_dimension_numbers<[1], [0], [0], [1], [0, 0, 1, 1], [], []>} : vector<128x64xf32>, vector<64x32xf32>, vector<128x32xf32> -> vector<128x32xf32>
    %153 = arith.addf %152, %98 : vector<128x32xf32>
    %cst_74 = arith.constant dense<0.000000e+00> : vector<64x32xf32>
    %154 = tpu.matmul %88, %153, %cst_74 {dimension_numbers = #tpu.dot_dimension_numbers<[1], [0], [0], [1], [0, 0, 1, 1], [], []>} : vector<64x128xf32>, vector<128x32xf32>, vector<64x32xf32> -> vector<64x32xf32>
    %155 = vector.broadcast %91 : vector<64x1xf32> to vector<64x32xf32>
    %156 = arith.mulf %151, %155 : vector<64x32xf32>
    %157 = arith.addf %154, %156 : vector<64x32xf32>
    %c10 = arith.constant 10 : index
    %c0_75 = arith.constant 0 : index
    %158 = vector.load %arg13[%c10, %c0_75] : memref<18x256xf32, #tpu.memory_space<vmem>>, vector<1x32xf32>
    %159 = vector.broadcast %158 : vector<1x32xf32> to vector<64x32xf32>
    %160 = arith.addf %157, %159 : vector<64x32xf32>
    %cst_76 = arith.constant 5.000000e-01 : f32
    %161 = vector.broadcast %cst_76 : f32 to vector<64x32xf32>
    %162 = arith.mulf %161, %160 : vector<64x32xf32>
    %cst_77 = arith.constant 4.471500e-02 : f32
    %163 = vector.broadcast %cst_77 : f32 to vector<64x32xf32>
    %164 = arith.mulf %163, %160 : vector<64x32xf32>
    %165 = arith.mulf %164, %160 : vector<64x32xf32>
    %166 = arith.mulf %165, %160 : vector<64x32xf32>
    %167 = arith.addf %160, %166 : vector<64x32xf32>
    %cst_78 = arith.constant 0.797884583 : f32
    %168 = vector.broadcast %cst_78 : f32 to vector<64x32xf32>
    %169 = arith.mulf %168, %167 : vector<64x32xf32>
    %170 = math.tanh %169 : vector<64x32xf32>
    %cst_79 = arith.constant 1.000000e+00 : f32
    %171 = vector.broadcast %cst_79 : f32 to vector<64x32xf32>
    %172 = arith.addf %171, %170 : vector<64x32xf32>
    %173 = arith.mulf %162, %172 : vector<64x32xf32>
    %174 = arith.addf %173, %99 : vector<64x32xf32>
    %cst_80 = arith.constant dense<0.000000e+00> : vector<256x4xf32>
    %175 = tpu.matmul %85, %84, %cst_80 {dimension_numbers = #tpu.dot_dimension_numbers<[1], [1], [0], [0], [0, 0, 1, 0], [], []>} : vector<256x64xf32>, vector<4x64xf32>, vector<256x4xf32> -> vector<256x4xf32>
    %176 = vector.extract_strided_slice %175 {offsets = [0, 0], sizes = [128, 4], strides = [1, 1]} : vector<256x4xf32> to vector<128x4xf32>
    %c144 = arith.constant 144 : index
    %c0_81 = arith.constant 0 : index
    %177 = vector.load %arg10[%c144, %c0_81] : memref<544x32xf32, #tpu.memory_space<vmem>>, vector<4x32xf32>
    %cst_82 = arith.constant dense<0.000000e+00> : vector<128x32xf32>
    %178 = tpu.matmul %176, %177, %cst_82 {dimension_numbers = #tpu.dot_dimension_numbers<[1], [0], [0], [1], [0, 0, 1, 1], [], []>} : vector<128x4xf32>, vector<4x32xf32>, vector<128x32xf32> -> vector<128x32xf32>
    %179 = vector.extract_strided_slice %175 {offsets = [128, 0], sizes = [128, 4], strides = [1, 1]} : vector<256x4xf32> to vector<128x4xf32>
    %c152 = arith.constant 152 : index
    %c0_83 = arith.constant 0 : index
    %180 = vector.load %arg10[%c152, %c0_83] : memref<544x32xf32, #tpu.memory_space<vmem>>, vector<4x32xf32>
    %cst_84 = arith.constant dense<0.000000e+00> : vector<128x32xf32>
    %181 = tpu.matmul %179, %180, %cst_84 {dimension_numbers = #tpu.dot_dimension_numbers<[1], [0], [0], [1], [0, 0, 1, 1], [], []>} : vector<128x4xf32>, vector<4x32xf32>, vector<128x32xf32> -> vector<128x32xf32>
    %182 = arith.addf %178, %181 : vector<128x32xf32>
    %c11 = arith.constant 11 : index
    %c0_85 = arith.constant 0 : index
    %183 = vector.load %arg13[%c11, %c0_85] : memref<18x256xf32, #tpu.memory_space<vmem>>, vector<1x32xf32>
    %184 = vector.broadcast %183 : vector<1x32xf32> to vector<128x32xf32>
    %185 = arith.addf %182, %184 : vector<128x32xf32>
    %c512 = arith.constant 512 : index
    %c0_86 = arith.constant 0 : index
    %186 = vector.load %arg11[%c512, %c0_86] : memref<544x64xf32, #tpu.memory_space<vmem>>, vector<32x64xf32>
    %cst_87 = arith.constant dense<0.000000e+00> : vector<128x64xf32>
    %187 = tpu.matmul %185, %186, %cst_87 {dimension_numbers = #tpu.dot_dimension_numbers<[1], [0], [0], [1], [0, 0, 1, 1], [], []>} : vector<128x32xf32>, vector<32x64xf32>, vector<128x64xf32> -> vector<128x64xf32>
    %188 = vector.extract_strided_slice %187 {offsets = [0, 0], sizes = [64, 64], strides = [1, 1]} : vector<128x64xf32> to vector<64x64xf32>
    %cst_88 = arith.constant dense<0.000000e+00> : vector<128x64xf32>
    %189 = tpu.matmul %86, %188, %cst_88 {dimension_numbers = #tpu.dot_dimension_numbers<[1], [0], [0], [1], [0, 0, 1, 1], [], []>} : vector<128x64xf32>, vector<64x64xf32>, vector<128x64xf32> -> vector<128x64xf32>
    %cst_89 = arith.constant dense<0.000000e+00> : vector<128x64xf32>
    %190 = tpu.matmul %89, %189, %cst_89 {dimension_numbers = #tpu.dot_dimension_numbers<[1], [0], [0], [1], [0, 0, 1, 1], [], []>} : vector<128x128xf32>, vector<128x64xf32>, vector<128x64xf32> -> vector<128x64xf32>
    %191 = vector.broadcast %92 : vector<128x1xf32> to vector<128x64xf32>
    %192 = arith.mulf %187, %191 : vector<128x64xf32>
    %193 = arith.addf %190, %192 : vector<128x64xf32>
    %c4 = arith.constant 4 : index
    %c0_90 = arith.constant 0 : index
    %194 = vector.load %arg13[%c4, %c0_90] : memref<18x256xf32, #tpu.memory_space<vmem>>, vector<1x64xf32>
    %195 = vector.broadcast %194 : vector<1x64xf32> to vector<128x64xf32>
    %196 = arith.addf %193, %195 : vector<128x64xf32>
    %197 = vector.extract_strided_slice %196 {offsets = [0, 0], sizes = [128, 32], strides = [1, 1]} : vector<128x64xf32> to vector<128x32xf32>
    %c224 = arith.constant 224 : index
    %c0_91 = arith.constant 0 : index
    %198 = vector.load %arg10[%c224, %c0_91] : memref<544x32xf32, #tpu.memory_space<vmem>>, vector<32x32xf32>
    %cst_92 = arith.constant dense<0.000000e+00> : vector<128x32xf32>
    %199 = tpu.matmul %197, %198, %cst_92 {dimension_numbers = #tpu.dot_dimension_numbers<[1], [0], [0], [1], [0, 0, 1, 1], [], []>} : vector<128x32xf32>, vector<32x32xf32>, vector<128x32xf32> -> vector<128x32xf32>
    %c13 = arith.constant 13 : index
    %c0_93 = arith.constant 0 : index
    %200 = vector.load %arg13[%c13, %c0_93] : memref<18x256xf32, #tpu.memory_space<vmem>>, vector<1x32xf32>
    %201 = vector.broadcast %200 : vector<1x32xf32> to vector<128x32xf32>
    %202 = arith.addf %199, %201 : vector<128x32xf32>
    %203 = arith.negf %202 : vector<128x32xf32>
    %204 = math.exp %203 : vector<128x32xf32>
    %cst_94 = arith.constant 1.000000e+00 : f32
    %205 = vector.broadcast %cst_94 : f32 to vector<128x32xf32>
    %206 = arith.addf %205, %204 : vector<128x32xf32>
    %207 = arith.divf %205, %206 : vector<128x32xf32>
    %208 = vector.extract_strided_slice %196 {offsets = [0, 32], sizes = [128, 32], strides = [1, 1]} : vector<128x64xf32> to vector<128x32xf32>
    %c256_95 = arith.constant 256 : index
    %c0_96 = arith.constant 0 : index
    %209 = vector.load %arg10[%c256_95, %c0_96] : memref<544x32xf32, #tpu.memory_space<vmem>>, vector<32x32xf32>
    %cst_97 = arith.constant dense<0.000000e+00> : vector<128x32xf32>
    %210 = tpu.matmul %208, %209, %cst_97 {dimension_numbers = #tpu.dot_dimension_numbers<[1], [0], [0], [1], [0, 0, 1, 1], [], []>} : vector<128x32xf32>, vector<32x32xf32>, vector<128x32xf32> -> vector<128x32xf32>
    %c14 = arith.constant 14 : index
    %c0_98 = arith.constant 0 : index
    %211 = vector.load %arg13[%c14, %c0_98] : memref<18x256xf32, #tpu.memory_space<vmem>>, vector<1x32xf32>
    %212 = vector.broadcast %211 : vector<1x32xf32> to vector<128x32xf32>
    %213 = arith.addf %210, %212 : vector<128x32xf32>
    %214 = math.tanh %213 : vector<128x32xf32>
    %cst_99 = arith.constant 1.000000e+00 : f32
    %215 = vector.broadcast %cst_99 : f32 to vector<128x32xf32>
    %216 = arith.subf %215, %207 : vector<128x32xf32>
    %217 = arith.mulf %216, %214 : vector<128x32xf32>
    %cst_100 = arith.constant 0.000000e+00 : f32
    %218 = vector.broadcast %cst_100 : f32 to vector<128x32xf32>
    %219 = arith.maximumf %217, %218 : vector<128x32xf32>
    %cst_101 = arith.constant dense<0.000000e+00> : vector<256x32xf32>
    %220 = tpu.matmul %85, %174, %cst_101 {dimension_numbers = #tpu.dot_dimension_numbers<[1], [0], [0], [1], [0, 0, 1, 1], [], []>} : vector<256x64xf32>, vector<64x32xf32>, vector<256x32xf32> -> vector<256x32xf32>
    %221 = vector.extract_strided_slice %220 {offsets = [0, 0], sizes = [128, 32], strides = [1, 1]} : vector<256x32xf32> to vector<128x32xf32>
    %c160 = arith.constant 160 : index
    %c0_102 = arith.constant 0 : index
    %222 = vector.load %arg10[%c160, %c0_102] : memref<544x32xf32, #tpu.memory_space<vmem>>, vector<32x32xf32>
    %cst_103 = arith.constant dense<0.000000e+00> : vector<128x32xf32>
    %223 = tpu.matmul %221, %222, %cst_103 {dimension_numbers = #tpu.dot_dimension_numbers<[1], [0], [0], [1], [0, 0, 1, 1], [], []>} : vector<128x32xf32>, vector<32x32xf32>, vector<128x32xf32> -> vector<128x32xf32>
    %224 = vector.extract_strided_slice %220 {offsets = [128, 0], sizes = [128, 32], strides = [1, 1]} : vector<256x32xf32> to vector<128x32xf32>
    %c192 = arith.constant 192 : index
    %c0_104 = arith.constant 0 : index
    %225 = vector.load %arg10[%c192, %c0_104] : memref<544x32xf32, #tpu.memory_space<vmem>>, vector<32x32xf32>
    %cst_105 = arith.constant dense<0.000000e+00> : vector<128x32xf32>
    %226 = tpu.matmul %224, %225, %cst_105 {dimension_numbers = #tpu.dot_dimension_numbers<[1], [0], [0], [1], [0, 0, 1, 1], [], []>} : vector<128x32xf32>, vector<32x32xf32>, vector<128x32xf32> -> vector<128x32xf32>
    %227 = arith.addf %223, %226 : vector<128x32xf32>
    %c12 = arith.constant 12 : index
    %c0_106 = arith.constant 0 : index
    %228 = vector.load %arg13[%c12, %c0_106] : memref<18x256xf32, #tpu.memory_space<vmem>>, vector<1x32xf32>
    %229 = vector.broadcast %228 : vector<1x32xf32> to vector<128x32xf32>
    %230 = arith.addf %227, %229 : vector<128x32xf32>
    %c8_107 = arith.constant 8 : index
    %c0_108 = arith.constant 0 : index
    %231 = vector.load %arg10[%c8_107, %c0_108] : memref<544x32xf32, #tpu.memory_space<vmem>>, vector<8x32xf32>
    %cst_109 = arith.constant dense<0.000000e+00> : vector<128x32xf32>
    %232 = tpu.matmul %93, %231, %cst_109 {dimension_numbers = #tpu.dot_dimension_numbers<[1], [0], [0], [1], [0, 0, 1, 1], [], []>} : vector<128x8xf32>, vector<8x32xf32>, vector<128x32xf32> -> vector<128x32xf32>
    %c6 = arith.constant 6 : index
    %c0_110 = arith.constant 0 : index
    %233 = vector.load %arg13[%c6, %c0_110] : memref<18x256xf32, #tpu.memory_space<vmem>>, vector<1x32xf32>
    %234 = vector.broadcast %233 : vector<1x32xf32> to vector<128x32xf32>
    %235 = arith.addf %232, %234 : vector<128x32xf32>
    %cst_111 = arith.constant 0.000000e+00 : f32
    %236 = vector.broadcast %cst_111 : f32 to vector<128x32xf32>
    %237 = arith.cmpf ogt, %235, %236 : vector<128x32xf32>
    %cst_112 = arith.constant 0.00999999977 : f32
    %238 = vector.broadcast %cst_112 : f32 to vector<128x32xf32>
    %239 = arith.mulf %238, %235 : vector<128x32xf32>
    %240 = arith.select %237, %235, %239 : vector<128x32xi1>, vector<128x32xf32>
    %c16 = arith.constant 16 : index
    %c0_113 = arith.constant 0 : index
    %241 = vector.load %arg10[%c16, %c0_113] : memref<544x32xf32, #tpu.memory_space<vmem>>, vector<32x32xf32>
    %cst_114 = arith.constant dense<0.000000e+00> : vector<128x32xf32>
    %242 = tpu.matmul %240, %241, %cst_114 {dimension_numbers = #tpu.dot_dimension_numbers<[1], [0], [0], [1], [0, 0, 1, 1], [], []>} : vector<128x32xf32>, vector<32x32xf32>, vector<128x32xf32> -> vector<128x32xf32>
    %c7 = arith.constant 7 : index
    %c0_115 = arith.constant 0 : index
    %243 = vector.load %arg13[%c7, %c0_115] : memref<18x256xf32, #tpu.memory_space<vmem>>, vector<1x32xf32>
    %244 = vector.broadcast %243 : vector<1x32xf32> to vector<128x32xf32>
    %245 = arith.addf %242, %244 : vector<128x32xf32>
    %c0_116 = arith.constant 0 : index
    %c0_117 = arith.constant 0 : index
    %246 = vector.load %arg5[%c0_116, %c0_117] : memref<384x32xf32, #tpu.memory_space<vmem>>, vector<384x32xf32>
    %247 = vector.extract_strided_slice %246 {offsets = [0, 0], sizes = [128, 32], strides = [1, 1]} : vector<384x32xf32> to vector<128x32xf32>
    %248 = vector.extract_strided_slice %246 {offsets = [128, 0], sizes = [128, 32], strides = [1, 1]} : vector<384x32xf32> to vector<128x32xf32>
    %249 = vector.extract_strided_slice %246 {offsets = [256, 0], sizes = [128, 32], strides = [1, 1]} : vector<384x32xf32> to vector<128x32xf32>
    %c15 = arith.constant 15 : index
    %c0_118 = arith.constant 0 : index
    %250 = vector.load %arg13[%c15, %c0_118] : memref<18x256xf32, #tpu.memory_space<vmem>>, vector<1x32xf32>
    %c288 = arith.constant 288 : index
    %c0_119 = arith.constant 0 : index
    %251 = vector.load %arg10[%c288, %c0_119] : memref<544x32xf32, #tpu.memory_space<vmem>>, vector<32x32xf32>
    %cst_120 = arith.constant dense<0.000000e+00> : vector<128x32xf32>
    %252 = tpu.matmul %247, %251, %cst_120 {dimension_numbers = #tpu.dot_dimension_numbers<[1], [0], [0], [1], [0, 0, 1, 1], [], []>} : vector<128x32xf32>, vector<32x32xf32>, vector<128x32xf32> -> vector<128x32xf32>
    %253 = vector.broadcast %250 : vector<1x32xf32> to vector<128x32xf32>
    %254 = arith.addf %253, %252 : vector<128x32xf32>
    %c320 = arith.constant 320 : index
    %c0_121 = arith.constant 0 : index
    %255 = vector.load %arg10[%c320, %c0_121] : memref<544x32xf32, #tpu.memory_space<vmem>>, vector<32x32xf32>
    %cst_122 = arith.constant dense<0.000000e+00> : vector<128x32xf32>
    %256 = tpu.matmul %245, %255, %cst_122 {dimension_numbers = #tpu.dot_dimension_numbers<[1], [0], [0], [1], [0, 0, 1, 1], [], []>} : vector<128x32xf32>, vector<32x32xf32>, vector<128x32xf32> -> vector<128x32xf32>
    %257 = arith.addf %254, %256 : vector<128x32xf32>
    %c352 = arith.constant 352 : index
    %c0_123 = arith.constant 0 : index
    %258 = vector.load %arg10[%c352, %c0_123] : memref<544x32xf32, #tpu.memory_space<vmem>>, vector<32x32xf32>
    %cst_124 = arith.constant dense<0.000000e+00> : vector<128x32xf32>
    %259 = tpu.matmul %219, %258, %cst_124 {dimension_numbers = #tpu.dot_dimension_numbers<[1], [0], [0], [1], [0, 0, 1, 1], [], []>} : vector<128x32xf32>, vector<32x32xf32>, vector<128x32xf32> -> vector<128x32xf32>
    %260 = arith.addf %257, %259 : vector<128x32xf32>
    %c384 = arith.constant 384 : index
    %c0_125 = arith.constant 0 : index
    %261 = vector.load %arg10[%c384, %c0_125] : memref<544x32xf32, #tpu.memory_space<vmem>>, vector<32x32xf32>
    %cst_126 = arith.constant dense<0.000000e+00> : vector<128x32xf32>
    %262 = tpu.matmul %230, %261, %cst_126 {dimension_numbers = #tpu.dot_dimension_numbers<[1], [0], [0], [1], [0, 0, 1, 1], [], []>} : vector<128x32xf32>, vector<32x32xf32>, vector<128x32xf32> -> vector<128x32xf32>
    %263 = arith.addf %260, %262 : vector<128x32xf32>
    %c416 = arith.constant 416 : index
    %c0_127 = arith.constant 0 : index
    %264 = vector.load %arg10[%c416, %c0_127] : memref<544x32xf32, #tpu.memory_space<vmem>>, vector<32x32xf32>
    %cst_128 = arith.constant dense<0.000000e+00> : vector<128x32xf32>
    %265 = tpu.matmul %248, %264, %cst_128 {dimension_numbers = #tpu.dot_dimension_numbers<[1], [0], [0], [1], [0, 0, 1, 1], [], []>} : vector<128x32xf32>, vector<32x32xf32>, vector<128x32xf32> -> vector<128x32xf32>
    %266 = arith.addf %263, %265 : vector<128x32xf32>
    %c448 = arith.constant 448 : index
    %c0_129 = arith.constant 0 : index
    %267 = vector.load %arg10[%c448, %c0_129] : memref<544x32xf32, #tpu.memory_space<vmem>>, vector<32x32xf32>
    %cst_130 = arith.constant dense<0.000000e+00> : vector<128x32xf32>
    %268 = tpu.matmul %249, %267, %cst_130 {dimension_numbers = #tpu.dot_dimension_numbers<[1], [0], [0], [1], [0, 0, 1, 1], [], []>} : vector<128x32xf32>, vector<32x32xf32>, vector<128x32xf32> -> vector<128x32xf32>
    %269 = arith.addf %266, %268 : vector<128x32xf32>
    %cst_131 = arith.constant 5.000000e-01 : f32
    %270 = vector.broadcast %cst_131 : f32 to vector<128x32xf32>
    %271 = arith.mulf %270, %269 : vector<128x32xf32>
    %cst_132 = arith.constant 4.471500e-02 : f32
    %272 = vector.broadcast %cst_132 : f32 to vector<128x32xf32>
    %273 = arith.mulf %272, %269 : vector<128x32xf32>
    %274 = arith.mulf %273, %269 : vector<128x32xf32>
    %275 = arith.mulf %274, %269 : vector<128x32xf32>
    %276 = arith.addf %269, %275 : vector<128x32xf32>
    %cst_133 = arith.constant 0.797884583 : f32
    %277 = vector.broadcast %cst_133 : f32 to vector<128x32xf32>
    %278 = arith.mulf %277, %276 : vector<128x32xf32>
    %279 = math.tanh %278 : vector<128x32xf32>
    %cst_134 = arith.constant 1.000000e+00 : f32
    %280 = vector.broadcast %cst_134 : f32 to vector<128x32xf32>
    %281 = arith.addf %280, %279 : vector<128x32xf32>
    %282 = arith.mulf %271, %281 : vector<128x32xf32>
    %c480 = arith.constant 480 : index
    %c0_135 = arith.constant 0 : index
    %283 = vector.load %arg10[%c480, %c0_135] : memref<544x32xf32, #tpu.memory_space<vmem>>, vector<32x32xf32>
    %cst_136 = arith.constant dense<0.000000e+00> : vector<128x32xf32>
    %284 = tpu.matmul %282, %283, %cst_136 {dimension_numbers = #tpu.dot_dimension_numbers<[1], [0], [0], [1], [0, 0, 1, 1], [], []>} : vector<128x32xf32>, vector<32x32xf32>, vector<128x32xf32> -> vector<128x32xf32>
    %c16_137 = arith.constant 16 : index
    %c0_138 = arith.constant 0 : index
    %285 = vector.load %arg13[%c16_137, %c0_138] : memref<18x256xf32, #tpu.memory_space<vmem>>, vector<1x32xf32>
    %286 = vector.broadcast %285 : vector<1x32xf32> to vector<128x32xf32>
    %287 = arith.addf %284, %286 : vector<128x32xf32>
    %cst_139 = arith.constant 5.000000e-01 : f32
    %288 = vector.broadcast %cst_139 : f32 to vector<128x32xf32>
    %289 = arith.mulf %288, %287 : vector<128x32xf32>
    %cst_140 = arith.constant 4.471500e-02 : f32
    %290 = vector.broadcast %cst_140 : f32 to vector<128x32xf32>
    %291 = arith.mulf %290, %287 : vector<128x32xf32>
    %292 = arith.mulf %291, %287 : vector<128x32xf32>
    %293 = arith.mulf %292, %287 : vector<128x32xf32>
    %294 = arith.addf %287, %293 : vector<128x32xf32>
    %cst_141 = arith.constant 0.797884583 : f32
    %295 = vector.broadcast %cst_141 : f32 to vector<128x32xf32>
    %296 = arith.mulf %295, %294 : vector<128x32xf32>
    %297 = math.tanh %296 : vector<128x32xf32>
    %cst_142 = arith.constant 1.000000e+00 : f32
    %298 = vector.broadcast %cst_142 : f32 to vector<128x32xf32>
    %299 = arith.addf %298, %297 : vector<128x32xf32>
    %300 = arith.mulf %289, %299 : vector<128x32xf32>
    %c512_143 = arith.constant 512 : index
    %c0_144 = arith.constant 0 : index
    %301 = vector.load %arg10[%c512_143, %c0_144] : memref<544x32xf32, #tpu.memory_space<vmem>>, vector<32x32xf32>
    %cst_145 = arith.constant dense<0.000000e+00> : vector<128x32xf32>
    %302 = tpu.matmul %300, %301, %cst_145 {dimension_numbers = #tpu.dot_dimension_numbers<[1], [0], [0], [1], [0, 0, 1, 1], [], []>} : vector<128x32xf32>, vector<32x32xf32>, vector<128x32xf32> -> vector<128x32xf32>
    %c17 = arith.constant 17 : index
    %c0_146 = arith.constant 0 : index
    %303 = vector.load %arg13[%c17, %c0_146] : memref<18x256xf32, #tpu.memory_space<vmem>>, vector<1x32xf32>
    %304 = vector.broadcast %303 : vector<1x32xf32> to vector<128x32xf32>
    %305 = arith.addf %302, %304 : vector<128x32xf32>
    %306 = vector.extract_strided_slice %305 {offsets = [0, 0], sizes = [128, 4], strides = [1, 1]} : vector<128x32xf32> to vector<128x4xf32>
    %c0_147 = arith.constant 0 : index
    %c0_148 = arith.constant 0 : index
    %307 = vector.load %arg15[%c0_147, %c0_148] : memref<128x4xf32, #tpu.memory_space<vmem>>, vector<128x4xf32>
    tpu.vector_store %arg15[%c0_147, %c0_148], %306 {strides = array<i32>} : memref<128x4xf32, #tpu.memory_space<vmem>>, vector<128x4xf32>,
    return
  }
}

</mosaic_0001>

<bundles_post_ra>
// kernel: forward.3
= control target key start
LH: loop header
LB: loop body
LE: loop exit
PB: predicated region body
PF: predicated region fallthrough
CT: control target
= control target key end

     0   :  { %s13395_s0 = inlined_call_operand.vmem [shape: f32[4,64], index: 0, kind: input, shape index: {}]   ;;  %s13396_s1 = inlined_call_operand.vmem [shape: f32[4,32], index: 1, kind: input, shape index: {}]   ;;  %s13397_s2 = inlined_call_operand.<no memory space> [shape: f32[1,1], index: 2, kind: input, shape index: {}]   ;;  %s13398_s3 = inlined_call_operand.vmem [shape: f32[1,64], index: 3, kind: input, shape index: {}]   ;;  %s13399_s4 = inlined_call_operand.vmem [shape: f32[128,8], index: 4, kind: input, shape index: {}]   ;;  %s13400_s5 = inlined_call_operand.vmem [shape: f32[384,32], index: 5, kind: input, shape index: {}]   ;;  %s13401_s6 = inlined_call_operand.vmem [shape: f32[64,32], index: 6, kind: input, shape index: {}]   ;;  %s13402_s7 = inlined_call_operand.vmem [shape: f32[256,64], index: 7, kind: input, shape index: {}]   ;;  %s13403_s8 = inlined_call_operand.vmem [shape: f32[192,128], index: 8, kind: input, shape index: {}]   ;;  %s13404_s9 = inlined_call_operand.vmem [shape: f32[192,1], index: 9, kind: input, shape index: {}]   ;;  %s13405_s10 = inlined_call_operand.vmem [shape: f32[544,32], index: 10, kind: input, shape index: {}]   ;;  %s13406_s11 = inlined_call_operand.vmem [shape: f32[544,64], index: 11, kind: input, shape index: {}]   ;;  %s13407_s12 = inlined_call_operand.vmem [shape: f32[96,256], index: 12, kind: input, shape index: {}]   ;;  %s13408_s13 = inlined_call_operand.vmem [shape: f32[18,256], index: 13, kind: input, shape index: {}]   ;;  %s13409_s14 = inlined_call_operand.hbm [shape: f32[4,64], index: 14, kind: output, shape index: {0}]   ;;  %s13410_s15 = inlined_call_operand.vmem [shape: f32[128,4], index: 15, kind: output, shape index: {1}]  }
   0x1   :  { %v21_v0 = vstv %s13397_s2 }
   0x2   :  { %22 = vst [vmem:[#allocation2] sm:$0x1] %v21_v0 }
   0x3   :  { %v100_v2 = vld [vmem:[%s13407_s12 + $0x78] sm:$0xff]  ;;  %v99_v3 = vld [vmem:[%s13407_s12 + $0x70] sm:$0xff]  ;;  %v9912_v4 = vmov 0   ;;  %v98_v5 = vld [vmem:[%s13407_s12 + $0x68] sm:$0xff]  ;;  %v9913_v9 = vmov 0.0  }
   0x4   :  { %9581 = vset.pattern.permute.xlu0 %v9912_v4  ;;  %133 = vmatprep.subr.mxu0 %v100_v2  ;;  %v97_v6 = vld [vmem:[%s13407_s12 + $0x60] sm:$0xff]  ;;  %v96_v7 = vld [vmem:[%s13407_s12 + $0x58] sm:$0xff]  ;;  %v95_v8 = vld [vmem:[%s13407_s12 + $0x50] sm:$0xff] }
   0x5   :  { %134 = vmatpush1.msra.mxu0 %v99_v3  ;;  %181 = vmatprep.mubr.f32.mxu0 %v9913_v9  ;;  %v94_v10 = vld [vmem:[%s13407_s12 + $0x48] sm:$0xff]  ;;  %v93_v11 = vld [vmem:[%s13407_s12 + $0x40] sm:$0xff]  ;;  %v92_v12 = vld [vmem:[%s13407_s12 + $0x38] sm:$0xff] }
   0x6   :  { %135 = vmatprep.subr.mxu0 %v98_v5  ;;  %9582 = vset.pattern.permute.xlu1 %v9912_v4  ;;  %v91_v13 = vld [vmem:[%s13407_s12 + $0x30] sm:$0xff] }
   0x7   :  { %136 = vmatpush1.msra.mxu0 %v97_v6 }
   0x8   :  { %137 = vmatprep.subr.mxu0 %v96_v7 }
   0x9   :  { %v7310_v1 = vld [vmem:[#allocation2] ss:$0 sm:$0xff]  ;;  %138 = vmatpush1.msra.mxu0 %v95_v8 }
   0xa   :  { %73 = vperm.xlu0 %9581, %v7310_v1   ;;  %139 = vmatprep.subr.mxu0 %v94_v10 }
   0xb   :  { %23 = vsyncpa [#allocation4], 0  ;;  %140 = vmatpush1.msra.mxu0 %v93_v11  ;;  %v90_v14 = vld [vmem:[%s13407_s12 + $0x28] sm:$0xff]  ;;  %v89_v15 = vld [vmem:[%s13407_s12 + $0x20] sm:$0xff]  ;;  %vm113_vm0 = vcmask 523264   ;;  %v103_v59 = vlaneseq  ;;  %s9914_s18 = smov 96  }
   0xc   :  { %141 = vmatprep.subr.mxu0 %v92_v12  ;;  %v88_v16 = vld [vmem:[%s13407_s12 + $0x18] sm:$0xff]  ;;  %v87_v17 = vld [vmem:[%s13407_s12 + $0x10] sm:$0xff]  ;;  %v86_v18 = vld [vmem:[%s13407_s12 + $0x8] sm:$0xff]  ;;  %vm340_vm1 = vcmask 261120   ;;  %vm643_vm2 = vcmask 64512   ;;  %vm54_vm3 = vcmask 519168  }
   0xd   :  { %142 = vmatpush1.msra.mxu0 %v91_v13  ;;  %v85_v19 = vld [vmem:[%s13407_s12] sm:$0xff]  ;;  %v237_v27 = vld [vmem:[%s13406_s11 + $0xf8] sm:$0xff]  ;;  %v236_v29 = vld [vmem:[%s13406_s11 + $0xf0] sm:$0xff]  ;;  %v10158_v60 = vshrl.u32 %v103_v59, 7  ;;  %vm2700_vm5 = vcmask 1043456   ;;  %vm2651_vm6 = vcmask 31744  }
   0xe   :  { %143 = vmatprep.subr.mxu0 %v90_v14  ;;  %v10051_v20 = vld [vmem:[%s13395_s0] sm:$0xf]  ;;  %7774 = vmatprep.subr.mxu1 %v237_v27  ;;  %v221_v28 = vld [vmem:[%s13406_s11 + $0x78] sm:$0xff]  ;;  %v220_v30 = vld [vmem:[%s13406_s11 + $0x70] sm:$0xff] }
   0xf   :  { %144 = vmatpush1.msra.mxu0 %v89_v15  ;;  %v7309_v21 = vadd.f32 1.21, %v10051_v20  ;;  %v7311_v23 = vld [vmem:[%s13398_s3] ss:$0 sm:$0xff]  ;;  %7775 = vmatpush3.msra.mxu1 %v221_v28  ;;  %v235_v31 = vld [vmem:[%s13406_s11 + $0xe8] sm:$0xff]  ;;  %v233_v35 = vld [vmem:[%s13406_s11 + $0xd8] sm:$0xff] }
  0x10   :  { %145 = vmatprep.subr.mxu0 %v88_v16  ;;  %7776 = vmatprep.subr.mxu1 %v236_v29  ;;  %v219_v32 = vld [vmem:[%s13406_s11 + $0x68] sm:$0xff]  ;;  %v234_v33 = vld [vmem:[%s13406_s11 + $0xe0] sm:$0xff]  ;;  %v217_v36 = vld [vmem:[%s13406_s11 + $0x58] sm:$0xff]  ;;  %v105_v61 = vsub.s32 0, %v10158_v60  ;;  %v109_v63 = vsub.s32 1, %v10158_v60 }
  0x11   :  { %146 = vmatpush1.msra.mxu0 %v87_v17  ;;  %v66_v22 = vmul.f32 0.039808918, %v7309_v21  ;;  %7777 = vmatpush3.msra.mxu1 %v220_v30  ;;  %v218_v34 = vld [vmem:[%s13406_s11 + $0x60] sm:$0xff]  ;;  %v232_v37 = vld [vmem:[%s13406_s11 + $0xd0] sm:$0xff]  ;;  %v231_v39 = vld [vmem:[%s13406_s11 + $0xc8] sm:$0xff] }
  0x12   :  { %147 = vmatprep.subr.mxu0 %v86_v18  ;;  %7778 = vmatprep.subr.mxu1 %v235_v31  ;;  %v216_v38 = vld [vmem:[%s13406_s11 + $0x50] sm:$0xff]  ;;  %v215_v40 = vld [vmem:[%s13406_s11 + $0x48] sm:$0xff]  ;;  %v230_v41 = vld [vmem:[%s13406_s11 + $0xc0] sm:$0xff] }
  0x13   :  { %148 = vmatpush1.msra.mxu0 %v85_v19  ;;  %7779 = vmatpush3.msra.mxu1 %v219_v32  ;;  %v214_v42 = vld [vmem:[%s13406_s11 + $0x40] sm:$0xff]  ;;  %v229_v43 = vld [vmem:[%s13406_s11 + $0xb8] sm:$0xff]  ;;  %v228_v45 = vld [vmem:[%s13406_s11 + $0xb0] sm:$0xff] }
  0x14   :  { %7780 = vmatprep.subr.mxu1 %v234_v33  ;;  %v213_v44 = vld [vmem:[%s13406_s11 + $0x38] sm:$0xff]  ;;  %v212_v46 = vld [vmem:[%s13406_s11 + $0x30] sm:$0xff]  ;;  %v227_v47 = vld [vmem:[%s13406_s11 + $0xa8] sm:$0xff] }
  0x15   :  { %7781 = vmatpush3.msra.mxu1 %v218_v34  ;;  %v211_v48 = vld [vmem:[%s13406_s11 + $0x28] sm:$0xff]  ;;  %v226_v49 = vld [vmem:[%s13406_s11 + $0xa0] sm:$0xff]  ;;  %v225_v51 = vld [vmem:[%s13406_s11 + $0x98] sm:$0xff] }
  0x16   :  { %7782 = vmatprep.subr.mxu1 %v233_v35  ;;  %v210_v50 = vld [vmem:[%s13406_s11 + $0x20] sm:$0xff]  ;;  %v209_v52 = vld [vmem:[%s13406_s11 + $0x18] sm:$0xff]  ;;  %v224_v53 = vld [vmem:[%s13406_s11 + $0x90] sm:$0xff] }
  0x17   :  { %7783 = vmatpush3.msra.mxu1 %v217_v36  ;;  %v208_v54 = vld [vmem:[%s13406_s11 + $0x10] sm:$0xff]  ;;  %v223_v55 = vld [vmem:[%s13406_s11 + $0x88] sm:$0xff]  ;;  %v222_v57 = vld [vmem:[%s13406_s11 + $0x80] sm:$0xff] }
  0x18   :  { %7784 = vmatprep.subr.mxu1 %v232_v37  ;;  %v207_v56 = vld [vmem:[%s13406_s11 + $0x8] sm:$0xff]  ;;  %v206_v58 = vld [vmem:[%s13406_s11] sm:$0xff]  ;;  %v326_v27 = vld [vmem:[%s13407_s12 + $0xb8] sm:$0xff] }
  0x19   :  { %7785 = vmatpush3.msra.mxu1 %v216_v38  ;;  %v101_v62 = vld [vmem:[%s13408_s13] ss:$8 sm:$0x3]  ;;  %v325_v28 = vld [vmem:[%s13407_s12 + $0xb0] sm:$0xff]  ;;  %368 = vmatprep.subr.mxu0 %v326_v27  ;;  %v238_v32 = vld [vmem:[%s13408_s13 + $0x2] ss:$0 sm:$0xff] }
  0x1a   :  { %7786 = vmatprep.subr.mxu1 %v231_v39  ;;  %v106_v0 = vrot.slane %v101_v62, %v105_v61  ;;  %v110_v1 = vrot.slane %v101_v62, %v109_v63  ;;  %v324_v29 = vld [vmem:[%s13407_s12 + $0xa8] sm:$0xff]  ;;  %v323_v30 = vld [vmem:[%s13407_s12 + $0xa0] sm:$0xff]  ;;  %v322_v38 = vld [vmem:[%s13407_s12 + $0x98] sm:$0xff] }
  0x1b   :  { %7787 = vmatpush3.msra.mxu1 %v215_v40  ;;  %v321_v39 = vld [vmem:[%s13407_s12 + $0x90] sm:$0xff]  ;;  %v320_v40 = vld [vmem:[%s13407_s12 + $0x88] sm:$0xff]  ;;  %v448_v59 = vld [vmem:[%s13406_s11 + $0x178] sm:$0xff] }
  0x1c   :  { %7788 = vmatprep.subr.mxu1 %v230_v41  ;;  %v319_v41 = vld [vmem:[%s13407_s12 + $0x80] sm:$0xff]  ;;  %v463_v62 = vld [vmem:[%s13406_s11 + $0x1f0] sm:$0xff] }
  0x1d   :  { %7789 = vmatpush3.msra.mxu1 %v214_v42  ;;  %v435_v27 = vld [vmem:[%s13406_s11 + $0x110] sm:$0xff] }
  0x1e   :  { %7790 = vmatprep.subr.mxu1 %v229_v43  ;;  %v603_v43 = vld [vmem:[%s13404_s9 + $0x10] sm:$0xff] }
  0x1f   :  { %7791 = vmatpush3.msra.mxu1 %v213_v44  ;;  %v605_v44 = vld [vmem:[%s13404_s9 + $0x20] sm:$0xff] }
  0x20   :  { %7792 = vmatprep.subr.mxu1 %v228_v45  ;;  %v607_v45 = vld [vmem:[%s13404_s9 + $0x30] sm:$0xff] }
  0x21   :  { %7793 = vmatpush3.msra.mxu1 %v212_v46  ;;  %v609_v46 = vld [vmem:[%s13404_s9 + $0x40] sm:$0xff] }
  0x22   :  { %7794 = vmatprep.subr.mxu1 %v227_v47  ;;  %v611_v47 = vld [vmem:[%s13404_s9 + $0x50] sm:$0xff] }
  0x23   :  { %7795 = vmatpush3.msra.mxu1 %v211_v48  ;;  %v613_v48 = vld [vmem:[%s13404_s9 + $0x60] sm:$0xff] }
  0x24   :  { %7796 = vmatprep.subr.mxu1 %v226_v49  ;;  %v615_v49 = vld [vmem:[%s13404_s9 + $0x70] sm:$0xff] }
  0x25   :  { %7797 = vmatpush3.msra.mxu1 %v210_v50  ;;  %v617_v50 = vld [vmem:[%s13404_s9 + $0x80] sm:$0xff] }
  0x26   :  { %7798 = vmatprep.subr.mxu1 %v225_v51  ;;  %v619_v51 = vld [vmem:[%s13404_s9 + $0x90] sm:$0xff] }
  0x27   :  { %7799 = vmatpush3.msra.mxu1 %v209_v52  ;;  %v621_v52 = vld [vmem:[%s13404_s9 + $0xa0] sm:$0xff] }
  0x28   :  { %7800 = vmatprep.subr.mxu1 %v224_v53  ;;  %v623_v53 = vld [vmem:[%s13404_s9 + $0xb0] sm:$0xff] }
  0x29   :  { %7801 = vmatpush3.msra.mxu1 %v208_v54  ;;  %v309_v54 = vld [vmem:[%s13396_s1] sm:$0xf] }
  0x2a   :  { %7802 = vmatprep.subr.mxu1 %v223_v55 }
  0x2b   :  { %7803 = vmatpush3.msra.mxu1 %v207_v56 }
  0x2c   :  { %7804 = vmatprep.subr.mxu1 %v222_v57 }
  0x2d   :  { %7805 = vmatpush3.msra.mxu1 %v206_v58  ;;  %v464_v58 = vld [vmem:[%s13406_s11 + $0x1f8] sm:$0xff] }
  0x85   :  { %v10057_v24 = vpop.permute.xlu0 %73 }
  0x86   :  { %v76_v25 = vmul.f32 %v10057_v24, %v66_v22 }
  0x88   :  { %v84_v26 = vmul.f32 %v7311_v23, %v76_v25 }
  0x8a   :  { %7312 = vmatmul.mubr.msk.f32.vlgmr.msra.gmra.mxu0 %vm113_vm0, %v84_v26 }
  0x8b   :  { %408 = vmatprep.mubr.f32.mxu0 %v9913_v9  ;;  %369 = vmatpush1.msra.mxu0 %v325_v28  ;;  %v450_v28 = vld [vmem:[%s13406_s11 + $0x188] sm:$0xff] }
  0x8c   :  { %370 = vmatprep.subr.mxu0 %v324_v29  ;;  %v434_v29 = vld [vmem:[%s13406_s11 + $0x108] sm:$0xff] }
  0x8d   :  { %371 = vmatpush1.msra.mxu0 %v323_v30  ;;  %v449_v30 = vld [vmem:[%s13406_s11 + $0x180] sm:$0xff] }
  0x8e   :  { %372 = vmatprep.subr.mxu0 %v322_v38  ;;  %v7313_v38 = vld [vmem:[%s13408_s13 + $0x1] ss:$8 sm:$0x3] }
  0x8f   :  { %373 = vmatpush1.msra.mxu0 %v321_v39  ;;  %v333_v39 = vrot.slane %v7313_v38, %v105_v61 }
  0x90   :  { %374 = vmatprep.subr.mxu0 %v320_v40  ;;  %v337_v40 = vrot.slane %v7313_v38, %v109_v63 }
  0x91   :  { %375 = vmatpush1.msra.mxu0 %v319_v41 }
  0x92   :  { %7809 = vmatprep.subr.mxu0 %v464_v58 }
 0x14a   :  { %v183_v2 = vpop.f32.mrf.mxu0 }
 0x14b   :  { %v184_v3 = vadd.f32 %v183_v2, %v106_v0  ;;  %v447_v0 = vld [vmem:[%s13406_s11 + $0x170] sm:$0xff]  ;;  %v446_v2 = vld [vmem:[%s13406_s11 + $0x168] sm:$0xff] }
 0x14c   :  { %v185_v4 = vpop.f32.mrf.mxu0 }
 0x14d   :  { %v190_v5 = vmul.f32 0.044715, %v184_v3  ;;  %v186_v6 = vadd.f32 %v185_v4, %v110_v1  ;;  %v188_v23 = vmul.f32 0.5, %v184_v3  ;;  %v462_v1 = vld [vmem:[%s13406_s11 + $0x1e8] sm:$0xff]  ;;  %v445_v4 = vld [vmem:[%s13406_s11 + $0x160] sm:$0xff] }
 0x14f   :  { %v192_v7 = vmul.f32 %v190_v5, %v184_v3  ;;  %v191_v8 = vmul.f32 0.044715, %v186_v6  ;;  %v189_v21 = vmul.f32 0.5, %v186_v6  ;;  %v460_v5 = vld [vmem:[%s13406_s11 + $0x1d8] sm:$0xff] }
 0x151   :  { %v193_v10 = vmul.f32 %v191_v8, %v186_v6  ;;  %v194_v11 = vmul.f32 %v192_v7, %v184_v3  ;;  %v459_v7 = vld [vmem:[%s13406_s11 + $0x1d0] sm:$0xff] }
 0x152   :  { %v443_v8 = vld [vmem:[%s13406_s11 + $0x150] sm:$0xff] }
 0x153   :  { %v195_v12 = vmul.f32 %v193_v10, %v186_v6  ;;  %v196_v13 = vadd.f32 %v194_v11, %v184_v3  ;;  %v461_v3 = vld [vmem:[%s13406_s11 + $0x1e0] sm:$0xff]  ;;  %v458_v10 = vld [vmem:[%s13406_s11 + $0x1c8] sm:$0xff] }
 0x154   :  { %v442_v11 = vld [vmem:[%s13406_s11 + $0x148] sm:$0xff] }
 0x155   :  { %v197_v14 = vadd.f32 %v195_v12, %v186_v6  ;;  %v198_v15 = vmul.f32 0.7978846, %v196_v13  ;;  %v444_v6 = vld [vmem:[%s13406_s11 + $0x158] sm:$0xff]  ;;  %v457_v12 = vld [vmem:[%s13406_s11 + $0x1c0] sm:$0xff] }
 0x156   :  { %v441_v13 = vld [vmem:[%s13406_s11 + $0x140] sm:$0xff] }
 0x157   :  { %v199_v16 = vmul.f32 0.7978846, %v197_v14  ;;  %9583 = vtanh.f32 %v198_v15  ;;  %v456_v14 = vld [vmem:[%s13406_s11 + $0x1b8] sm:$0xff] }
 0x158   :  { %v440_v15 = vld [vmem:[%s13406_s11 + $0x138] sm:$0xff] }
 0x159   :  { %9585 = vtanh.f32 %v199_v16  ;;  %v455_v16 = vld [vmem:[%s13406_s11 + $0x1b0] sm:$0xff] }
 0x164   :  { %v9584_v17 = vpop.eup %9583 }
 0x165   :  { %v202_v19 = vadd.f32 1.0, %v9584_v17  ;;  %v439_v17 = vld [vmem:[%s13406_s11 + $0x130] sm:$0xff] }
 0x166   :  { %v9586_v18 = vpop.eup %9585 }
 0x167   :  { %v203_v22 = vadd.f32 1.0, %v9586_v18  ;;  %v204_v26 = vmul.f32 %v202_v19, %v188_v23  ;;  %v454_v18 = vld [vmem:[%s13406_s11 + $0x1a8] sm:$0xff]  ;;  %v452_v23 = vld [vmem:[%s13406_s11 + $0x198] sm:$0xff] }
 0x168   :  { %v438_v19 = vld [vmem:[%s13406_s11 + $0x128] sm:$0xff] }
 0x169   :  { %v205_v25 = vmul.f32 %v203_v22, %v189_v21  ;;  %v453_v21 = vld [vmem:[%s13406_s11 + $0x1a0] sm:$0xff] }
 0x16a   :  { %v437_v22 = vld [vmem:[%s13406_s11 + $0x120] sm:$0xff] }
 0x16b   :  { %303 = vmatprep.mubr.f32.mxu1 %v205_v25  ;;  %v436_v25 = vld [vmem:[%s13406_s11 + $0x118] sm:$0xff] }
 0x16c   :  { %304 = vmatmul.mubr.f32.vlgmr.msra.gmra.mxu1 %v204_v26  ;;  %v451_v26 = vld [vmem:[%s13406_s11 + $0x190] sm:$0xff] }
 0x22c   :  { %v7806_v31 = vpop.f32.mrf.mxu1 }
 0x22e   :  { %v7807_v33 = vpop.f32.mrf.mxu1 }
 0x22f   :  { %v7808_v34 = vadd.f32 %v7807_v33, %v7806_v31  ;;  %v433_v31 = vld [vmem:[%s13406_s11 + $0x100] sm:$0xff] }
 0x230   :  { %v601_v33 = vld [vmem:[%s13404_s9] sm:$0xff] }
 0x231   :  { %v306_v35 = vadd.f32 %v7808_v34, %v238_v32  ;;  %v641_v32 = vld [vmem:[%s13405_s10] sm:$0xff]  ;;  %1173 = vperm.xlu1 %9582, %v601_v33   ;;  %v602_v34 = vld [vmem:[%s13404_s9 + $0x8] sm:$0xff] }
 0x232   :  { %9575 = vmatprep.subr.mxu1 %v641_v32 }
 0x233   :  { %v310_v36 = vmul.f32 0.5, %v306_v35  ;;  %9576 = vmatpush3.msra.mxu1 %v641_v32 }
 0x235   :  { %v311_v37 = vmul.f32 1.442695, %v310_v36  ;;  %1178 = vperm.xlu1 %9582, %v602_v34   ;;  %v606_v36 = vld [vmem:[%s13404_s9 + $0x28] sm:$0xff] }
 0x237   :  { %9587 = vpow2.f32 %v311_v37  ;;  %v608_v37 = vld [vmem:[%s13404_s9 + $0x38] sm:$0xff] }
 0x244   :  { %v9588_v42 = vpop.eup %9587 }
 0x245   :  { %314 = vrot.lane.b32.xlu0 %v9588_v42, %s9914_s18 }
 0x249   :  { %1183 = vperm.xlu0 %9581, %v603_v43  }
 0x24d   :  { %1193 = vperm.xlu0 %9581, %v605_v44  }
 0x251   :  { %1203 = vperm.xlu0 %9581, %v607_v45  }
 0x255   :  { %3406 = vperm.xlu0 %9581, %v609_v46  }
 0x259   :  { %3416 = vperm.xlu0 %9581, %v611_v47  }
 0x25d   :  { %3426 = vperm.xlu0 %9581, %v613_v48  }
 0x261   :  { %3436 = vperm.xlu0 %9581, %v615_v49  }
 0x265   :  { %3446 = vperm.xlu0 %9581, %v617_v50  }
 0x269   :  { %3456 = vperm.xlu0 %9581, %v619_v51  }
 0x26d   :  { %3466 = vperm.xlu0 %9581, %v621_v52  }
 0x271   :  { %3476 = vperm.xlu0 %9581, %v623_v53  }
 0x2b7   :  { %v315_v55 = vpop.permute.xlu0 %314 }
 0x2b8   :  { %v317_v56 = vmul.f32 %v315_v55, %v309_v54 }
 0x2ba   :  { %v318_v57 = vadd.f32 %v317_v56, %v306_v35  ;;  %v604_v35 = vld [vmem:[%s13404_s9 + $0x18] sm:$0xff] }
 0x2bb   :  { %1188 = vperm.xlu1 %9582, %v604_v35  }
 0x2bc   :  { %7314 = vmatmul.mubr.msk.f32.vlgmr.msra.gmra.mxu0 %vm340_vm1, %v318_v57 }
 0x2bd   :  { %7810 = vmatpush3.msra.mxu0 %v448_v59 }
 0x2be   :  { %7811 = vmatprep.subr.mxu0 %v463_v62  ;;  %v625_v62 = vld [vmem:[%s13399_s4] sm:$0xff] }
 0x2bf   :  { %7812 = vmatpush3.msra.mxu0 %v447_v0  ;;  %1198 = vperm.xlu1 %9582, %v606_v36   ;;  %v848_v0 = vld [vmem:[%s13405_s10 + $0x48] sm:$0xff] }
 0x2c0   :  { %7813 = vmatprep.subr.mxu0 %v462_v1  ;;  %v626_v1 = vld [vmem:[%s13399_s4 + $0x8] sm:$0xff] }
 0x2c1   :  { %7814 = vmatpush3.msra.mxu0 %v446_v2  ;;  %v627_v2 = vld [vmem:[%s13399_s4 + $0x10] sm:$0xff] }
 0x2c2   :  { %7815 = vmatprep.subr.mxu0 %v461_v3  ;;  %v847_v3 = vld [vmem:[%s13405_s10 + $0x40] sm:$0xff] }
 0x2c3   :  { %7816 = vmatpush3.msra.mxu0 %v445_v4  ;;  %1208 = vperm.xlu1 %9582, %v608_v37   ;;  %v628_v4 = vld [vmem:[%s13399_s4 + $0x18] sm:$0xff] }
 0x2c4   :  { %7817 = vmatprep.subr.mxu0 %v460_v5  ;;  %v846_v5 = vld [vmem:[%s13405_s10 + $0x38] sm:$0xff] }
 0x2c5   :  { %7818 = vmatpush3.msra.mxu0 %v444_v6  ;;  %v629_v6 = vld [vmem:[%s13399_s4 + $0x20] sm:$0xff] }
 0x2c6   :  { %7819 = vmatprep.subr.mxu0 %v459_v7  ;;  %v845_v7 = vld [vmem:[%s13405_s10 + $0x30] sm:$0xff] }
 0x2c7   :  { %7820 = vmatpush3.msra.mxu0 %v443_v8  ;;  %v630_v8 = vld [vmem:[%s13399_s4 + $0x28] sm:$0xff] }
 0x2c8   :  { %7821 = vmatprep.subr.mxu0 %v458_v10  ;;  %v10393_v10 = vld [vmem:[%s13401_s6] sm:$0xff] }
 0x2c9   :  { %7822 = vmatpush3.msra.mxu0 %v442_v11  ;;  %v10401_v11 = vld [vmem:[%s13401_s6 + $0x8] sm:$0xff] }
 0x2ca   :  { %7823 = vmatprep.subr.mxu0 %v457_v12  ;;  %v10406_v12 = vld [vmem:[%s13401_s6 + $0x10] sm:$0xff] }
 0x2cb   :  { %7824 = vmatpush3.msra.mxu0 %v441_v13  ;;  %v10415_v13 = vld [vmem:[%s13401_s6 + $0x18] sm:$0xff] }
 0x2cc   :  { %7825 = vmatprep.subr.mxu0 %v456_v14  ;;  %v10420_v14 = vld [vmem:[%s13401_s6 + $0x20] sm:$0xff] }
 0x2cd   :  { %7826 = vmatpush3.msra.mxu0 %v440_v15  ;;  %v10429_v15 = vld [vmem:[%s13401_s6 + $0x28] sm:$0xff] }
 0x2ce   :  { %7827 = vmatprep.subr.mxu0 %v455_v16  ;;  %v10434_v16 = vld [vmem:[%s13401_s6 + $0x30] sm:$0xff] }
 0x2cf   :  { %7828 = vmatpush3.msra.mxu0 %v439_v17  ;;  %v10443_v17 = vld [vmem:[%s13401_s6 + $0x38] sm:$0xff] }
 0x2d0   :  { %7829 = vmatprep.subr.mxu0 %v454_v18  ;;  %v631_v18 = vld [vmem:[%s13399_s4 + $0x30] sm:$0xff] }
 0x2d1   :  { %7830 = vmatpush3.msra.mxu0 %v438_v19  ;;  %8512 = vmatprep.mubr.msk.f32.mxu1 %vm643_vm2, %v631_v18  ;;  %v632_v19 = vld [vmem:[%s13399_s4 + $0x38] sm:$0xff] }
 0x2d2   :  { %7831 = vmatprep.subr.mxu0 %v453_v21  ;;  %8513 = vmatmul.mubr.msk.f32.vlgmr.msra.gmra.mxu1 %vm643_vm2, %v632_v19  ;;  %v633_v21 = vld [vmem:[%s13399_s4 + $0x40] sm:$0xff]  ;;  %v10622_v18 = vld [vmem:[%s13402_s7 + $0x58] sm:$0xff] }
 0x2d3   :  { %7832 = vmatpush3.msra.mxu0 %v437_v22  ;;  %8515 = vmatprep.mubr.msk.f32.mxu1 %vm643_vm2, %v633_v21  ;;  %v634_v22 = vld [vmem:[%s13399_s4 + $0x48] sm:$0xff]  ;;  %13448 = vst [vmem:[#allocation12_spill] sm:$0xff] %v10622_v18  ;;  %v10627_v19 = vld [vmem:[%s13402_s7 + $0x60] sm:$0xff] }
 0x2d4   :  { %7833 = vmatprep.subr.mxu0 %v452_v23  ;;  %v635_v23 = vld [vmem:[%s13399_s4 + $0x50] sm:$0xff]  ;;  %13449 = vst [vmem:[#allocation13_spill] sm:$0xff] %v10627_v19  ;;  %v10636_v21 = vld [vmem:[%s13402_s7 + $0x68] sm:$0xff] }
 0x2d5   :  { %7834 = vmatpush3.msra.mxu0 %v436_v25  ;;  %v636_v25 = vld [vmem:[%s13399_s4 + $0x58] sm:$0xff]  ;;  %13450 = vst [vmem:[#allocation14_spill] sm:$0xff] %v10636_v21 }
 0x2d6   :  { %7835 = vmatprep.subr.mxu0 %v451_v26  ;;  %8516 = vmatmul.mubr.msk.f32.gmra.mxu1 %vm643_vm2, %v634_v22  ;;  %v637_v26 = vld [vmem:[%s13399_s4 + $0x60] sm:$0xff]  ;;  %v10641_v22 = vld [vmem:[%s13402_s7 + $0x70] sm:$0xff] }
 0x2d7   :  { %7836 = vmatpush3.msra.mxu0 %v435_v27  ;;  %8518 = vmatprep.mubr.msk.f32.mxu1 %vm643_vm2, %v635_v23  ;;  %v638_v27 = vld [vmem:[%s13399_s4 + $0x68] sm:$0xff]  ;;  %13451 = vst [vmem:[#allocation15_spill] sm:$0xff] %v10641_v22  ;;  %v10650_v23 = vld [vmem:[%s13402_s7 + $0x78] sm:$0xff] }
 0x2d8   :  { %7837 = vmatprep.subr.mxu0 %v450_v28  ;;  %v639_v28 = vld [vmem:[%s13399_s4 + $0x70] sm:$0xff]  ;;  %13452 = vst [vmem:[#allocation16_spill] sm:$0xff] %v10650_v23 }
 0x2d9   :  { %7838 = vmatpush3.msra.mxu0 %v434_v29  ;;  %v640_v29 = vld [vmem:[%s13399_s4 + $0x78] sm:$0xff] }
 0x2da   :  { %7839 = vmatprep.subr.mxu0 %v449_v30  ;;  %8519 = vmatmul.mubr.msk.f32.gmra.mxu1 %vm643_vm2, %v636_v25  ;;  %v10490_v30 = vld [vmem:[%s13402_s7] sm:$0xff] }
 0x2db   :  { %7840 = vmatpush3.msra.mxu0 %v433_v31  ;;  %8521 = vmatprep.mubr.msk.f32.mxu1 %vm643_vm2, %v637_v26  ;;  %13442 = vst [vmem:[#allocation6_spill] sm:$0xff] %v10490_v30  ;;  %v55_v31 = vsel %vm54_vm3, %v10051_v20, 0.0  ;;  %v10657_v25 = vld [vmem:[%s13403_s8] sm:$0xff]  ;;  %v610_v26 = vld [vmem:[%s13404_s9 + $0x48] sm:$0xff] }
 0x2dc   :  { %8501 = vmatprep.subr.mxu0 %v641_v32  ;;  %3411 = vperm.xlu1 %9582, %v610_v26  }
 0x2de   :  { %8522 = vmatmul.mubr.msk.f32.gmra.mxu1 %vm643_vm2, %v638_v27  ;;  %v612_v27 = vld [vmem:[%s13404_s9 + $0x58] sm:$0xff] }
 0x2df   :  { %8524 = vmatprep.mubr.msk.f32.mxu1 %vm643_vm2, %v639_v28  ;;  %v614_v28 = vld [vmem:[%s13404_s9 + $0x68] sm:$0xff] }
 0x2e0   :  { %3421 = vperm.xlu1 %9582, %v612_v27  }
 0x2e2   :  { %8525 = vmatmul.mubr.msk.f32.gmra.mxu1 %vm643_vm2, %v640_v29  ;;  %v616_v29 = vld [vmem:[%s13404_s9 + $0x78] sm:$0xff] }
 0x2e3   :  { %8563 = vmatprep.mubr.msk.f32.mxu1 %vm113_vm0, %v10490_v30 }
 0x2e4   :  { %3431 = vperm.xlu1 %9582, %v614_v28  }
 0x2e8   :  { %3441 = vperm.xlu1 %9582, %v616_v29  }
 0x37c   :  { %v410_v41 = vpop.f32.mrf.mxu0 }
 0x37d   :  { %v411_v42 = vadd.f32 %v410_v41, %v333_v39  ;;  %v465_v39 = vld [vmem:[%s13408_s13 + $0x3] ss:$0 sm:$0xff] }
 0x37e   :  { %v412_v43 = vpop.f32.mrf.mxu0 }
 0x37f   :  { %v417_v44 = vmul.f32 0.044715, %v411_v42  ;;  %v413_v45 = vadd.f32 %v412_v43, %v337_v40  ;;  %v415_v57 = vmul.f32 0.5, %v411_v42 }
 0x381   :  { %v419_v46 = vmul.f32 %v417_v44, %v411_v42  ;;  %v418_v47 = vmul.f32 0.044715, %v413_v45  ;;  %v416_v63 = vmul.f32 0.5, %v413_v45 }
 0x383   :  { %v421_v48 = vmul.f32 %v419_v46, %v411_v42  ;;  %v420_v49 = vmul.f32 %v418_v47, %v413_v45 }
 0x385   :  { %v423_v50 = vadd.f32 %v421_v48, %v411_v42  ;;  %v422_v51 = vmul.f32 %v420_v49, %v413_v45 }
 0x387   :  { %v424_v52 = vadd.f32 %v422_v51, %v413_v45  ;;  %v425_v53 = vmul.f32 0.7978846, %v423_v50 }
 0x389   :  { %v426_v54 = vmul.f32 0.7978846, %v424_v52  ;;  %9589 = vtanh.f32 %v425_v53 }
 0x38b   :  { %9591 = vtanh.f32 %v426_v54 }
 0x38c   :  { %9593 = vrcp.f32 %v10057_v24 }
 0x396   :  { %v9590_v61 = vpop.eup %9589 }
 0x397   :  { %v429_v60 = vadd.f32 1.0, %v9590_v61 }
 0x398   :  { %v9592_v55 = vpop.eup %9591 }
 0x399   :  { %v430_v56 = vadd.f32 1.0, %v9592_v55  ;;  %v431_v59 = vmul.f32 %v429_v60, %v415_v57  ;;  %v9594_v44 = vpop.eup %9593 }
 0x39b   :  { %v432_v58 = vmul.f32 %v430_v56, %v416_v63 }
 0x39d   :  { %530 = vmatprep.mubr.f32.mxu0 %v432_v58 }
 0x39e   :  { %531 = vmatmul.mubr.f32.vlgmr.msra.gmra.mxu0 %v431_v59 }
 0x39f   :  { %8502 = vmatpush3.msra.mxu0 %v641_v32  ;;  %8503 = vmatprep.mubr.msk.f32.mxu0 %vm643_vm2, %v625_v62  ;;  %v56_v32 = vrot.slane %v55_v31, 4  ;;  %v10550_v62 = vld [vmem:[%s13402_s7 + $0x8] sm:$0xff] }
 0x3a0   :  { %8527 = vmatprep.subr.mxu0 %v848_v0 }
 0x3a1   :  { %v57_v33 = vadd.f32 %v56_v32, %v55_v31  ;;  %v618_v31 = vld [vmem:[%s13404_s9 + $0x88] sm:$0xff]  ;;  %v8514_v32 = vpop.f32.mrf.mxu1 }
 0x3a2   :  { %8504 = vmatmul.mubr.msk.f32.vlgmr.msra.gmra.mxu0 %vm643_vm2, %v626_v1  ;;  %v10566_v1 = vld [vmem:[%s13402_s7 + $0x18] sm:$0xff]  ;;  %3451 = vperm.xlu1 %9582, %v618_v31  }
 0x3a3   :  { %8506 = vmatprep.mubr.msk.f32.mxu0 %vm643_vm2, %v627_v2  ;;  %8528 = vmatpush3.msra.mxu0 %v848_v0  ;;  %v58_v34 = vrot.slane %v57_v33, 2  ;;  %v10556_v0 = vld [vmem:[%s13402_s7 + $0x10] sm:$0xff]  ;;  %v10571_v2 = vld [vmem:[%s13402_s7 + $0x20] sm:$0xff] }
 0x3a4   :  { %8529 = vmatprep.subr.mxu0 %v847_v3 }
 0x3a5   :  { %8530 = vmatpush3.msra.mxu0 %v847_v3  ;;  %v59_v35 = vadd.f32 %v58_v34, %v57_v33  ;;  %v10580_v3 = vld [vmem:[%s13402_s7 + $0x28] sm:$0xff]  ;;  %v620_v33 = vld [vmem:[%s13404_s9 + $0x98] sm:$0xff]  ;;  %v788_v34 = vpop.f32.mrf.mxu1 }
 0x3a6   :  { %8507 = vmatmul.mubr.msk.f32.gmra.mxu0 %vm643_vm2, %v628_v4  ;;  %8531 = vmatprep.subr.mxu0 %v846_v5  ;;  %v10585_v4 = vld [vmem:[%s13402_s7 + $0x30] sm:$0xff] }
 0x3a7   :  { %8509 = vmatprep.mubr.msk.f32.mxu0 %vm643_vm2, %v629_v6  ;;  %8532 = vmatpush3.msra.mxu0 %v846_v5  ;;  %v60_v36 = vrot.slane %v59_v35, 1  ;;  %v10594_v5 = vld [vmem:[%s13402_s7 + $0x38] sm:$0xff]  ;;  %v10599_v6 = vld [vmem:[%s13402_s7 + $0x40] sm:$0xff] }
 0x3a8   :  { %8533 = vmatprep.subr.mxu0 %v845_v7  ;;  %13444 = vst [vmem:[#allocation8_spill] sm:$0xff] %v10594_v5  ;;  %13445 = vst [vmem:[#allocation9_spill] sm:$0xff] %v10599_v6  ;;  %3461 = vperm.xlu1 %9582, %v620_v33  }
 0x3a9   :  { %8534 = vmatpush3.msra.mxu0 %v845_v7  ;;  %v61_v37 = vadd.f32 %v60_v36, %v59_v35  ;;  %v10608_v7 = vld [vmem:[%s13402_s7 + $0x48] sm:$0xff]  ;;  %v8517_v36 = vpop.f32.mrf.mxu1 }
 0x3aa   :  { %8510 = vmatmul.mubr.msk.f32.gmra.mxu0 %vm643_vm2, %v630_v8  ;;  %13446 = vst [vmem:[#allocation10_spill] sm:$0xff] %v10608_v7  ;;  %v10613_v8 = vld [vmem:[%s13402_s7 + $0x50] sm:$0xff]  ;;  %v622_v35 = vld [vmem:[%s13404_s9 + $0xa8] sm:$0xff] }
 0x3ab   :  { %8535 = vmatprep.mubr.msk.f32.mxu0 %vm340_vm1, %v10393_v10  ;;  %vm62_vm4 = vcmp.ne.f32.partialorder %v61_v37, -4.84  ;;  %13447 = vst [vmem:[#allocation11_spill] sm:$0xff] %v10613_v8  ;;  %v624_v37 = vld [vmem:[%s13404_s9 + $0xb8] sm:$0xff] }
 0x3ac   :  { %v7308_v45 = vsel %vm62_vm4, 1.0, %v9913_v9  ;;  %3471 = vperm.xlu1 %9582, %v622_v35  }
 0x3ad   :  { %v542_v48 = vsub.f32 1.0, %v7308_v45  ;;  %v541_v51 = vmul.f32 %v7308_v45, %v10051_v20 }
 0x3ae   :  { %8536 = vmatmul.mubr.msk.f32.vlgmr.msra.gmra.mxu0 %vm340_vm1, %v10401_v11 }
 0x3af   :  { %8538 = vmatprep.mubr.msk.f32.mxu0 %vm340_vm1, %v10406_v12 }
 0x3b0   :  { %3481 = vperm.xlu1 %9582, %v624_v37   ;;  %v642_v37 = vld [vmem:[%s13408_s13 + $0x5] ss:$0 sm:$0xff] }
 0x3b2   :  { %8539 = vmatmul.mubr.msk.f32.gmra.mxu0 %vm340_vm1, %v10415_v13 }
 0x3b3   :  { %8541 = vmatprep.mubr.msk.f32.mxu0 %vm340_vm1, %v10420_v14 }
 0x3b6   :  { %8542 = vmatmul.mubr.msk.f32.gmra.mxu0 %vm340_vm1, %v10429_v15 }
 0x3b7   :  { %8544 = vmatprep.mubr.msk.f32.mxu0 %vm340_vm1, %v10434_v16 }
 0x3ba   :  { %8545 = vmatmul.mubr.msk.f32.gmra.mxu0 %vm340_vm1, %v10443_v17 }
 0x3bb   :  { %8619 = vmatprep.mubr.f32.mxu0 %v10657_v25 }
 0x45e   :  { %v7841_v38 = vpop.f32.mrf.mxu0 }
 0x460   :  { %v7842_v40 = vpop.f32.mrf.mxu0 }
 0x461   :  { %v7843_v41 = vadd.f32 %v7842_v40, %v7841_v38  ;;  %v798_v38 = vpop.f32.mrf.mxu1 }
 0x462   :  { %v10500_v42 = vpop.f32.mrf.mxu0 }
 0x463   :  { %v533_v43 = vadd.f32 %v7843_v41, %v465_v39  ;;  %v8520_v39 = vpop.f32.mrf.mxu1 }
 0x464   :  { %v10503_v46 = vpop.f32.mrf.mxu0 }
 0x465   :  { %v537_v47 = vmul.f32 %v9594_v44, %v533_v43  ;;  %v808_v40 = vpop.f32.mrf.mxu1 }
 0x466   :  { %v10505_v24 = vpop.f32.mrf.mxu0 }
 0x467   :  { %v538_v49 = vmul.f32 25.12, %v537_v47  ;;  %v8523_v41 = vpop.f32.mrf.mxu1 }
 0x468   :  { %v10507_v50 = vpop.f32.mrf.mxu0 }
 0x469   :  { %v539_v52 = vadd.f32 -1.21, %v538_v49  ;;  %v818_v43 = vpop.f32.mrf.mxu1 }
 0x46a   :  { %v10510_v53 = vpop.f32.mrf.mxu0 }
 0x46b   :  { %v543_v54 = vmul.f32 %v542_v48, %v539_v52  ;;  %540 = vst.msk [vmem:[#allocation3] sm:$0xf] %vm54_vm3, %v539_v52  ;;  %v8526_v44 = vpop.f32.mrf.mxu1 }
 0x46c   :  { %v10513_v61 = vpop.f32.mrf.mxu0 }
 0x46d   :  { %v10515_v9 = vadd.f32 %v543_v54, %v541_v51  ;;  %v828_v45 = vpop.f32.mrf.mxu1 }
 0x46e   :  { %v10517_v55 = vpop.f32.mrf.mxu0 }
 0x46f   :  { %13443 = vst [vmem:[#allocation7_spill] sm:$0xff] %v10515_v9 }
 0x470   :  { %v10519_v60 = vpop.f32.mrf.mxu0 }
 0x472   :  { %v10521_v63 = vpop.f32.mrf.mxu0 }
 0x474   :  { %v10523_v56 = vpop.f32.mrf.mxu0 }
 0x476   :  { %v10525_v57 = vpop.f32.mrf.mxu0 }
 0x478   :  { %v10527_v20 = vpop.f32.mrf.mxu0 }
 0x47a   :  { %v10529_v58 = vpop.f32.mrf.mxu0 }
 0x47b   :  { %8547 = vmatprep.subr.mxu1 %v10529_v58 }
 0x47c   :  { %v10532_v59 = vpop.f32.mrf.mxu0  ;;  %8548 = vmatpush3.msra.mxu1 %v10529_v58 }
 0x47d   :  { %8549 = vmatprep.subr.mxu1 %v10532_v59 }
 0x47e   :  { %8550 = vmatpush3.msra.mxu1 %v10532_v59 }
 0x47f   :  { %8551 = vmatprep.subr.mxu1 %v10525_v57 }
 0x480   :  { %8552 = vmatpush3.msra.mxu1 %v10525_v57 }
 0x481   :  { %8553 = vmatprep.subr.mxu1 %v10527_v20 }
 0x482   :  { %8554 = vmatpush3.msra.mxu1 %v10527_v20 }
 0x483   :  { %8555 = vmatprep.subr.mxu1 %v10521_v63 }
 0x484   :  { %8556 = vmatpush3.msra.mxu1 %v10521_v63 }
 0x485   :  { %8557 = vmatprep.subr.mxu1 %v10523_v56 }
 0x486   :  { %8558 = vmatpush3.msra.mxu1 %v10523_v56 }
 0x487   :  { %8559 = vmatprep.subr.mxu1 %v10517_v55 }
 0x488   :  { %8560 = vmatpush3.msra.mxu1 %v10517_v55 }
 0x489   :  { %8561 = vmatprep.subr.mxu1 %v10519_v60 }
 0x48a   :  { %8562 = vmatpush3.msra.mxu1 %v10519_v60 }
 0x48b   :  { %8564 = vmatmul.mubr.msk.f32.vlgmr.msra.gmra.mxu1 %vm113_vm0, %v10550_v62 }
 0x48c   :  { %8566 = vmatprep.mubr.msk.f32.mxu1 %vm113_vm0, %v10556_v0 }
 0x48f   :  { %8567 = vmatmul.mubr.msk.f32.gmra.mxu1 %vm113_vm0, %v10566_v1 }
 0x490   :  { %8569 = vmatprep.mubr.msk.f32.mxu1 %vm113_vm0, %v10571_v2 }
 0x493   :  { %8570 = vmatmul.mubr.msk.f32.gmra.mxu1 %vm113_vm0, %v10580_v3 }
 0x494   :  { %8572 = vmatprep.mubr.msk.f32.mxu1 %vm113_vm0, %v10585_v4 }
 0x497   :  { %8573 = vmatmul.mubr.msk.f32.gmra.mxu1 %vm113_vm0, %v10594_v5 }
 0x498   :  { %8575 = vmatprep.mubr.msk.f32.mxu1 %vm113_vm0, %v10599_v6  ;;  %v10703_v6 = vadd.f32 %v818_v43, %v642_v37  ;;  %v10715_v43 = vadd.f32 %v798_v38, %v642_v37 }
 0x49b   :  { %8576 = vmatmul.mubr.msk.f32.gmra.mxu1 %vm113_vm0, %v10608_v7 }
 0x49c   :  { %8578 = vmatprep.mubr.msk.f32.mxu1 %vm113_vm0, %v10613_v8  ;;  %v10700_v8 = vadd.f32 %v8523_v41, %v642_v37 }
 0x49f   :  { %8579 = vmatmul.mubr.msk.f32.gmra.mxu1 %vm113_vm0, %v10622_v18 }
 0x4a0   :  { %8581 = vmatprep.mubr.msk.f32.mxu1 %vm113_vm0, %v10627_v19 }
 0x4a3   :  { %8582 = vmatmul.mubr.msk.f32.gmra.mxu1 %vm113_vm0, %v10636_v21  ;;  %v10697_v21 = vadd.f32 %v828_v45, %v642_v37 }
 0x4a4   :  { %8584 = vmatprep.mubr.msk.f32.mxu1 %vm113_vm0, %v10641_v22 }
 0x4a7   :  { %8585 = vmatmul.mubr.msk.f32.gmra.mxu1 %vm113_vm0, %v10650_v23  ;;  %v10695_v23 = vadd.f32 %v8526_v44, %v642_v37  ;;  %v10706_v44 = vadd.f32 %v8520_v39, %v642_v37  ;;  %v10721_v39 = vadd.f32 %v788_v34, %v642_v37  ;;  %v10733_v34 = vadd.f32 %v10505_v24, %v642_v37 }
 0x4a8   :  { %v10747_v24 = vadd.f32 %v10503_v46, %v642_v37  ;;  %v10761_v46 = vld [vmem:[%s13403_s8 + $0x10] sm:$0xff] }
 0x54b   :  { %v10684_v47 = vpop.f32.mrf.mxu1 }
 0x54d   :  { %v10686_v48 = vpop.f32.mrf.mxu1 }
 0x54f   :  { %v10688_v49 = vpop.f32.mrf.mxu1 }
 0x551   :  { %v10690_v51 = vpop.f32.mrf.mxu1 }
 0x553   :  { %v8571_v52 = vpop.f32.mrf.mxu1 }
 0x555   :  { %v1112_v54 = vpop.f32.mrf.mxu1 }
 0x557   :  { %v8574_v26 = vpop.f32.mrf.mxu1 }
 0x559   :  { %v1122_v27 = vpop.f32.mrf.mxu1 }
 0x55a   :  { %v1123_v38 = vadd.f32 %v1122_v27, %v10721_v39  ;;  %v1108_v27 = vadd.f32 %v10688_v49, %v10733_v34  ;;  %v1093_v49 = vadd.f32 %v10686_v48, %v10747_v24  ;;  %v10773_v48 = vld [vmem:[%s13403_s8 + $0x20] sm:$0xff] }
 0x55b   :  { %v8577_v28 = vpop.f32.mrf.mxu1 }
 0x55d   :  { %v1132_v29 = vpop.f32.mrf.mxu1 }
 0x55f   :  { %v8580_v31 = vpop.f32.mrf.mxu1 }
 0x560   :  { %v1148_v41 = vadd.f32 %v8580_v31, %v10706_v44  ;;  %v1416_v31 = vld [vmem:[%s13405_s10 + $0x68] sm:$0xff] }
 0x561   :  { %v1142_v33 = vpop.f32.mrf.mxu1  ;;  %8631 = vmatprep.subr.mxu1 %v1416_v31 }
 0x562   :  { %8632 = vmatpush3.msra.mxu1 %v1416_v31 }
 0x563   :  { %v8583_v35 = vpop.f32.mrf.mxu1 }
 0x564   :  { %v1158_v5 = vadd.f32 %v8583_v35, %v10700_v8  ;;  %v1414_v35 = vld [vmem:[%s13405_s10 + $0x58] sm:$0xff] }
 0x565   :  { %v1152_v9 = vpop.f32.mrf.mxu1 }
 0x566   :  { %v1153_v45 = vadd.f32 %v1152_v9, %v10703_v6  ;;  %v10718_v9 = vadd.f32 %v8514_v32, %v642_v37  ;;  %v10729_v32 = vadd.f32 %v10513_v61, %v642_v37  ;;  %v10742_v61 = vadd.f32 %v10500_v42, %v642_v37  ;;  %v10756_v42 = vld [vmem:[%s13403_s8 + $0x8] sm:$0xff] }
 0x567   :  { %v8586_v22 = vpop.f32.mrf.mxu1 }
 0x568   :  { %v1168_v19 = vadd.f32 %v8586_v22, %v10695_v23  ;;  %v10709_v22 = vadd.f32 %v808_v40, %v642_v37  ;;  %v10725_v40 = vadd.f32 %v10510_v53, %v642_v37  ;;  %v10737_v53 = vadd.f32 %v10507_v50, %v642_v37 }
 0x569   :  { %v1162_v18 = vpop.f32.mrf.mxu1  ;;  %v1098_v50 = vadd.f32 %v10684_v47, %v10742_v61  ;;  %v10768_v47 = vld [vmem:[%s13403_s8 + $0x18] sm:$0xff] }
 0x56a   :  { %v1163_v7 = vadd.f32 %v1162_v18, %v10697_v21  ;;  %8587 = vmatprep.subr.mxu0 %v1168_v19  ;;  %v10712_v18 = vadd.f32 %v8517_v36, %v642_v37  ;;  %v1128_v36 = vadd.f32 %v8574_v26, %v10718_v9  ;;  %v1113_v26 = vadd.f32 %v1112_v54, %v10729_v32  ;;  %v10785_v54 = vld [vmem:[%s13403_s8 + $0x30] sm:$0xff] }
 0x56b   :  { %8588 = vmatpush3.msra.mxu0 %v1168_v19  ;;  %v1143_v19 = vadd.f32 %v1142_v33, %v10709_v22  ;;  %v1415_v33 = vld [vmem:[%s13405_s10 + $0x60] sm:$0xff]  ;;  %v1413_v37 = vld [vmem:[%s13405_s10 + $0x50] sm:$0xff] }
 0x56c   :  { %8589 = vmatprep.subr.mxu0 %v1163_v7  ;;  %8633 = vmatprep.subr.mxu1 %v1415_v33 }
 0x56d   :  { %8590 = vmatpush3.msra.mxu0 %v1163_v7  ;;  %v1138_v7 = vadd.f32 %v8577_v28, %v10712_v18  ;;  %v1118_v28 = vadd.f32 %v8571_v52, %v10725_v40  ;;  %v1103_v52 = vadd.f32 %v10690_v51, %v10737_v53  ;;  %v10780_v51 = vld [vmem:[%s13403_s8 + $0x28] sm:$0xff]  ;;  %8634 = vmatpush3.msra.mxu1 %v1415_v33 }
 0x56e   :  { %8591 = vmatprep.subr.mxu0 %v1158_v5  ;;  %8635 = vmatprep.subr.mxu1 %v1414_v35 }
 0x56f   :  { %8592 = vmatpush3.msra.mxu0 %v1158_v5  ;;  %v1133_v5 = vadd.f32 %v1132_v29, %v10715_v43  ;;  %v10792_v29 = vld [vmem:[%s13403_s8 + $0x38] sm:$0xff]  ;;  %8636 = vmatpush3.msra.mxu1 %v1414_v35 }
 0x570   :  { %8593 = vmatprep.subr.mxu0 %v1153_v45  ;;  %8637 = vmatprep.subr.mxu1 %v1413_v37 }
 0x571   :  { %8594 = vmatpush3.msra.mxu0 %v1153_v45  ;;  %8638 = vmatpush3.msra.mxu1 %v1413_v37  ;;  %v10809_v45 = vpop.permute.xlu1 %1173 }
 0x572   :  { %8595 = vmatprep.subr.mxu0 %v1148_v41  ;;  %13453 = vst [vmem:[#allocation17_spill] sm:$0xff] %v10809_v45 }
 0x573   :  { %8596 = vmatpush3.msra.mxu0 %v1148_v41 }
 0x574   :  { %8597 = vmatprep.subr.mxu0 %v1143_v19 }
 0x575   :  { %8598 = vmatpush3.msra.mxu0 %v1143_v19  ;;  %v10811_v41 = vpop.permute.xlu1 %1178 }
 0x576   :  { %8599 = vmatprep.subr.mxu0 %v1138_v7  ;;  %13454 = vst [vmem:[#allocation18_spill] sm:$0xff] %v10811_v41 }
 0x577   :  { %8600 = vmatpush3.msra.mxu0 %v1138_v7  ;;  %v1212_v7 = vmul.f32 %v10517_v55, %v10811_v41 }
 0x578   :  { %8601 = vmatprep.subr.mxu0 %v1133_v5 }
 0x579   :  { %8602 = vmatpush3.msra.mxu0 %v1133_v5  ;;  %v10813_v19 = vpop.permute.xlu1 %1188 }
 0x57a   :  { %8603 = vmatprep.subr.mxu0 %v1128_v36  ;;  %13455 = vst [vmem:[#allocation19_spill] sm:$0xff] %v10813_v19  ;;  %v1214_v55 = vmul.f32 %v10521_v63, %v10813_v19 }
 0x57b   :  { %8604 = vmatpush3.msra.mxu0 %v1128_v36  ;;  %v1324_v36 = vld [vmem:[%s13408_s13 + $0x10] ss:$0 sm:$0xff] }
 0x57c   :  { %8605 = vmatprep.subr.mxu0 %v1123_v38 }
 0x57d   :  { %8606 = vmatpush3.msra.mxu0 %v1123_v38  ;;  %v10820_v38 = vpop.permute.xlu0 %1183 }
 0x57e   :  { %8607 = vmatprep.subr.mxu0 %v1118_v28  ;;  %13456 = vst [vmem:[#allocation20_spill] sm:$0xff] %v10820_v38  ;;  %v1213_v41 = vmul.f32 %v10820_v38, %v10523_v56 }
 0x57f   :  { %8608 = vmatpush3.msra.mxu0 %v1118_v28  ;;  %v10822_v28 = vpop.permute.xlu1 %1198 }
 0x580   :  { %8609 = vmatprep.subr.mxu0 %v1113_v26  ;;  %13457 = vst [vmem:[#allocation21_spill] sm:$0xff] %v10822_v28 }
 0x581   :  { %8610 = vmatpush3.msra.mxu0 %v1113_v26 }
 0x582   :  { %8611 = vmatprep.subr.mxu0 %v1108_v27 }
 0x583   :  { %8612 = vmatpush3.msra.mxu0 %v1108_v27  ;;  %v1211_v27 = vmul.f32 %v10809_v45, %v10519_v60  ;;  %v10837_v60 = vpop.permute.xlu1 %1208 }
 0x584   :  { %8613 = vmatprep.subr.mxu0 %v1103_v52  ;;  %13459 = vst [vmem:[#allocation23_spill] sm:$0xff] %v10837_v60 }
 0x585   :  { %8614 = vmatpush3.msra.mxu0 %v1103_v52 }
 0x586   :  { %8615 = vmatprep.subr.mxu0 %v1098_v50 }
 0x587   :  { %8616 = vmatpush3.msra.mxu0 %v1098_v50 }
 0x588   :  { %8617 = vmatprep.subr.mxu0 %v1093_v49 }
 0x589   :  { %8618 = vmatpush3.msra.mxu0 %v1093_v49 }
 0x58a   :  { %8620 = vmatmul.mubr.f32.vlgmr.msra.gmra.mxu0 %v10756_v42 }
 0x58b   :  { %8622 = vmatprep.mubr.f32.mxu0 %v10761_v46 }
 0x58e   :  { %8623 = vmatmul.mubr.f32.gmra.mxu0 %v10768_v47 }
 0x58f   :  { %8625 = vmatprep.mubr.f32.mxu0 %v10773_v48 }
 0x592   :  { %8626 = vmatmul.mubr.f32.gmra.mxu0 %v10780_v51 }
 0x593   :  { %8628 = vmatprep.mubr.f32.mxu0 %v10785_v54 }
 0x596   :  { %8629 = vmatmul.mubr.f32.gmra.mxu0 %v10792_v29 }
 0x597   :  { %8667 = vmatprep.mubr.msk.f32.mxu0 %vm113_vm0, %v10490_v30 }
 0x64a   :  { %v8621_v5 = vpop.f32.mrf.mxu0 }
 0x64b   :  { %v1291_v26 = vadd.f32 %v8621_v5, %v1212_v7  ;;  %v10835_v5 = vpop.permute.xlu0 %1193 }
 0x64c   :  { %v1285_v52 = vpop.f32.mrf.mxu0  ;;  %13458 = vst [vmem:[#allocation22_spill] sm:$0xff] %v10835_v5 }
 0x64d   :  { %v10826_v50 = vadd.f32 %v1324_v36, %v1291_v26  ;;  %v1286_v49 = vadd.f32 %v1285_v52, %v1211_v27 }
 0x64e   :  { %v8624_v31 = vpop.f32.mrf.mxu0 }
 0x64f   :  { %v1342_v33 = vmul.f32 0.044715, %v10826_v50  ;;  %v10831_v35 = vadd.f32 %v1324_v36, %v1286_v49  ;;  %v1301_v37 = vadd.f32 %v8624_v31, %v1214_v55  ;;  %v1216_v49 = vmul.f32 %v10525_v57, %v10822_v28 }
 0x650   :  { %v1295_v7 = vpop.f32.mrf.mxu0 }
 0x651   :  { %v1350_v26 = vmul.f32 %v1342_v33, %v10826_v50  ;;  %v1341_v27 = vmul.f32 0.044715, %v10831_v35  ;;  %v10841_v52 = vadd.f32 %v1324_v36, %v1301_v37  ;;  %v1296_v63 = vadd.f32 %v1295_v7, %v1213_v41 }
 0x652   :  { %v8627_v19 = vpop.f32.mrf.mxu0  ;;  %v1215_v33 = vmul.f32 %v10835_v5, %v10527_v20  ;;  %v1218_v41 = vmul.f32 %v10529_v58, %v10837_v60 }
 0x653   :  { %v1358_v55 = vmul.f32 %v1350_v26, %v10826_v50  ;;  %v1349_v56 = vmul.f32 %v1341_v27, %v10831_v35  ;;  %v1344_v31 = vmul.f32 0.044715, %v10841_v52  ;;  %v10848_v38 = vadd.f32 %v1324_v36, %v1296_v63 }
 0x654   :  { %v1311_v45 = vadd.f32 %v8627_v19, %v1216_v49  ;;  %v1305_v30 = vpop.f32.mrf.mxu0  ;;  %v10860_v19 = vpop.permute.xlu0 %1203 }
 0x655   :  { %v1366_v37 = vadd.f32 %v1358_v55, %v10826_v50  ;;  %v1357_v57 = vmul.f32 %v1349_v56, %v10831_v35  ;;  %v1352_v7 = vmul.f32 %v1344_v31, %v10841_v52  ;;  %v1343_v26 = vmul.f32 0.044715, %v10848_v38  ;;  %13460 = vst [vmem:[#allocation24_spill] sm:$0xff] %v10860_v19 }
 0x656   :  { %v10858_v27 = vadd.f32 %v1324_v36, %v1311_v45  ;;  %v1306_v63 = vadd.f32 %v1305_v30, %v1215_v33  ;;  %v8630_v28 = vpop.f32.mrf.mxu0  ;;  %v1217_v56 = vmul.f32 %v10860_v19, %v10532_v59 }
 0x657   :  { %v1374_v49 = vmul.f32 0.7978846, %v1366_v37  ;;  %v1360_v20 = vmul.f32 %v1352_v7, %v10841_v52  ;;  %v1351_v5 = vmul.f32 %v1343_v26, %v10848_v38  ;;  %v1321_v58 = vadd.f32 %v8630_v28, %v1218_v41 }
 0x658   :  { %v1346_v55 = vmul.f32 0.044715, %v10858_v27  ;;  %v10865_v60 = vadd.f32 %v1324_v36, %v1306_v63  ;;  %v1315_v31 = vpop.f32.mrf.mxu0  ;;  %v1365_v45 = vadd.f32 %v1357_v57, %v10831_v35 }
 0x659   :  { %9595 = vtanh.f32 %v1374_v49  ;;  %v1368_v30 = vadd.f32 %v1360_v20, %v10841_v52  ;;  %v1359_v33 = vmul.f32 %v1351_v5, %v10848_v38  ;;  %v10872_v37 = vadd.f32 %v1324_v36, %v1321_v58 }
 0x65a   :  { %v1354_v7 = vmul.f32 %v1346_v55, %v10858_v27  ;;  %v1345_v28 = vmul.f32 0.044715, %v10865_v60  ;;  %v1316_v41 = vadd.f32 %v1315_v31, %v1217_v56  ;;  %v1373_v26 = vmul.f32 0.7978846, %v1365_v45 }
 0x65b   :  { %v1348_v63 = vmul.f32 0.044715, %v10872_v37  ;;  %v1367_v59 = vadd.f32 %v1359_v33, %v10848_v38  ;;  %v1376_v19 = vmul.f32 0.7978846, %v1368_v30 }
 0x65c   :  { %v1362_v57 = vmul.f32 %v1354_v7, %v10858_v27  ;;  %v1353_v49 = vmul.f32 %v1345_v28, %v10865_v60  ;;  %v1331_v20 = vadd.f32 %v1324_v36, %v1316_v41  ;;  %9597 = vtanh.f32 %v1373_v26 }
 0x65d   :  { %v1356_v5 = vmul.f32 %v1348_v63, %v10872_v37  ;;  %v1375_v58 = vmul.f32 0.7978846, %v1367_v59  ;;  %9599 = vtanh.f32 %v1376_v19 }
 0x65e   :  { %v1370_v55 = vadd.f32 %v1362_v57, %v10858_v27  ;;  %v1361_v56 = vmul.f32 %v1353_v49, %v10865_v60  ;;  %v1347_v31 = vmul.f32 0.044715, %v1331_v20 }
 0x65f   :  { %v1364_v45 = vmul.f32 %v1356_v5, %v10872_v37  ;;  %9601 = vtanh.f32 %v1375_v58  ;;  %v1334_v5 = vmul.f32 0.5, %v10826_v50 }
 0x660   :  { %v1355_v33 = vmul.f32 %v1347_v31, %v1331_v20  ;;  %v1369_v30 = vadd.f32 %v1361_v56, %v10865_v60  ;;  %v1378_v7 = vmul.f32 0.7978846, %v1370_v55  ;;  %v1333_v56 = vmul.f32 0.5, %v10831_v35 }
 0x661   :  { %v1372_v28 = vadd.f32 %v1364_v45, %v10872_v37 }
 0x662   :  { %v1363_v36 = vmul.f32 %v1355_v33, %v1331_v20  ;;  %v1377_v41 = vmul.f32 0.7978846, %v1369_v30  ;;  %9603 = vtanh.f32 %v1378_v7  ;;  %v1335_v7 = vmul.f32 0.5, %v10848_v38 }
 0x663   :  { %v1380_v26 = vmul.f32 0.7978846, %v1372_v28  ;;  %v1338_v38 = vmul.f32 0.5, %v10858_v27 }
 0x664   :  { %9605 = vtanh.f32 %v1377_v41  ;;  %v1371_v19 = vadd.f32 %v1363_v36, %v1331_v20  ;;  %v1336_v36 = vmul.f32 0.5, %v10841_v52  ;;  %v1337_v52 = vmul.f32 0.5, %v10865_v60 }
 0x665   :  { %9607 = vtanh.f32 %v1380_v26 }
 0x666   :  { %v9596_v63 = vpop.eup %9595  ;;  %v1379_v59 = vmul.f32 0.7978846, %v1371_v19 }
 0x667   :  { %v1390_v57 = vadd.f32 1.0, %v9596_v63 }
 0x668   :  { %9609 = vtanh.f32 %v1379_v59 }
 0x669   :  { %v9598_v49 = vpop.eup %9597  ;;  %v1398_v31 = vmul.f32 %v1390_v57, %v1334_v5 }
 0x66a   :  { %v9600_v58 = vpop.eup %9599  ;;  %v1389_v55 = vadd.f32 1.0, %v9598_v49 }
 0x66b   :  { %v1392_v45 = vadd.f32 1.0, %v9600_v58  ;;  %v1406_v19 = vadd.f32 %v1398_v31, %v10401_v11  ;;  %v1340_v31 = vmul.f32 0.5, %v10872_v37 }
 0x66c   :  { %v9602_v33 = vpop.eup %9601  ;;  %v1397_v30 = vmul.f32 %v1389_v55, %v1333_v56 }
 0x66d   :  { %v1391_v28 = vadd.f32 1.0, %v9602_v33  ;;  %v1400_v50 = vmul.f32 %v1392_v45, %v1336_v36  ;;  %v1339_v45 = vmul.f32 0.5, %v1331_v20 }
 0x66e   :  { %v1405_v41 = vadd.f32 %v1397_v30, %v10393_v10 }
 0x66f   :  { %v9604_v26 = vpop.eup %9603  ;;  %v1399_v63 = vmul.f32 %v1391_v28, %v1335_v7  ;;  %v1408_v10 = vadd.f32 %v1400_v50, %v10415_v13 }
 0x670   :  { %8639 = vmatprep.mubr.msk.f32.mxu1 %vm340_vm1, %v1405_v41  ;;  %v1394_v35 = vadd.f32 1.0, %v9604_v26  ;;  %v13462_v41 = vld [vmem:[#allocation9_spill] sm:$0xff]  ;;  %v13469_v26 = vld [vmem:[#allocation16_spill] sm:$0xff] }
 0x671   :  { %v9606_v59 = vpop.eup %9605  ;;  %8640 = vmatmul.mubr.msk.f32.vlgmr.msra.gmra.mxu1 %vm340_vm1, %v1406_v19  ;;  %v1407_v57 = vadd.f32 %v1399_v63, %v10406_v12 }
 0x672   :  { %v9608_v49 = vpop.eup %9607  ;;  %v1393_v5 = vadd.f32 1.0, %v9606_v59  ;;  %v1402_v11 = vmul.f32 %v1394_v35, %v1338_v38 }
 0x673   :  { %8642 = vmatprep.mubr.msk.f32.mxu1 %vm340_vm1, %v1407_v57  ;;  %v1396_v58 = vadd.f32 1.0, %v9608_v49 }
 0x674   :  { %v1401_v56 = vmul.f32 %v1393_v5, %v1337_v52  ;;  %v1410_v33 = vadd.f32 %v1402_v11, %v10429_v15 }
 0x675   :  { %v9610_v55 = vpop.eup %9609  ;;  %8643 = vmatmul.mubr.msk.f32.gmra.mxu1 %vm340_vm1, %v1408_v10  ;;  %v1404_v60 = vmul.f32 %v1396_v58, %v1340_v31 }
 0x676   :  { %v1409_v12 = vadd.f32 %v1401_v56, %v10420_v14  ;;  %v1395_v27 = vadd.f32 1.0, %v9610_v55 }
 0x677   :  { %v1412_v7 = vadd.f32 %v1404_v60, %v10443_v17 }
 0x678   :  { %8645 = vmatprep.mubr.msk.f32.mxu1 %vm340_vm1, %v1409_v12  ;;  %v1403_v30 = vmul.f32 %v1395_v27, %v1339_v45 }
 0x679   :  { %8646 = vmatmul.mubr.msk.f32.gmra.mxu1 %vm340_vm1, %v1410_v33 }
 0x67a   :  { %v1411_v13 = vadd.f32 %v1403_v30, %v10434_v16 }
 0x67c   :  { %8648 = vmatprep.mubr.msk.f32.mxu1 %vm340_vm1, %v1411_v13 }
 0x67d   :  { %8649 = vmatmul.mubr.msk.f32.gmra.mxu1 %vm340_vm1, %v1412_v7 }
 0x67e   :  { %8723 = vmatprep.mubr.f32.mxu1 %v10657_v25  ;;  %v13461_v25 = vld [vmem:[#allocation8_spill] sm:$0xff] }
 0x731   :  { %v10910_v14 = vpop.f32.mrf.mxu1 }
 0x733   :  { %v10912_v37 = vpop.f32.mrf.mxu1 }
 0x735   :  { %v10914_v15 = vpop.f32.mrf.mxu1 }
 0x737   :  { %v10916_v20 = vpop.f32.mrf.mxu1 }
 0x739   :  { %v10918_v28 = vpop.f32.mrf.mxu1 }
 0x73b   :  { %v10920_v36 = vpop.f32.mrf.mxu1 }
 0x73d   :  { %v10922_v16 = vpop.f32.mrf.mxu1 }
 0x73e   :  { %8651 = vmatprep.subr.mxu0 %v10922_v16 }
 0x73f   :  { %v10925_v17 = vpop.f32.mrf.mxu1  ;;  %8652 = vmatpush3.msra.mxu0 %v10922_v16 }
 0x740   :  { %8653 = vmatprep.subr.mxu0 %v10925_v17 }
 0x741   :  { %8654 = vmatpush3.msra.mxu0 %v10925_v17 }
 0x742   :  { %8655 = vmatprep.subr.mxu0 %v10918_v28 }
 0x743   :  { %8656 = vmatpush3.msra.mxu0 %v10918_v28 }
 0x744   :  { %8657 = vmatprep.subr.mxu0 %v10920_v36 }
 0x745   :  { %8658 = vmatpush3.msra.mxu0 %v10920_v36 }
 0x746   :  { %8659 = vmatprep.subr.mxu0 %v10914_v15 }
 0x747   :  { %8660 = vmatpush3.msra.mxu0 %v10914_v15 }
 0x748   :  { %8661 = vmatprep.subr.mxu0 %v10916_v20 }
 0x749   :  { %8662 = vmatpush3.msra.mxu0 %v10916_v20 }
 0x74a   :  { %8663 = vmatprep.subr.mxu0 %v10910_v14 }
 0x74b   :  { %8664 = vmatpush3.msra.mxu0 %v10910_v14 }
 0x74c   :  { %8665 = vmatprep.subr.mxu0 %v10912_v37 }
 0x74d   :  { %8666 = vmatpush3.msra.mxu0 %v10912_v37 }
 0x74e   :  { %8668 = vmatmul.mubr.msk.f32.vlgmr.msra.gmra.mxu0 %vm113_vm0, %v10550_v62  ;;  %v13463_v62 = vld [vmem:[#allocation10_spill] sm:$0xff] }
 0x74f   :  { %8670 = vmatprep.mubr.msk.f32.mxu0 %vm113_vm0, %v10556_v0  ;;  %v13464_v0 = vld [vmem:[#allocation11_spill] sm:$0xff] }
 0x752   :  { %8671 = vmatmul.mubr.msk.f32.gmra.mxu0 %vm113_vm0, %v10566_v1  ;;  %v13465_v1 = vld [vmem:[#allocation12_spill] sm:$0xff] }
 0x753   :  { %8673 = vmatprep.mubr.msk.f32.mxu0 %vm113_vm0, %v10571_v2  ;;  %v13466_v2 = vld [vmem:[#allocation13_spill] sm:$0xff] }
 0x756   :  { %8674 = vmatmul.mubr.msk.f32.gmra.mxu0 %vm113_vm0, %v10580_v3  ;;  %v13467_v3 = vld [vmem:[#allocation14_spill] sm:$0xff] }
 0x757   :  { %8676 = vmatprep.mubr.msk.f32.mxu0 %vm113_vm0, %v10585_v4  ;;  %v13468_v4 = vld [vmem:[#allocation15_spill] sm:$0xff] }
 0x75a   :  { %8677 = vmatmul.mubr.msk.f32.gmra.mxu0 %vm113_vm0, %v13461_v25 }
 0x75b   :  { %8679 = vmatprep.mubr.msk.f32.mxu0 %vm113_vm0, %v13462_v41 }
 0x75e   :  { %8680 = vmatmul.mubr.msk.f32.gmra.mxu0 %vm113_vm0, %v13463_v62 }
 0x75f   :  { %8682 = vmatprep.mubr.msk.f32.mxu0 %vm113_vm0, %v13464_v0 }
 0x762   :  { %8683 = vmatmul.mubr.msk.f32.gmra.mxu0 %vm113_vm0, %v13465_v1 }
 0x763   :  { %8685 = vmatprep.mubr.msk.f32.mxu0 %vm113_vm0, %v13466_v2 }
 0x766   :  { %8686 = vmatmul.mubr.msk.f32.gmra.mxu0 %vm113_vm0, %v13467_v3 }
 0x767   :  { %8688 = vmatprep.mubr.msk.f32.mxu0 %vm113_vm0, %v13468_v4 }
 0x76a   :  { %8689 = vmatmul.mubr.msk.f32.gmra.mxu0 %vm113_vm0, %v13469_v26  ;;  %v13470_v26 = vld [vmem:[#allocation6_spill] sm:$0xff] }
 0x80e   :  { %v8669_v19 = vpop.f32.mrf.mxu0 }
 0x80f   :  { %v1618_v3 = vadd.f32 %v8669_v19, %v10742_v61  ;;  %v1896_v19 = vld [vmem:[%s13405_s10 + $0x88] sm:$0xff] }
 0x810   :  { %v1612_v63 = vpop.f32.mrf.mxu0  ;;  %8735 = vmatprep.subr.mxu0 %v1896_v19 }
 0x811   :  { %v1613_v4 = vadd.f32 %v1612_v63, %v10747_v24  ;;  %8736 = vmatpush3.msra.mxu0 %v1896_v19 }
 0x812   :  { %v8672_v50 = vpop.f32.mrf.mxu0 }
 0x813   :  { %v1628_v1 = vadd.f32 %v8672_v50, %v10733_v34  ;;  %v13472_v50 = vld [vmem:[#allocation17_spill] sm:$0xff] }
 0x814   :  { %v1622_v35 = vpop.f32.mrf.mxu0 }
 0x815   :  { %v1623_v2 = vadd.f32 %v1622_v35, %v10737_v53  ;;  %v1691_v35 = vmul.f32 %v10912_v37, %v13472_v50 }
 0x816   :  { %v8675_v59 = vpop.f32.mrf.mxu0 }
 0x817   :  { %v1638_v62 = vadd.f32 %v8675_v59, %v10725_v40 }
 0x818   :  { %v1632_v57 = vpop.f32.mrf.mxu0 }
 0x819   :  { %v1633_v0 = vadd.f32 %v1632_v57, %v10729_v32 }
 0x81a   :  { %v8678_v38 = vpop.f32.mrf.mxu0 }
 0x81b   :  { %v1648_v25 = vadd.f32 %v8678_v38, %v10718_v9 }
 0x81c   :  { %v1642_v49 = vpop.f32.mrf.mxu0 }
 0x81d   :  { %v1643_v41 = vadd.f32 %v1642_v49, %v10721_v39  ;;  %v13473_v49 = vld [vmem:[#allocation19_spill] sm:$0xff] }
 0x81e   :  { %v8681_v52 = vpop.f32.mrf.mxu0 }
 0x81f   :  { %v1658_v13 = vadd.f32 %v8681_v52, %v10712_v18  ;;  %v1694_v52 = vmul.f32 %v10914_v15, %v13473_v49 }
 0x820   :  { %v1652_v5 = vpop.f32.mrf.mxu0 }
 0x821   :  { %v1653_v7 = vadd.f32 %v1652_v5, %v10715_v43 }
 0x822   :  { %v8684_v10 = vpop.f32.mrf.mxu0 }
 0x823   :  { %v1668_v60 = vadd.f32 %v8684_v10, %v10706_v44 }
 0x824   :  { %v1662_v11 = vpop.f32.mrf.mxu0 }
 0x825   :  { %v1663_v30 = vadd.f32 %v1662_v11, %v10709_v22 }
 0x826   :  { %v8687_v58 = vpop.f32.mrf.mxu0 }
 0x827   :  { %v1678_v27 = vadd.f32 %v8687_v58, %v10700_v8  ;;  %v13474_v58 = vld [vmem:[#allocation20_spill] sm:$0xff] }
 0x828   :  { %v1672_v56 = vpop.f32.mrf.mxu0 }
 0x829   :  { %v1673_v33 = vadd.f32 %v1672_v56, %v10703_v6  ;;  %v1693_v56 = vmul.f32 %v10916_v20, %v13474_v58 }
 0x82a   :  { %v8690_v55 = vpop.f32.mrf.mxu0 }
 0x82b   :  { %v1688_v31 = vadd.f32 %v8690_v55, %v10695_v23 }
 0x82c   :  { %v1682_v12 = vpop.f32.mrf.mxu0 }
 0x82d   :  { %v1683_v45 = vadd.f32 %v1682_v12, %v10697_v21  ;;  %8691 = vmatprep.subr.mxu1 %v1688_v31 }
 0x82e   :  { %8692 = vmatpush3.msra.mxu1 %v1688_v31 }
 0x82f   :  { %8693 = vmatprep.subr.mxu1 %v1683_v45 }
 0x830   :  { %8694 = vmatpush3.msra.mxu1 %v1683_v45 }
 0x831   :  { %8695 = vmatprep.subr.mxu1 %v1678_v27 }
 0x832   :  { %8696 = vmatpush3.msra.mxu1 %v1678_v27  ;;  %v13475_v27 = vld [vmem:[#allocation21_spill] sm:$0xff] }
 0x833   :  { %8697 = vmatprep.subr.mxu1 %v1673_v33  ;;  %v1696_v15 = vmul.f32 %v10918_v28, %v13475_v27 }
 0x834   :  { %8698 = vmatpush3.msra.mxu1 %v1673_v33 }
 0x835   :  { %8699 = vmatprep.subr.mxu1 %v1668_v60 }
 0x836   :  { %8700 = vmatpush3.msra.mxu1 %v1668_v60 }
 0x837   :  { %8701 = vmatprep.subr.mxu1 %v1663_v30 }
 0x838   :  { %8702 = vmatpush3.msra.mxu1 %v1663_v30 }
 0x839   :  { %8703 = vmatprep.subr.mxu1 %v1658_v13 }
 0x83a   :  { %8704 = vmatpush3.msra.mxu1 %v1658_v13 }
 0x83b   :  { %8705 = vmatprep.subr.mxu1 %v1653_v7 }
 0x83c   :  { %8706 = vmatpush3.msra.mxu1 %v1653_v7 }
 0x83d   :  { %8707 = vmatprep.subr.mxu1 %v1648_v25 }
 0x83e   :  { %8708 = vmatpush3.msra.mxu1 %v1648_v25  ;;  %v13476_v25 = vld [vmem:[#allocation22_spill] sm:$0xff] }
 0x83f   :  { %8709 = vmatprep.subr.mxu1 %v1643_v41 }
 0x840   :  { %8710 = vmatpush3.msra.mxu1 %v1643_v41  ;;  %v1695_v41 = vmul.f32 %v10920_v36, %v13476_v25 }
 0x841   :  { %8711 = vmatprep.subr.mxu1 %v1638_v62 }
 0x842   :  { %8712 = vmatpush3.msra.mxu1 %v1638_v62 }
 0x843   :  { %8713 = vmatprep.subr.mxu1 %v1633_v0 }
 0x844   :  { %8714 = vmatpush3.msra.mxu1 %v1633_v0  ;;  %v13477_v0 = vld [vmem:[#allocation23_spill] sm:$0xff] }
 0x845   :  { %8715 = vmatprep.subr.mxu1 %v1628_v1 }
 0x846   :  { %8716 = vmatpush3.msra.mxu1 %v1628_v1  ;;  %v1698_v1 = vmul.f32 %v10922_v16, %v13477_v0 }
 0x847   :  { %8717 = vmatprep.subr.mxu1 %v1623_v2 }
 0x848   :  { %8718 = vmatpush3.msra.mxu1 %v1623_v2 }
 0x849   :  { %8719 = vmatprep.subr.mxu1 %v1618_v3 }
 0x84a   :  { %8720 = vmatpush3.msra.mxu1 %v1618_v3 }
 0x84b   :  { %8721 = vmatprep.subr.mxu1 %v1613_v4 }
 0x84c   :  { %8722 = vmatpush3.msra.mxu1 %v1613_v4 }
 0x84d   :  { %8724 = vmatmul.mubr.f32.vlgmr.msra.gmra.mxu1 %v10756_v42  ;;  %v1895_v42 = vld [vmem:[%s13405_s10 + $0x80] sm:$0xff] }
 0x84e   :  { %8726 = vmatprep.mubr.f32.mxu1 %v10761_v46  ;;  %v1894_v46 = vld [vmem:[%s13405_s10 + $0x78] sm:$0xff]  ;;  %8737 = vmatprep.subr.mxu0 %v1895_v42 }
 0x84f   :  { %8738 = vmatpush3.msra.mxu0 %v1895_v42 }
 0x850   :  { %8739 = vmatprep.subr.mxu0 %v1894_v46 }
 0x851   :  { %8727 = vmatmul.mubr.f32.gmra.mxu1 %v10768_v47  ;;  %v1893_v47 = vld [vmem:[%s13405_s10 + $0x70] sm:$0xff]  ;;  %8740 = vmatpush3.msra.mxu0 %v1894_v46 }
 0x852   :  { %8729 = vmatprep.mubr.f32.mxu1 %v10773_v48  ;;  %8741 = vmatprep.subr.mxu0 %v1893_v47  ;;  %v13471_v48 = vld [vmem:[#allocation18_spill] sm:$0xff] }
 0x853   :  { %8742 = vmatpush3.msra.mxu0 %v1893_v47 }
 0x855   :  { %8730 = vmatmul.mubr.f32.gmra.mxu1 %v10780_v51  ;;  %v1692_v51 = vmul.f32 %v10910_v14, %v13471_v48 }
 0x856   :  { %8732 = vmatprep.mubr.f32.mxu1 %v10785_v54 }
 0x859   :  { %8733 = vmatmul.mubr.f32.gmra.mxu1 %v10792_v29  ;;  %v1804_v29 = vld [vmem:[%s13408_s13 + $0x11] ss:$0 sm:$0xff] }
 0x85a   :  { %8771 = vmatprep.mubr.msk.f32.mxu1 %vm113_vm0, %v13470_v26 }
 0x90d   :  { %v8725_v54 = vpop.f32.mrf.mxu1 }
 0x90e   :  { %v1771_v63 = vadd.f32 %v8725_v54, %v1692_v51 }
 0x90f   :  { %v1765_v59 = vpop.f32.mrf.mxu1 }
 0x910   :  { %v11016_v57 = vadd.f32 %v1804_v29, %v1771_v63  ;;  %v1766_v38 = vadd.f32 %v1765_v59, %v1691_v35  ;;  %v13478_v63 = vld [vmem:[#allocation24_spill] sm:$0xff] }
 0x911   :  { %v8728_v5 = vpop.f32.mrf.mxu1  ;;  %v1697_v35 = vmul.f32 %v10925_v17, %v13478_v63 }
 0x912   :  { %v1822_v10 = vmul.f32 0.044715, %v11016_v57  ;;  %v11021_v14 = vadd.f32 %v1804_v29, %v1766_v38  ;;  %v1781_v11 = vadd.f32 %v8728_v5, %v1694_v52 }
 0x913   :  { %v1775_v55 = vpop.f32.mrf.mxu1 }
 0x914   :  { %v1830_v31 = vmul.f32 %v1822_v10, %v11016_v57  ;;  %v1821_v37 = vmul.f32 0.044715, %v11021_v14  ;;  %v11027_v12 = vadd.f32 %v1804_v29, %v1781_v11  ;;  %v1776_v45 = vadd.f32 %v1775_v55, %v1693_v56 }
 0x915   :  { %v8731_v33 = vpop.f32.mrf.mxu1 }
 0x916   :  { %v1838_v60 = vmul.f32 %v1830_v31, %v11016_v57  ;;  %v1829_v30 = vmul.f32 %v1821_v37, %v11021_v14  ;;  %v1824_v13 = vmul.f32 0.044715, %v11027_v12  ;;  %v11034_v7 = vadd.f32 %v1804_v29, %v1776_v45 }
 0x917   :  { %v1791_v20 = vadd.f32 %v8731_v33, %v1696_v15  ;;  %v1785_v62 = vpop.f32.mrf.mxu1 }
 0x918   :  { %v1846_v2 = vadd.f32 %v1838_v60, %v11016_v57  ;;  %v1837_v28 = vmul.f32 %v1829_v30, %v11021_v14  ;;  %v1832_v3 = vmul.f32 %v1824_v13, %v11027_v12  ;;  %v1823_v4 = vmul.f32 0.044715, %v11034_v7 }
 0x919   :  { %v11044_v26 = vadd.f32 %v1804_v29, %v1791_v20  ;;  %v1786_v19 = vadd.f32 %v1785_v62, %v1695_v41  ;;  %v8734_v42 = vpop.f32.mrf.mxu1 }
 0x91a   :  { %v1854_v46 = vmul.f32 0.7978846, %v1846_v2  ;;  %v1840_v47 = vmul.f32 %v1832_v3, %v11027_v12  ;;  %v1831_v36 = vmul.f32 %v1823_v4, %v11034_v7  ;;  %v1801_v51 = vadd.f32 %v8734_v42, %v1698_v1 }
 0x91b   :  { %v1826_v16 = vmul.f32 0.044715, %v11044_v26  ;;  %v11049_v54 = vadd.f32 %v1804_v29, %v1786_v19  ;;  %v1795_v59 = vpop.f32.mrf.mxu1  ;;  %v1845_v38 = vadd.f32 %v1837_v28, %v11021_v14 }
 0x91c   :  { %9611 = vtanh.f32 %v1854_v46  ;;  %v1848_v52 = vadd.f32 %v1840_v47, %v11027_v12  ;;  %v1839_v5 = vmul.f32 %v1831_v36, %v11034_v7  ;;  %v11056_v10 = vadd.f32 %v1804_v29, %v1801_v51 }
 0x91d   :  { %v1834_v11 = vmul.f32 %v1826_v16, %v11044_v26  ;;  %v1825_v56 = vmul.f32 0.044715, %v11049_v54  ;;  %v1796_v55 = vadd.f32 %v1795_v59, %v1697_v35  ;;  %v1853_v31 = vmul.f32 0.7978846, %v1845_v38 }
 0x91e   :  { %v1828_v37 = vmul.f32 0.044715, %v11056_v10  ;;  %v1847_v17 = vadd.f32 %v1839_v5, %v11034_v7  ;;  %v1856_v45 = vmul.f32 0.7978846, %v1848_v52  ;;  %v1814_v35 = vmul.f32 0.5, %v11016_v57  ;;  %v9804_v57 = vld [vmem:[%s13401_s6 + $0x8] sm:$0xff] }
 0x91f   :  { %v1842_v15 = vmul.f32 %v1834_v11, %v11044_v26  ;;  %v1833_v33 = vmul.f32 %v1825_v56, %v11049_v54  ;;  %v11064_v60 = vadd.f32 %v1804_v29, %v1796_v55  ;;  %9613 = vtanh.f32 %v1853_v31 }
 0x920   :  { %v1836_v30 = vmul.f32 %v1828_v37, %v11056_v10  ;;  %v1855_v13 = vmul.f32 0.7978846, %v1847_v17  ;;  %9615 = vtanh.f32 %v1856_v45  ;;  %v1813_v38 = vmul.f32 0.5, %v11021_v14  ;;  %v9803_v45 = vld [vmem:[%s13401_s6] sm:$0xff] }
 0x921   :  { %v1850_v20 = vadd.f32 %v1842_v15, %v11044_v26  ;;  %v1841_v41 = vmul.f32 %v1833_v33, %v11049_v54  ;;  %v1827_v62 = vmul.f32 0.044715, %v11064_v60  ;;  %v1815_v31 = vmul.f32 0.5, %v11034_v7 }
 0x922   :  { %v1844_v1 = vmul.f32 %v1836_v30, %v11056_v10  ;;  %9617 = vtanh.f32 %v1855_v13  ;;  %v1816_v17 = vmul.f32 0.5, %v11027_v12  ;;  %v9805_v12 = vld [vmem:[%s13401_s6 + $0x10] sm:$0xff] }
 0x923   :  { %v1835_v2 = vmul.f32 %v1827_v62, %v11064_v60  ;;  %v1849_v28 = vadd.f32 %v1841_v41, %v11049_v54  ;;  %v1858_v29 = vmul.f32 0.7978846, %v1850_v20  ;;  %v1818_v62 = vmul.f32 0.5, %v11044_v26  ;;  %v9807_v26 = vld [vmem:[%s13401_s6 + $0x20] sm:$0xff] }
 0x924   :  { %v1852_v3 = vadd.f32 %v1844_v1, %v11056_v10 }
 0x925   :  { %v1843_v4 = vmul.f32 %v1835_v2, %v11064_v60  ;;  %v1857_v19 = vmul.f32 0.7978846, %v1849_v28  ;;  %9619 = vtanh.f32 %v1858_v29  ;;  %v1817_v2 = vmul.f32 0.5, %v11049_v54  ;;  %v9806_v29 = vld [vmem:[%s13401_s6 + $0x18] sm:$0xff] }
 0x926   :  { %v1860_v42 = vmul.f32 0.7978846, %v1852_v3 }
 0x927   :  { %9621 = vtanh.f32 %v1857_v19  ;;  %v1851_v46 = vadd.f32 %v1843_v4, %v11064_v60 }
 0x928   :  { %9623 = vtanh.f32 %v1860_v42 }
 0x929   :  { %v9612_v47 = vpop.eup %9611  ;;  %v1859_v36 = vmul.f32 0.7978846, %v1851_v46 }
 0x92a   :  { %v1870_v51 = vadd.f32 1.0, %v9612_v47  ;;  %v1820_v47 = vmul.f32 0.5, %v11056_v10  ;;  %v9809_v10 = vld [vmem:[%s13401_s6 + $0x30] sm:$0xff] }
 0x92b   :  { %9625 = vtanh.f32 %v1859_v36  ;;  %v1819_v36 = vmul.f32 0.5, %v11064_v60  ;;  %v11114_v60 = vld [vmem:[%s13401_s6 + $0x38] sm:$0xff] }
 0x92c   :  { %v9614_v16 = vpop.eup %9613  ;;  %v1878_v5 = vmul.f32 %v1870_v51, %v1814_v35 }
 0x92d   :  { %v9616_v59 = vpop.eup %9615  ;;  %v1869_v52 = vadd.f32 1.0, %v9614_v16  ;;  %v9808_v16 = vld [vmem:[%s13401_s6 + $0x28] sm:$0xff] }
 0x92e   :  { %v1872_v11 = vadd.f32 1.0, %v9616_v59  ;;  %v1886_v14 = vadd.f32 %v9804_v57, %v1878_v5  ;;  %v11157_v57 = vld [vmem:[%s13402_s7 + $0x8] sm:$0xff] }
 0x92f   :  { %v9618_v56 = vpop.eup %9617  ;;  %v1877_v55 = vmul.f32 %v1869_v52, %v1813_v38 }
 0x930   :  { %v1871_v37 = vadd.f32 1.0, %v9618_v56  ;;  %v1880_v13 = vmul.f32 %v1872_v11, %v1816_v17  ;;  %v9811_v11 = vld [vmem:[%s13403_s8] sm:$0xff] }
 0x931   :  { %v1885_v15 = vadd.f32 %v9803_v45, %v1877_v55 }
 0x932   :  { %v9620_v33 = vpop.eup %9619  ;;  %v1879_v30 = vmul.f32 %v1871_v37, %v1815_v31  ;;  %v1888_v3 = vadd.f32 %v9806_v29, %v1880_v13  ;;  %v11175_v13 = vld [vmem:[%s13402_s7 + $0x18] sm:$0xff]  ;;  %v11238_v29 = vld [vmem:[%s13402_s7 + $0x60] sm:$0xff] }
 0x933   :  { %8743 = vmatprep.mubr.msk.f32.mxu0 %vm340_vm1, %v1885_v15  ;;  %v1874_v20 = vadd.f32 1.0, %v9620_v33 }
 0x934   :  { %v9622_v7 = vpop.eup %9621  ;;  %8744 = vmatmul.mubr.msk.f32.vlgmr.msra.gmra.mxu0 %vm340_vm1, %v1886_v14  ;;  %v1887_v41 = vadd.f32 %v9805_v12, %v1879_v30  ;;  %v13483_v14 = vld [vmem:[#allocation7_spill] sm:$0xff] }
 0x935   :  { %v9624_v1 = vpop.eup %9623  ;;  %v1873_v28 = vadd.f32 1.0, %v9622_v7  ;;  %v1882_v4 = vmul.f32 %v1874_v20, %v1818_v62  ;;  %v11168_v30 = vld [vmem:[%s13402_s7 + $0x10] sm:$0xff]  ;;  %v11182_v20 = vld [vmem:[%s13402_s7 + $0x20] sm:$0xff]  ;;  %v11189_v7 = vld [vmem:[%s13402_s7 + $0x28] sm:$0xff] }
 0x936   :  { %8746 = vmatprep.mubr.msk.f32.mxu0 %vm340_vm1, %v1887_v41  ;;  %v1876_v19 = vadd.f32 1.0, %v9624_v1  ;;  %v11196_v12 = vld [vmem:[%s13402_s7 + $0x30] sm:$0xff]  ;;  %v11203_v41 = vld [vmem:[%s13402_s7 + $0x38] sm:$0xff]  ;;  %v11210_v62 = vld [vmem:[%s13402_s7 + $0x40] sm:$0xff] }
 0x937   :  { %v1881_v42 = vmul.f32 %v1873_v28, %v1817_v2  ;;  %v1890_v35 = vadd.f32 %v9808_v16, %v1882_v4  ;;  %v11217_v1 = vld [vmem:[%s13402_s7 + $0x48] sm:$0xff]  ;;  %v11224_v2 = vld [vmem:[%s13402_s7 + $0x50] sm:$0xff]  ;;  %v11231_v28 = vld [vmem:[%s13402_s7 + $0x58] sm:$0xff] }
 0x938   :  { %v9626_v46 = vpop.eup %9625  ;;  %8747 = vmatmul.mubr.msk.f32.gmra.mxu0 %vm340_vm1, %v1888_v3  ;;  %v1884_v59 = vmul.f32 %v1876_v19, %v1820_v47  ;;  %v11245_v3 = vld [vmem:[%s13402_s7 + $0x68] sm:$0xff]  ;;  %v11252_v4 = vld [vmem:[%s13402_s7 + $0x70] sm:$0xff]  ;;  %v11259_v19 = vld [vmem:[%s13402_s7 + $0x78] sm:$0xff] }
 0x939   :  { %v1889_v54 = vadd.f32 %v9807_v26, %v1881_v42  ;;  %v1875_v51 = vadd.f32 1.0, %v9626_v46  ;;  %v11266_v42 = vld [vmem:[%s13402_s7] sm:$0xff]  ;;  %v562_v47 = vld [vmem:[%s13402_s7 + $0x88] sm:$0xff]  ;;  %v563_v26 = vld [vmem:[%s13402_s7 + $0x90] sm:$0xff] }
 0x93a   :  { %v1892_v5 = vadd.f32 %v11114_v60, %v1884_v59  ;;  %v561_v46 = vld [vmem:[%s13402_s7 + $0x80] sm:$0xff]  ;;  %v567_v16 = vld [vmem:[%s13402_s7 + $0xb0] sm:$0xff] }
 0x93b   :  { %8749 = vmatprep.mubr.msk.f32.mxu0 %vm340_vm1, %v1889_v54  ;;  %v1883_v38 = vmul.f32 %v1875_v51, %v1819_v36  ;;  %v564_v54 = vld [vmem:[%s13402_s7 + $0x98] sm:$0xff]  ;;  %v565_v36 = vld [vmem:[%s13402_s7 + $0xa0] sm:$0xff]  ;;  %v566_v51 = vld [vmem:[%s13402_s7 + $0xa8] sm:$0xff] }
 0x93c   :  { %8750 = vmatmul.mubr.msk.f32.gmra.mxu0 %vm340_vm1, %v1890_v35  ;;  %v568_v35 = vld [vmem:[%s13402_s7 + $0xb8] sm:$0xff]  ;;  %v569_v59 = vld [vmem:[%s13402_s7 + $0xc0] sm:$0xff] }
 0x93d   :  { %v1891_v52 = vadd.f32 %v9809_v10, %v1883_v38  ;;  %v570_v38 = vld [vmem:[%s13402_s7 + $0xc8] sm:$0xff]  ;;  %v571_v10 = vld [vmem:[%s13402_s7 + $0xd0] sm:$0xff] }
 0x93f   :  { %8752 = vmatprep.mubr.msk.f32.mxu0 %vm340_vm1, %v1891_v52  ;;  %v572_v52 = vld [vmem:[%s13402_s7 + $0xd8] sm:$0xff] }
 0x940   :  { %8753 = vmatmul.mubr.msk.f32.gmra.mxu0 %vm340_vm1, %v1892_v5  ;;  %v573_v5 = vld [vmem:[%s13402_s7 + $0xe0] sm:$0xff] }
 0x941   :  { %8827 = vmatprep.mubr.f32.mxu0 %v9811_v11  ;;  %v574_v11 = vld [vmem:[%s13402_s7 + $0xe8] sm:$0xff] }
 0x9f4   :  { %v11122_v56 = vpop.f32.mrf.mxu0 }
 0x9f6   :  { %v11124_v55 = vpop.f32.mrf.mxu0 }
 0x9f7   :  { %13479 = vst [vmem:[#allocation8_spill] sm:$0xff] %v11124_v55 }
 0x9f8   :  { %v11126_v31 = vpop.f32.mrf.mxu0 }
 0x9fa   :  { %v11128_v37 = vpop.f32.mrf.mxu0 }
 0x9fb   :  { %13480 = vst [vmem:[#allocation9_spill] sm:$0xff] %v11128_v37 }
 0x9fc   :  { %v11130_v17 = vpop.f32.mrf.mxu0 }
 0x9fe   :  { %v11132_v45 = vpop.f32.mrf.mxu0 }
 0x9ff   :  { %13481 = vst [vmem:[#allocation10_spill] sm:$0xff] %v11132_v45 }
 0xa00   :  { %v11134_v15 = vpop.f32.mrf.mxu0 }
 0xa01   :  { %8755 = vmatprep.subr.mxu1 %v11134_v15 }
 0xa02   :  { %v11137_v33 = vpop.f32.mrf.mxu0  ;;  %8756 = vmatpush3.msra.mxu1 %v11134_v15 }
 0xa03   :  { %13482 = vst [vmem:[#allocation11_spill] sm:$0xff] %v11137_v33  ;;  %8757 = vmatprep.subr.mxu1 %v11137_v33 }
 0xa04   :  { %8758 = vmatpush3.msra.mxu1 %v11137_v33 }
 0xa05   :  { %8759 = vmatprep.subr.mxu1 %v11130_v17 }
 0xa06   :  { %8760 = vmatpush3.msra.mxu1 %v11130_v17 }
 0xa07   :  { %8761 = vmatprep.subr.mxu1 %v11132_v45 }
 0xa08   :  { %8762 = vmatpush3.msra.mxu1 %v11132_v45 }
 0xa09   :  { %8763 = vmatprep.subr.mxu1 %v11126_v31 }
 0xa0a   :  { %8764 = vmatpush3.msra.mxu1 %v11126_v31 }
 0xa0b   :  { %8765 = vmatprep.subr.mxu1 %v11128_v37 }
 0xa0c   :  { %8766 = vmatpush3.msra.mxu1 %v11128_v37 }
 0xa0d   :  { %8767 = vmatprep.subr.mxu1 %v11122_v56 }
 0xa0e   :  { %8768 = vmatpush3.msra.mxu1 %v11122_v56 }
 0xa0f   :  { %8769 = vmatprep.subr.mxu1 %v11124_v55 }
 0xa10   :  { %8770 = vmatpush3.msra.mxu1 %v11124_v55 }
 0xa11   :  { %8772 = vmatmul.mubr.msk.f32.vlgmr.msra.gmra.mxu1 %vm113_vm0, %v11157_v57  ;;  %8839 = vmatprep.subr.msk.mxu1 %vm113_vm0, %v13483_v14 }
 0xa12   :  { %8840 = vmatpush3.xpose.msk.msra.mxu1 %vm113_vm0, %v13483_v14  ;;  %8774 = vmatprep.mubr.msk.f32.mxu1 %vm113_vm0, %v11168_v30  ;;  %v575_v14 = vld [vmem:[%s13402_s7 + $0xf0] sm:$0xff] }
 0xa15   :  { %8775 = vmatmul.mubr.msk.f32.gmra.mxu1 %vm113_vm0, %v11175_v13 }
 0xa16   :  { %8777 = vmatprep.mubr.msk.f32.mxu1 %vm113_vm0, %v11182_v20 }
 0xa19   :  { %8778 = vmatmul.mubr.msk.f32.gmra.mxu1 %vm113_vm0, %v11189_v7 }
 0xa1a   :  { %8780 = vmatprep.mubr.msk.f32.mxu1 %vm113_vm0, %v11196_v12 }
 0xa1d   :  { %8781 = vmatmul.mubr.msk.f32.gmra.mxu1 %vm113_vm0, %v11203_v41 }
 0xa1e   :  { %8783 = vmatprep.mubr.msk.f32.mxu1 %vm113_vm0, %v11210_v62 }
 0xa21   :  { %8784 = vmatmul.mubr.msk.f32.gmra.mxu1 %vm113_vm0, %v11217_v1 }
 0xa22   :  { %8786 = vmatprep.mubr.msk.f32.mxu1 %vm113_vm0, %v11224_v2 }
 0xa25   :  { %8787 = vmatmul.mubr.msk.f32.gmra.mxu1 %vm113_vm0, %v11231_v28 }
 0xa26   :  { %8789 = vmatprep.mubr.msk.f32.mxu1 %vm113_vm0, %v11238_v29 }
 0xa29   :  { %8790 = vmatmul.mubr.msk.f32.gmra.mxu1 %vm113_vm0, %v11245_v3 }
 0xa2a   :  { %8792 = vmatprep.mubr.msk.f32.mxu1 %vm113_vm0, %v11252_v4 }
 0xa2d   :  { %8793 = vmatmul.mubr.msk.f32.gmra.mxu1 %vm113_vm0, %v11259_v19 }
 0xa2e   :  { %8841 = vmatprep.mubr.msk.f32.mxu1 %vm113_vm0, %v11266_v42 }
 0xa31   :  { %8842 = vmatmul.mubr.msk.f32.vlgmr.msra.gmra.mxu1 %vm113_vm0, %v11157_v57 }
 0xa32   :  { %8844 = vmatprep.mubr.msk.f32.mxu1 %vm113_vm0, %v11168_v30 }
 0xa35   :  { %8845 = vmatmul.mubr.msk.f32.gmra.mxu1 %vm113_vm0, %v11175_v13 }
 0xa36   :  { %8847 = vmatprep.mubr.msk.f32.mxu1 %vm113_vm0, %v11182_v20 }
 0xa39   :  { %8848 = vmatmul.mubr.msk.f32.gmra.mxu1 %vm113_vm0, %v11189_v7 }
 0xa3a   :  { %8850 = vmatprep.mubr.msk.f32.mxu1 %vm113_vm0, %v11196_v12 }
 0xa3d   :  { %8851 = vmatmul.mubr.msk.f32.gmra.mxu1 %vm113_vm0, %v11203_v41 }
 0xa3e   :  { %8853 = vmatprep.mubr.msk.f32.mxu1 %vm113_vm0, %v11210_v62 }
 0xa41   :  { %8854 = vmatmul.mubr.msk.f32.gmra.mxu1 %vm113_vm0, %v11217_v1 }
 0xa42   :  { %8856 = vmatprep.mubr.msk.f32.mxu1 %vm113_vm0, %v11224_v2 }
 0xa45   :  { %8857 = vmatmul.mubr.msk.f32.gmra.mxu1 %vm113_vm0, %v11231_v28 }
 0xa46   :  { %8859 = vmatprep.mubr.msk.f32.mxu1 %vm113_vm0, %v11238_v29 }
 0xa49   :  { %8860 = vmatmul.mubr.msk.f32.gmra.mxu1 %vm113_vm0, %v11245_v3 }
 0xa4a   :  { %8862 = vmatprep.mubr.msk.f32.mxu1 %vm113_vm0, %v11252_v4 }
 0xa4d   :  { %8863 = vmatmul.mubr.msk.f32.gmra.mxu1 %vm113_vm0, %v11259_v19 }
 0xa4e   :  { %8865 = vmatprep.mubr.msk.f32.mxu1 %vm113_vm0, %v561_v46  ;;  %v576_v46 = vld [vmem:[%s13402_s7 + $0xf8] sm:$0xff] }
 0xa51   :  { %8866 = vmatmul.mubr.msk.f32.gmra.mxu1 %vm113_vm0, %v562_v47 }
 0xa52   :  { %8868 = vmatprep.mubr.msk.f32.mxu1 %vm113_vm0, %v563_v26 }
 0xa55   :  { %8869 = vmatmul.mubr.msk.f32.gmra.mxu1 %vm113_vm0, %v564_v54 }
 0xa56   :  { %8871 = vmatprep.mubr.msk.f32.mxu1 %vm113_vm0, %v565_v36 }
 0xa59   :  { %8872 = vmatmul.mubr.msk.f32.gmra.mxu1 %vm113_vm0, %v566_v51 }
 0xa5a   :  { %8874 = vmatprep.mubr.msk.f32.mxu1 %vm113_vm0, %v567_v16 }
 0xa5d   :  { %8875 = vmatmul.mubr.msk.f32.gmra.mxu1 %vm113_vm0, %v568_v35 }
 0xa5e   :  { %8877 = vmatprep.mubr.msk.f32.mxu1 %vm113_vm0, %v569_v59 }
 0xa61   :  { %8878 = vmatmul.mubr.msk.f32.gmra.mxu1 %vm113_vm0, %v570_v38 }
 0xa62   :  { %8880 = vmatprep.mubr.msk.f32.mxu1 %vm113_vm0, %v571_v10 }
 0xa65   :  { %8881 = vmatmul.mubr.msk.f32.gmra.mxu1 %vm113_vm0, %v572_v52 }
 0xa66   :  { %8883 = vmatprep.mubr.msk.f32.mxu1 %vm113_vm0, %v573_v5 }
 0xa69   :  { %8884 = vmatmul.mubr.msk.f32.gmra.mxu1 %vm113_vm0, %v574_v11 }
 0xa6a   :  { %8886 = vmatprep.mubr.msk.f32.mxu1 %vm113_vm0, %v575_v14 }
 0xa6d   :  { %8887 = vmatmul.mubr.msk.f32.gmra.mxu1 %vm113_vm0, %v576_v46 }
 0xad1   :  { %v11364_v47 = vpop.f32.mrf.mxu1 }
 0xad3   :  { %v11366_v26 = vpop.f32.mrf.mxu1 }
 0xad5   :  { %v8776_v54 = vpop.f32.mrf.mxu1 }
 0xad7   :  { %v2102_v36 = vpop.f32.mrf.mxu1 }
 0xad9   :  { %v8779_v51 = vpop.f32.mrf.mxu1 }
 0xadb   :  { %v2112_v16 = vpop.f32.mrf.mxu1 }
 0xadd   :  { %v8782_v35 = vpop.f32.mrf.mxu1 }
 0xadf   :  { %v2122_v59 = vpop.f32.mrf.mxu1 }
 0xae1   :  { %v8785_v38 = vpop.f32.mrf.mxu1 }
 0xae3   :  { %v2132_v10 = vpop.f32.mrf.mxu1 }
 0xae5   :  { %v8788_v52 = vpop.f32.mrf.mxu1 }
 0xae7   :  { %v2142_v5 = vpop.f32.mrf.mxu1 }
 0xae9   :  { %v8791_v11 = vpop.f32.mrf.mxu1 }
 0xaea   :  { %v2158_v45 = vadd.f32 %v8791_v11, %v10700_v8 }
 0xaeb   :  { %v2152_v14 = vpop.f32.mrf.mxu1 }
 0xaec   :  { %v2153_v33 = vadd.f32 %v2152_v14, %v10703_v6 }
 0xaed   :  { %v8794_v55 = vpop.f32.mrf.mxu1 }
 0xaee   :  { %v2168_v50 = vadd.f32 %v8794_v55, %v10695_v23  ;;  %v2148_v23 = vadd.f32 %v8788_v52, %v10706_v44  ;;  %v2138_v55 = vadd.f32 %v8785_v38, %v10712_v18  ;;  %v2118_v38 = vadd.f32 %v8779_v51, %v10725_v40  ;;  %v9830_v52 = vld [vmem:[%s13403_s8 + $0x18] sm:$0xff] }
 0xaef   :  { %v2162_v46 = vpop.f32.mrf.mxu1  ;;  %v2098_v51 = vadd.f32 %v11364_v47, %v10742_v61  ;;  %v2649_v61 = vld [vmem:[%s13405_s10 + $0x90] sm:$0xf] }
 0xaf0   :  { %v2163_v37 = vadd.f32 %v2162_v46, %v10697_v21  ;;  %8795 = vmatprep.subr.mxu0 %v2168_v50  ;;  %v9829_v47 = vld [vmem:[%s13403_s8 + $0x10] sm:$0xff]  ;;  %v9832_v46 = vld [vmem:[%s13403_s8 + $0x28] sm:$0xff] }
 0xaf1   :  { %8796 = vmatpush3.msra.mxu0 %v2168_v50  ;;  %v11370_v58 = vpop.f32.mrf.mxu1  ;;  %v2143_v50 = vadd.f32 %v2142_v5, %v10709_v22  ;;  %v9831_v5 = vld [vmem:[%s13403_s8 + $0x20] sm:$0xff] }
 0xaf2   :  { %8797 = vmatprep.subr.mxu0 %v2163_v37 }
 0xaf3   :  { %8798 = vmatpush3.msra.mxu0 %v2163_v37  ;;  %v11373_v25 = vpop.f32.mrf.mxu1  ;;  %v2133_v37 = vadd.f32 %v2132_v10, %v10715_v43  ;;  %v2113_v10 = vadd.f32 %v2112_v16, %v10729_v32 }
 0xaf4   :  { %8799 = vmatprep.subr.mxu0 %v2158_v45 }
 0xaf5   :  { %8800 = vmatpush3.msra.mxu0 %v2158_v45  ;;  %v11376_v63 = vpop.f32.mrf.mxu1  ;;  %v2128_v45 = vadd.f32 %v8782_v35, %v10718_v9  ;;  %v2108_v35 = vadd.f32 %v8776_v54, %v10733_v34  ;;  %v2093_v34 = vadd.f32 %v11366_v26, %v10747_v24  ;;  %v9828_v24 = vld [vmem:[%s13403_s8 + $0x8] sm:$0xff] }
 0xaf6   :  { %8801 = vmatprep.subr.mxu0 %v2153_v33 }
 0xaf7   :  { %8802 = vmatpush3.msra.mxu0 %v2153_v33  ;;  %v11379_v21 = vpop.f32.mrf.mxu1  ;;  %v2123_v33 = vadd.f32 %v2122_v59, %v10721_v39  ;;  %v2103_v59 = vadd.f32 %v2102_v36, %v10737_v53  ;;  %v2650_v53 = vld [vmem:[%s13405_s10 + $0x98] sm:$0xf] }
 0xaf8   :  { %8803 = vmatprep.subr.mxu0 %v2148_v23 }
 0xaf9   :  { %8804 = vmatpush3.msra.mxu0 %v2148_v23  ;;  %v11382_v8 = vpop.f32.mrf.mxu1  ;;  %v9833_v23 = vld [vmem:[%s13403_s8 + $0x30] sm:$0xff] }
 0xafa   :  { %8805 = vmatprep.subr.mxu0 %v2143_v50 }
 0xafb   :  { %8806 = vmatpush3.msra.mxu0 %v2143_v50  ;;  %v11385_v6 = vpop.f32.mrf.mxu1 }
 0xafc   :  { %8807 = vmatprep.subr.mxu0 %v2138_v55 }
 0xafd   :  { %8808 = vmatpush3.msra.mxu0 %v2138_v55  ;;  %v11388_v44 = vpop.f32.mrf.mxu1 }
 0xafe   :  { %8809 = vmatprep.subr.mxu0 %v2133_v37 }
 0xaff   :  { %8810 = vmatpush3.msra.mxu0 %v2133_v37  ;;  %v11391_v22 = vpop.f32.mrf.mxu1  ;;  %v9834_v37 = vld [vmem:[%s13403_s8 + $0x38] sm:$0xff] }
 0xb00   :  { %8811 = vmatprep.subr.mxu0 %v2128_v45 }
 0xb01   :  { %8812 = vmatpush3.msra.mxu0 %v2128_v45  ;;  %v11394_v18 = vpop.f32.mrf.mxu1 }
 0xb02   :  { %8813 = vmatprep.subr.mxu0 %v2123_v33 }
 0xb03   :  { %8814 = vmatpush3.msra.mxu0 %v2123_v33  ;;  %v11397_v43 = vpop.f32.mrf.mxu1 }
 0xb04   :  { %8815 = vmatprep.subr.mxu0 %v2118_v38 }
 0xb05   :  { %8816 = vmatpush3.msra.mxu0 %v2118_v38  ;;  %v11400_v9 = vpop.f32.mrf.mxu1 }
 0xb06   :  { %8817 = vmatprep.subr.mxu0 %v2113_v10 }
 0xb07   :  { %8818 = vmatpush3.msra.mxu0 %v2113_v10  ;;  %v11403_v39 = vpop.f32.mrf.mxu1 }
 0xb08   :  { %8819 = vmatprep.subr.mxu0 %v2108_v35 }
 0xb09   :  { %8820 = vmatpush3.msra.mxu0 %v2108_v35  ;;  %v11406_v40 = vpop.f32.mrf.mxu1 }
 0xb0a   :  { %8821 = vmatprep.subr.mxu0 %v2103_v59 }
 0xb0b   :  { %8822 = vmatpush3.msra.mxu0 %v2103_v59  ;;  %v11410_v32 = vpop.f32.mrf.mxu1 }
 0xb0c   :  { %8823 = vmatprep.subr.mxu0 %v2098_v51 }
 0xb0d   :  { %8824 = vmatpush3.msra.mxu0 %v2098_v51  ;;  %v11414_v54 = vpop.f32.mrf.mxu1 }
 0xb0e   :  { %8825 = vmatprep.subr.mxu0 %v2093_v34 }
 0xb0f   :  { %8826 = vmatpush3.msra.mxu0 %v2093_v34  ;;  %v11419_v36 = vpop.f32.mrf.mxu1 }
 0xb10   :  { %8828 = vmatmul.mubr.f32.vlgmr.msra.gmra.mxu0 %v9828_v24  ;;  %8889 = vmatprep.subr.msk.mxu0 %vm2700_vm5, %v2650_v53 }
 0xb11   :  { %8830 = vmatprep.mubr.f32.mxu0 %v9829_v47  ;;  %v8867_v26 = vpop.f32.mrf.mxu1  ;;  %8890 = vmatpush3.msk.msra.mxu0 %vm2700_vm5, %v2650_v53 }
 0xb12   :  { %8915 = vmatprep.subr.msk.mxu0 %vm2700_vm5, %v2649_v61 }
 0xb13   :  { %v2570_v16 = vpop.f32.mrf.mxu1 }
 0xb14   :  { %8831 = vmatmul.mubr.f32.gmra.mxu0 %v9830_v52 }
 0xb15   :  { %8833 = vmatprep.mubr.f32.mxu0 %v9831_v5  ;;  %v8870_v11 = vpop.f32.mrf.mxu1 }
 0xb17   :  { %v2580_v14 = vpop.f32.mrf.mxu1 }
 0xb18   :  { %8834 = vmatmul.mubr.f32.gmra.mxu0 %v9832_v46 }
 0xb19   :  { %8836 = vmatprep.mubr.f32.mxu0 %v9833_v23  ;;  %v8873_v50 = vpop.f32.mrf.mxu1 }
 0xb1b   :  { %v2590_v55 = vpop.f32.mrf.mxu1 }
 0xb1c   :  { %8837 = vmatmul.mubr.f32.gmra.mxu0 %v9834_v37 }
 0xb1d   :  { %8891 = vmatprep.mubr.msk.f32.mxu0 %vm2651_vm6, %v2570_v16  ;;  %v8876_v45 = vpop.f32.mrf.mxu1 }
 0xb1f   :  { %v2600_v33 = vpop.f32.mrf.mxu1 }
 0xb20   :  { %8892 = vmatmul.mubr.msk.f32.vlgmr.msra.gmra.mxu0 %vm2651_vm6, %v8867_v26 }
 0xb21   :  { %8894 = vmatprep.mubr.msk.f32.mxu0 %vm2651_vm6, %v2580_v14  ;;  %v8879_v38 = vpop.f32.mrf.mxu1  ;;  %8916 = vmatpush3.msk.msra.mxu0 %vm2700_vm5, %v2649_v61 }
 0xb23   :  { %v2610_v10 = vpop.f32.mrf.mxu1 }
 0xb24   :  { %8895 = vmatmul.mubr.msk.f32.gmra.mxu0 %vm2651_vm6, %v8870_v11 }
 0xb25   :  { %8897 = vmatprep.mubr.msk.f32.mxu0 %vm2651_vm6, %v2590_v55  ;;  %v8882_v35 = vpop.f32.mrf.mxu1 }
 0xb27   :  { %v2620_v59 = vpop.f32.mrf.mxu1 }
 0xb28   :  { %8898 = vmatmul.mubr.msk.f32.gmra.mxu0 %vm2651_vm6, %v8873_v50 }
 0xb29   :  { %8900 = vmatprep.mubr.msk.f32.mxu0 %vm2651_vm6, %v2600_v33  ;;  %v8885_v51 = vpop.f32.mrf.mxu1 }
 0xb2b   :  { %v2630_v34 = vpop.f32.mrf.mxu1 }
 0xb2c   :  { %8901 = vmatmul.mubr.msk.f32.gmra.mxu0 %vm2651_vm6, %v8876_v45 }
 0xb2d   :  { %8903 = vmatprep.mubr.msk.f32.mxu0 %vm2651_vm6, %v2610_v10  ;;  %v8888_v53 = vpop.f32.mrf.mxu1 }
 0xb2f   :  { %v2640_v61 = vpop.f32.mrf.mxu1 }
 0xb30   :  { %8904 = vmatmul.mubr.msk.f32.gmra.mxu0 %vm2651_vm6, %v8879_v38 }
 0xb31   :  { %8906 = vmatprep.mubr.msk.f32.mxu0 %vm2651_vm6, %v2620_v59  ;;  %v3045_v59 = vld [vmem:[%s13408_s13 + $0x13] ss:$0 sm:$0xff] }
 0xb34   :  { %8907 = vmatmul.mubr.msk.f32.gmra.mxu0 %vm2651_vm6, %v8882_v35 }
 0xb35   :  { %8909 = vmatprep.mubr.msk.f32.mxu0 %vm2651_vm6, %v2630_v34 }
 0xb38   :  { %8910 = vmatmul.mubr.msk.f32.gmra.mxu0 %vm2651_vm6, %v8885_v51 }
 0xb39   :  { %8912 = vmatprep.mubr.msk.f32.mxu0 %vm2651_vm6, %v2640_v61 }
 0xb3c   :  { %8913 = vmatmul.mubr.msk.f32.gmra.mxu0 %vm2651_vm6, %v8888_v53 }
 0xb3d   :  { %8917 = vmatprep.mubr.msk.f32.mxu0 %vm2651_vm6, %v11373_v25  ;;  %v3064_v25 = vld [vmem:[%s13406_s11 + $0x210] sm:$0xff] }
 0xb40   :  { %8918 = vmatmul.mubr.msk.f32.vlgmr.msra.gmra.mxu0 %vm2651_vm6, %v11370_v58  ;;  %v3065_v58 = vld [vmem:[%s13406_s11 + $0x218] sm:$0xff] }
 0xb41   :  { %8920 = vmatprep.mubr.msk.f32.mxu0 %vm2651_vm6, %v11379_v21  ;;  %8941 = vmatprep.subr.mxu1 %v3065_v58  ;;  %v2172_v21 = vmul.f32 %v11122_v56, %v13471_v48  ;;  %v2176_v56 = vmul.f32 %v11130_v17, %v13475_v27 }
 0xb42   :  { %8942 = vmatpush3.msra.mxu1 %v3065_v58 }
 0xb43   :  { %8943 = vmatprep.subr.mxu1 %v3064_v25 }
 0xb44   :  { %8921 = vmatmul.mubr.msk.f32.gmra.mxu0 %vm2651_vm6, %v11376_v63  ;;  %8944 = vmatpush3.msra.mxu1 %v3064_v25  ;;  %v3063_v63 = vld [vmem:[%s13406_s11 + $0x208] sm:$0xff] }
 0xb45   :  { %8923 = vmatprep.mubr.msk.f32.mxu0 %vm2651_vm6, %v11385_v6  ;;  %8945 = vmatprep.subr.mxu1 %v3063_v63  ;;  %v11516_v6 = vld [vmem:[%s13408_s13 + $0x12] ss:$0 sm:$0xff] }
 0xb46   :  { %8946 = vmatpush3.msra.mxu1 %v3063_v63 }
 0xb48   :  { %8924 = vmatmul.mubr.msk.f32.gmra.mxu0 %vm2651_vm6, %v11382_v8 }
 0xb49   :  { %8926 = vmatprep.mubr.msk.f32.mxu0 %vm2651_vm6, %v11391_v22 }
 0xb4c   :  { %8927 = vmatmul.mubr.msk.f32.gmra.mxu0 %vm2651_vm6, %v11388_v44 }
 0xb4d   :  { %8929 = vmatprep.mubr.msk.f32.mxu0 %vm2651_vm6, %v11397_v43  ;;  %v2174_v43 = vmul.f32 %v11126_v31, %v13473_v49  ;;  %v2178_v49 = vmul.f32 %v11134_v15, %v13477_v0 }
 0xb50   :  { %8930 = vmatmul.mubr.msk.f32.gmra.mxu0 %vm2651_vm6, %v11394_v18 }
 0xb51   :  { %8932 = vmatprep.mubr.msk.f32.mxu0 %vm2651_vm6, %v11403_v39 }
 0xb54   :  { %8933 = vmatmul.mubr.msk.f32.gmra.mxu0 %vm2651_vm6, %v11400_v9 }
 0xb55   :  { %8935 = vmatprep.mubr.msk.f32.mxu0 %vm2651_vm6, %v11410_v32 }
 0xb58   :  { %8936 = vmatmul.mubr.msk.f32.gmra.mxu0 %vm2651_vm6, %v11406_v40 }
 0xb59   :  { %8938 = vmatprep.mubr.msk.f32.mxu0 %vm2651_vm6, %v11419_v36 }
 0xb5c   :  { %8939 = vmatmul.mubr.msk.f32.gmra.mxu0 %vm2651_vm6, %v11414_v54 }
 0xb5d   :  { %8989 = vmatprep.mubr.msk.f32.mxu0 %vm113_vm0, %v11266_v42  ;;  %v3062_v42 = vld [vmem:[%s13406_s11 + $0x200] sm:$0xff] }
 0xb5e   :  { %8947 = vmatprep.subr.mxu1 %v3062_v42 }
 0xb5f   :  { %8948 = vmatpush3.msra.mxu1 %v3062_v42 }
 0xbd0   :  { %v8829_v8 = vpop.f32.mrf.mxu0 }
 0xbd1   :  { %v2251_v44 = vadd.f32 %v8829_v8, %v2172_v21 }
 0xbd2   :  { %v11518_v22 = vpop.f32.mrf.mxu0 }
 0xbd3   :  { %v11521_v18 = vadd.f32 %v11516_v6, %v2251_v44 }
 0xbd4   :  { %v8832_v9 = vpop.f32.mrf.mxu0 }
 0xbd5   :  { %v2261_v39 = vadd.f32 %v8832_v9, %v2174_v43 }
 0xbd6   :  { %v11525_v40 = vpop.f32.mrf.mxu0 }
 0xbd7   :  { %v11528_v48 = vadd.f32 %v11516_v6, %v2261_v39 }
 0xbd8   :  { %v8835_v32 = vpop.f32.mrf.mxu0 }
 0xbd9   :  { %v2271_v54 = vadd.f32 %v8835_v32, %v2176_v56 }
 0xbda   :  { %v11532_v36 = vpop.f32.mrf.mxu0 }
 0xbdb   :  { %v11535_v24 = vadd.f32 %v11516_v6, %v2271_v54 }
 0xbdc   :  { %v8838_v31 = vpop.f32.mrf.mxu0 }
 0xbdd   :  { %v11539_v47 = vadd.f32 %v8838_v31, %v2178_v49 }
 0xbde   :  { %v11541_v26 = vpop.f32.mrf.mxu0 }
 0xbe0   :  { %v8893_v16 = vpop.f32.mrf.mxu0 }
 0xbe2   :  { %v2770_v52 = vpop.f32.mrf.mxu0 }
 0xbe4   :  { %v8896_v5 = vpop.f32.mrf.mxu0 }
 0xbe6   :  { %v2780_v11 = vpop.f32.mrf.mxu0 }
 0xbe8   :  { %v8899_v27 = vpop.f32.mrf.mxu0 }
 0xbea   :  { %v2790_v17 = vpop.f32.mrf.mxu0 }
 0xbec   :  { %v8902_v14 = vpop.f32.mrf.mxu0 }
 0xbee   :  { %v2800_v46 = vpop.f32.mrf.mxu0 }
 0xbf0   :  { %v8905_v23 = vpop.f32.mrf.mxu0 }
 0xbf2   :  { %v2810_v50 = vpop.f32.mrf.mxu0 }
 0xbf4   :  { %v8908_v55 = vpop.f32.mrf.mxu0 }
 0xbf6   :  { %v2820_v37 = vpop.f32.mrf.mxu0 }
 0xbf8   :  { %v8911_v45 = vpop.f32.mrf.mxu0 }
 0xbfa   :  { %v2830_v33 = vpop.f32.mrf.mxu0 }
 0xbfc   :  { %v8914_v0 = vpop.f32.mrf.mxu0 }
 0xbfe   :  { %v2840_v15 = vpop.f32.mrf.mxu0 }
 0xc00   :  { %v8919_v38 = vpop.f32.mrf.mxu0 }
 0xc01   :  { %v2972_v10 = vadd.f32 %v8919_v38, %v8893_v16 }
 0xc02   :  { %v2966_v35 = vpop.f32.mrf.mxu0 }
 0xc03   :  { %v2967_v51 = vadd.f32 %v2966_v35, %v2770_v52  ;;  %v3047_v61 = vadd.f32 %v3045_v59, %v2972_v10 }
 0xc04   :  { %v8922_v34 = vpop.f32.mrf.mxu0 }
 0xc05   :  { %v3046_v53 = vadd.f32 %v3045_v59, %v2967_v51  ;;  %v2982_v58 = vadd.f32 %v8922_v34, %v8896_v5 }
 0xc06   :  { %v2976_v25 = vpop.f32.mrf.mxu0 }
 0xc07   :  { %v2977_v63 = vadd.f32 %v2976_v25, %v2780_v11  ;;  %8949 = vmatprep.mubr.msk.f32.mxu1 %vm340_vm1, %v3046_v53  ;;  %v3049_v8 = vadd.f32 %v3045_v59, %v2982_v58 }
 0xc08   :  { %v8925_v42 = vpop.f32.mrf.mxu0  ;;  %8950 = vmatmul.mubr.msk.f32.vlgmr.msra.gmra.mxu1 %vm340_vm1, %v3047_v61 }
 0xc09   :  { %v3048_v21 = vadd.f32 %v3045_v59, %v2977_v63  ;;  %v2992_v44 = vadd.f32 %v8925_v42, %v8899_v27 }
 0xc0a   :  { %v2986_v43 = vpop.f32.mrf.mxu0 }
 0xc0b   :  { %v2987_v9 = vadd.f32 %v2986_v43, %v2790_v17  ;;  %8952 = vmatprep.mubr.msk.f32.mxu1 %vm340_vm1, %v3048_v21  ;;  %v3051_v32 = vadd.f32 %v3045_v59, %v2992_v44 }
 0xc0c   :  { %v8928_v39 = vpop.f32.mrf.mxu0  ;;  %8953 = vmatmul.mubr.msk.f32.gmra.mxu1 %vm340_vm1, %v3049_v8 }
 0xc0d   :  { %v3050_v56 = vadd.f32 %v3045_v59, %v2987_v9  ;;  %v3002_v54 = vadd.f32 %v8928_v39, %v8902_v14 }
 0xc0e   :  { %v2996_v49 = vpop.f32.mrf.mxu0 }
 0xc0f   :  { %v2997_v31 = vadd.f32 %v2996_v49, %v2800_v46  ;;  %8955 = vmatprep.mubr.msk.f32.mxu1 %vm340_vm1, %v3050_v56  ;;  %v3053_v5 = vadd.f32 %v3045_v59, %v3002_v54 }
 0xc10   :  { %v8931_v16 = vpop.f32.mrf.mxu0  ;;  %8956 = vmatmul.mubr.msk.f32.gmra.mxu1 %vm340_vm1, %v3051_v32 }
 0xc11   :  { %v3052_v52 = vadd.f32 %v3045_v59, %v2997_v31  ;;  %v3012_v11 = vadd.f32 %v8931_v16, %v8905_v23 }
 0xc12   :  { %v3006_v27 = vpop.f32.mrf.mxu0 }
 0xc13   :  { %v3007_v17 = vadd.f32 %v3006_v27, %v2810_v50  ;;  %8958 = vmatprep.mubr.msk.f32.mxu1 %vm340_vm1, %v3052_v52  ;;  %v3055_v35 = vadd.f32 %v3045_v59, %v3012_v11  ;;  %v3665_v52 = vld [vmem:[%s13405_s10 + $0xf8] sm:$0xff]  ;;  %v3664_v11 = vld [vmem:[%s13405_s10 + $0xf0] sm:$0xff] }
 0xc14   :  { %v8934_v38 = vpop.f32.mrf.mxu0  ;;  %8959 = vmatmul.mubr.msk.f32.gmra.mxu1 %vm340_vm1, %v3053_v5 }
 0xc15   :  { %v3054_v10 = vadd.f32 %v3045_v59, %v3007_v17  ;;  %v3022_v14 = vadd.f32 %v8934_v38, %v8908_v55  ;;  %v3663_v17 = vld [vmem:[%s13405_s10 + $0xe8] sm:$0xff] }
 0xc16   :  { %v3016_v51 = vpop.f32.mrf.mxu0 }
 0xc17   :  { %v3017_v46 = vadd.f32 %v3016_v51, %v2820_v37  ;;  %8961 = vmatprep.mubr.msk.f32.mxu1 %vm340_vm1, %v3054_v10  ;;  %v3057_v61 = vadd.f32 %v3045_v59, %v3022_v14  ;;  %v3662_v10 = vld [vmem:[%s13405_s10 + $0xe0] sm:$0xff]  ;;  %v586_v51 = vld [vmem:[%s13403_s8 + $0x48] sm:$0xff] }
 0xc18   :  { %v8937_v34 = vpop.f32.mrf.mxu0  ;;  %8962 = vmatmul.mubr.msk.f32.gmra.mxu1 %vm340_vm1, %v3055_v35 }
 0xc19   :  { %v3056_v53 = vadd.f32 %v3045_v59, %v3017_v46  ;;  %v3032_v23 = vadd.f32 %v8937_v34, %v8911_v45  ;;  %v2292_v45 = vadd.f32 %v11516_v6, %v11539_v47  ;;  %v587_v46 = vld [vmem:[%s13403_s8 + $0x50] sm:$0xff]  ;;  %v588_v34 = vld [vmem:[%s13403_s8 + $0x58] sm:$0xff] }
 0xc1a   :  { %v3026_v58 = vpop.f32.mrf.mxu0 }
 0xc1b   :  { %v3027_v50 = vadd.f32 %v3026_v58, %v2830_v33  ;;  %8964 = vmatprep.mubr.msk.f32.mxu1 %vm340_vm1, %v3056_v53  ;;  %v3059_v42 = vadd.f32 %v3045_v59, %v3032_v23  ;;  %v2308_v33 = vmul.f32 0.044715, %v2292_v45  ;;  %v2300_v27 = vmul.f32 0.5, %v2292_v45  ;;  %v589_v53 = vld [vmem:[%s13403_s8 + $0x60] sm:$0xff]  ;;  %v591_v23 = vld [vmem:[%s13403_s8 + $0x70] sm:$0xff]  ;;  %v592_v58 = vld [vmem:[%s13403_s8 + $0x78] sm:$0xff] }
 0xc1c   :  { %v8940_v25 = vpop.f32.mrf.mxu0  ;;  %8965 = vmatmul.mubr.msk.f32.gmra.mxu1 %vm340_vm1, %v3057_v61  ;;  %v590_v61 = vld [vmem:[%s13403_s8 + $0x68] sm:$0xff] }
 0xc1d   :  { %v3058_v63 = vadd.f32 %v3045_v59, %v3027_v50  ;;  %v3042_v55 = vadd.f32 %v8940_v25, %v8914_v0  ;;  %v2316_v43 = vmul.f32 %v2308_v33, %v2292_v45  ;;  %v593_v50 = vld [vmem:[%s13403_s8 + $0x80] sm:$0xff]  ;;  %v594_v25 = vld [vmem:[%s13403_s8 + $0x88] sm:$0xff] }
 0xc1e   :  { %v3036_v21 = vpop.f32.mrf.mxu0 }
 0xc1f   :  { %v3037_v37 = vadd.f32 %v3036_v21, %v2840_v15  ;;  %8967 = vmatprep.mubr.msk.f32.mxu1 %vm340_vm1, %v3058_v63  ;;  %v3061_v44 = vadd.f32 %v3045_v59, %v3042_v55  ;;  %v2324_v9 = vmul.f32 %v2316_v43, %v2292_v45  ;;  %v595_v63 = vld [vmem:[%s13403_s8 + $0x90] sm:$0xff]  ;;  %v597_v55 = vld [vmem:[%s13403_s8 + $0xa0] sm:$0xff]  ;;  %v598_v21 = vld [vmem:[%s13403_s8 + $0xa8] sm:$0xff] }
 0xc20   :  { %8968 = vmatmul.mubr.msk.f32.gmra.mxu1 %vm340_vm1, %v3059_v42  ;;  %v596_v42 = vld [vmem:[%s13403_s8 + $0x98] sm:$0xff] }
 0xc21   :  { %v3060_v8 = vadd.f32 %v3045_v59, %v3037_v37  ;;  %v2332_v15 = vadd.f32 %v2324_v9, %v2292_v45  ;;  %v599_v37 = vld [vmem:[%s13403_s8 + $0xb0] sm:$0xff]  ;;  %v13486_v9 = vld [vmem:[#allocation22_spill] sm:$0xff] }
 0xc22   :  { %v13485_v45 = vld [vmem:[#allocation11_spill] sm:$0xff] }
 0xc23   :  { %8970 = vmatprep.mubr.msk.f32.mxu1 %vm340_vm1, %v3060_v8  ;;  %v2340_v59 = vmul.f32 0.7978846, %v2332_v15  ;;  %v600_v8 = vld [vmem:[%s13403_s8 + $0xb8] sm:$0xff]  ;;  %v13487_v15 = vld [vmem:[#allocation10_spill] sm:$0xff] }
 0xc24   :  { %8971 = vmatmul.mubr.msk.f32.gmra.mxu1 %vm340_vm1, %v3061_v44  ;;  %v13484_v44 = vld [vmem:[#allocation24_spill] sm:$0xff] }
 0xc25   :  { %9627 = vtanh.f32 %v2340_v59  ;;  %v2177_v33 = vmul.f32 %v13485_v45, %v13484_v44  ;;  %v2175_v59 = vmul.f32 %v13487_v15, %v13486_v9  ;;  %v3412_v45 = vpop.permute.xlu1 %3411  ;;  %v3407_v15 = vpop.permute.xlu0 %3406 }
 0xc27   :  { %v2276_v43 = vadd.f32 %v11541_v26, %v2177_v33  ;;  %v13491_v26 = vld [vmem:[#allocation8_spill] sm:$0xff] }
 0xc32   :  { %v9628_v16 = vpop.eup %9627 }
 0xc33   :  { %v2356_v5 = vadd.f32 1.0, %v9628_v16  ;;  %v2266_v16 = vadd.f32 %v11532_v36, %v2175_v59 }
 0xc35   :  { %v2364_v38 = vmul.f32 %v2356_v5, %v2300_v27  ;;  %v13488_v5 = vld [vmem:[#allocation20_spill] sm:$0xff] }
 0xcc8   :  { %v11564_v39 = vpop.f32.mrf.mxu1 }
 0xcca   :  { %v11566_v0 = vpop.f32.mrf.mxu1 }
 0xccc   :  { %v11568_v56 = vpop.f32.mrf.mxu1 }
 0xcce   :  { %v11570_v32 = vpop.f32.mrf.mxu1 }
 0xcd0   :  { %v11572_v54 = vpop.f32.mrf.mxu1 }
 0xcd2   :  { %v11574_v49 = vpop.f32.mrf.mxu1 }
 0xcd4   :  { %v11576_v31 = vpop.f32.mrf.mxu1 }
 0xcd5   :  { %8973 = vmatprep.subr.mxu0 %v11576_v31 }
 0xcd6   :  { %v11579_v47 = vpop.f32.mrf.mxu1  ;;  %8974 = vmatpush3.msra.mxu0 %v11576_v31 }
 0xcd7   :  { %8975 = vmatprep.subr.mxu0 %v11579_v47 }
 0xcd8   :  { %8976 = vmatpush3.msra.mxu0 %v11579_v47 }
 0xcd9   :  { %8977 = vmatprep.subr.mxu0 %v11572_v54 }
 0xcda   :  { %8978 = vmatpush3.msra.mxu0 %v11572_v54 }
 0xcdb   :  { %8979 = vmatprep.subr.mxu0 %v11574_v49 }
 0xcdc   :  { %8980 = vmatpush3.msra.mxu0 %v11574_v49 }
 0xcdd   :  { %8981 = vmatprep.subr.mxu0 %v11568_v56 }
 0xcde   :  { %8982 = vmatpush3.msra.mxu0 %v11568_v56 }
 0xcdf   :  { %8983 = vmatprep.subr.mxu0 %v11570_v32 }
 0xce0   :  { %8984 = vmatpush3.msra.mxu0 %v11570_v32 }
 0xce1   :  { %8985 = vmatprep.subr.mxu0 %v11564_v39 }
 0xce2   :  { %8986 = vmatpush3.msra.mxu0 %v11564_v39 }
 0xce3   :  { %8987 = vmatprep.subr.mxu0 %v11566_v0 }
 0xce4   :  { %8988 = vmatpush3.msra.mxu0 %v11566_v0 }
 0xce5   :  { %8990 = vmatmul.mubr.msk.f32.vlgmr.msra.gmra.mxu0 %vm113_vm0, %v11157_v57  ;;  %9069 = vmatprep.subr.mxu0 %v3665_v52  ;;  %v11617_v57 = vadd.f32 %v11114_v60, %v2364_v38  ;;  %v585_v60 = vld [vmem:[%s13403_s8 + $0x40] sm:$0xff]  ;;  %v11703_v38 = vadd.f32 %v11516_v6, %v2266_v16 }
 0xce6   :  { %9070 = vmatpush3.msra.mxu0 %v3665_v52  ;;  %8992 = vmatprep.mubr.msk.f32.mxu0 %vm113_vm0, %v11168_v30  ;;  %v11697_v52 = vadd.f32 %v11516_v6, %v2276_v43 }
 0xce7   :  { %9071 = vmatprep.subr.mxu0 %v3664_v11  ;;  %9045 = vmatprep.mubr.f32.mxu1 %v585_v60  ;;  %v13490_v60 = vld [vmem:[#allocation17_spill] sm:$0xff] }
 0xce8   :  { %9072 = vmatpush3.msra.mxu0 %v3664_v11  ;;  %v13489_v11 = vld [vmem:[#allocation9_spill] sm:$0xff] }
 0xce9   :  { %8993 = vmatmul.mubr.msk.f32.gmra.mxu0 %vm113_vm0, %v11175_v13  ;;  %9073 = vmatprep.subr.mxu0 %v3663_v17  ;;  %v2173_v27 = vmul.f32 %v13489_v11, %v13488_v5 }
 0xcea   :  { %9074 = vmatpush3.msra.mxu0 %v3663_v17  ;;  %8995 = vmatprep.mubr.msk.f32.mxu0 %vm113_vm0, %v11182_v20 }
 0xceb   :  { %9075 = vmatprep.subr.mxu0 %v3662_v10  ;;  %v2256_v17 = vadd.f32 %v11525_v40, %v2173_v27  ;;  %v2304_v40 = vmul.f32 0.044715, %v11528_v48 }
 0xcec   :  { %9076 = vmatpush3.msra.mxu0 %v3662_v10  ;;  %v2307_v10 = vmul.f32 0.044715, %v11697_v52 }
 0xced   :  { %8996 = vmatmul.mubr.msk.f32.gmra.mxu0 %vm113_vm0, %v11189_v7  ;;  %9133 = vmatprep.subr.mxu0 %v11617_v57 }
 0xcee   :  { %8998 = vmatprep.mubr.msk.f32.mxu0 %vm113_vm0, %v11196_v12 }
 0xcf1   :  { %8999 = vmatmul.mubr.msk.f32.gmra.mxu0 %vm113_vm0, %v11203_v41 }
 0xcf2   :  { %9001 = vmatprep.mubr.msk.f32.mxu0 %vm113_vm0, %v11210_v62 }
 0xcf5   :  { %9002 = vmatmul.mubr.msk.f32.gmra.mxu0 %vm113_vm0, %v11217_v1 }
 0xcf6   :  { %9004 = vmatprep.mubr.msk.f32.mxu0 %vm113_vm0, %v11224_v2 }
 0xcf9   :  { %9005 = vmatmul.mubr.msk.f32.gmra.mxu0 %vm113_vm0, %v11231_v28 }
 0xcfa   :  { %9007 = vmatprep.mubr.msk.f32.mxu0 %vm113_vm0, %v11238_v29 }
 0xcfd   :  { %9008 = vmatmul.mubr.msk.f32.gmra.mxu0 %vm113_vm0, %v11245_v3 }
 0xcfe   :  { %9010 = vmatprep.mubr.msk.f32.mxu0 %vm113_vm0, %v11252_v4 }
 0xd01   :  { %9011 = vmatmul.mubr.msk.f32.gmra.mxu0 %vm113_vm0, %v11259_v19 }
 0xda5   :  { %v8991_v30 = vpop.f32.mrf.mxu0 }
 0xda7   :  { %v3325_v13 = vpop.f32.mrf.mxu0 }
 0xda9   :  { %v8994_v20 = vpop.f32.mrf.mxu0 }
 0xdab   :  { %v3335_v7 = vpop.f32.mrf.mxu0 }
 0xdad   :  { %v8997_v12 = vpop.f32.mrf.mxu0 }
 0xdaf   :  { %v3345_v41 = vpop.f32.mrf.mxu0 }
 0xdb1   :  { %v9000_v62 = vpop.f32.mrf.mxu0 }
 0xdb3   :  { %v3355_v1 = vpop.f32.mrf.mxu0 }
 0xdb5   :  { %v9003_v2 = vpop.f32.mrf.mxu0 }
 0xdb7   :  { %v3365_v28 = vpop.f32.mrf.mxu0 }
 0xdb9   :  { %v9006_v29 = vpop.f32.mrf.mxu0 }
 0xdbb   :  { %v3375_v3 = vpop.f32.mrf.mxu0 }
 0xdbd   :  { %v9009_v4 = vpop.f32.mrf.mxu0 }
 0xdbf   :  { %v3385_v35 = vpop.f32.mrf.mxu0 }
 0xdc1   :  { %v9012_v19 = vpop.f32.mrf.mxu0 }
 0xdc2   :  { %9013 = vmatprep.subr.mxu1 %v9012_v19 }
 0xdc3   :  { %v3395_v14 = vpop.f32.mrf.mxu0  ;;  %9014 = vmatpush3.msra.mxu1 %v9012_v19 }
 0xdc4   :  { %9015 = vmatprep.subr.mxu1 %v3395_v14 }
 0xdc5   :  { %9016 = vmatpush3.msra.mxu1 %v3395_v14  ;;  %v3957_v14 = vld [vmem:[%s13405_s10 + $0x108] sm:$0xff] }
 0xdc6   :  { %9017 = vmatprep.subr.mxu1 %v9009_v4 }
 0xdc7   :  { %9018 = vmatpush3.msra.mxu1 %v9009_v4  ;;  %v2302_v4 = vmul.f32 0.044715, %v11521_v18 }
 0xdc8   :  { %9019 = vmatprep.subr.mxu1 %v3385_v35 }
 0xdc9   :  { %9020 = vmatpush3.msra.mxu1 %v3385_v35  ;;  %v2312_v35 = vmul.f32 %v2304_v40, %v11528_v48 }
 0xdca   :  { %9021 = vmatprep.subr.mxu1 %v9006_v29 }
 0xdcb   :  { %9022 = vmatpush3.msra.mxu1 %v9006_v29  ;;  %v3959_v29 = vld [vmem:[%s13405_s10 + $0x118] sm:$0xff] }
 0xdcc   :  { %9023 = vmatprep.subr.mxu1 %v3375_v3 }
 0xdcd   :  { %9024 = vmatpush3.msra.mxu1 %v3375_v3  ;;  %v3958_v3 = vld [vmem:[%s13405_s10 + $0x110] sm:$0xff] }
 0xdce   :  { %9025 = vmatprep.subr.mxu1 %v9003_v2 }
 0xdcf   :  { %9026 = vmatpush3.msra.mxu1 %v9003_v2 }
 0xdd0   :  { %9027 = vmatprep.subr.mxu1 %v3365_v28 }
 0xdd1   :  { %9028 = vmatpush3.msra.mxu1 %v3365_v28 }
 0xdd2   :  { %9029 = vmatprep.subr.mxu1 %v9000_v62 }
 0xdd3   :  { %9030 = vmatpush3.msra.mxu1 %v9000_v62  ;;  %v11717_v62 = vpop.f32.mrf.mxu1 }
 0xdd4   :  { %9031 = vmatprep.subr.mxu1 %v3355_v1 }
 0xdd5   :  { %9032 = vmatpush3.msra.mxu1 %v3355_v1 }
 0xdd6   :  { %9033 = vmatprep.subr.mxu1 %v8997_v12 }
 0xdd7   :  { %9034 = vmatpush3.msra.mxu1 %v8997_v12  ;;  %v2315_v12 = vmul.f32 %v2307_v10, %v11697_v52 }
 0xdd8   :  { %9035 = vmatprep.subr.mxu1 %v3345_v41 }
 0xdd9   :  { %9036 = vmatpush3.msra.mxu1 %v3345_v41  ;;  %v2323_v28 = vmul.f32 %v2315_v12, %v11697_v52 }
 0xdda   :  { %9037 = vmatprep.subr.mxu1 %v8994_v20 }
 0xddb   :  { %9038 = vmatpush3.msra.mxu1 %v8994_v20  ;;  %v11711_v20 = vadd.f32 %v11516_v6, %v2256_v17  ;;  %v3422_v17 = vpop.permute.xlu1 %3421 }
 0xddc   :  { %9039 = vmatprep.subr.mxu1 %v3335_v7 }
 0xddd   :  { %9040 = vmatpush3.msra.mxu1 %v3335_v7  ;;  %v2305_v7 = vmul.f32 0.044715, %v11703_v38  ;;  %v2303_v2 = vmul.f32 0.044715, %v11711_v20 }
 0xdde   :  { %9041 = vmatprep.subr.mxu1 %v8991_v30 }
 0xddf   :  { %9042 = vmatpush3.msra.mxu1 %v8991_v30  ;;  %v2171_v30 = vmul.f32 %v13491_v26, %v13490_v60  ;;  %v3956_v26 = vld [vmem:[%s13405_s10 + $0x100] sm:$0xff] }
 0xde0   :  { %9043 = vmatprep.subr.mxu1 %v3325_v13 }
 0xde1   :  { %9044 = vmatpush3.msra.mxu1 %v3325_v13  ;;  %v2306_v13 = vmul.f32 0.044715, %v11535_v24  ;;  %v2246_v36 = vadd.f32 %v11518_v22, %v2171_v30  ;;  %v2313_v22 = vmul.f32 %v2305_v7, %v11703_v38  ;;  %v3417_v30 = vpop.permute.xlu0 %3416  ;;  %v3432_v7 = vpop.permute.xlu1 %3431 }
 0xde2   :  { %9046 = vmatmul.mubr.f32.vlgmr.msra.gmra.mxu1 %v586_v51  ;;  %9101 = vmatprep.subr.mxu1 %v3959_v29 }
 0xde3   :  { %9048 = vmatprep.mubr.f32.mxu1 %v587_v46  ;;  %v2314_v41 = vmul.f32 %v2306_v13, %v11535_v24  ;;  %v11720_v1 = vadd.f32 %v11516_v6, %v2246_v36  ;;  %v11733_v6 = vpop.f32.mrf.mxu1  ;;  %9102 = vmatpush3.msra.mxu1 %v3959_v29  ;;  %v2311_v46 = vmul.f32 %v2303_v2, %v11711_v20  ;;  %v11774_v29 = vld [vmem:[%s13408_s13 + $0x4] ss:$0 sm:$0xff] }
 0xde4   :  { %9103 = vmatprep.subr.mxu1 %v3958_v3 }
 0xde5   :  { %v2322_v19 = vmul.f32 %v2314_v41, %v11535_v24  ;;  %v2301_v51 = vmul.f32 0.044715, %v11720_v1  ;;  %9104 = vmatpush3.msra.mxu1 %v3958_v3  ;;  %v3427_v40 = vpop.permute.xlu0 %3426 }
 0xde6   :  { %9049 = vmatmul.mubr.f32.gmra.mxu1 %v588_v34  ;;  %v2331_v34 = vadd.f32 %v2323_v28, %v11697_v52  ;;  %9105 = vmatprep.subr.mxu1 %v3957_v14 }
 0xde7   :  { %9051 = vmatprep.mubr.f32.mxu1 %v589_v53  ;;  %v2321_v53 = vmul.f32 %v2313_v22, %v11703_v38  ;;  %9106 = vmatpush3.msra.mxu1 %v3957_v14  ;;  %v3485_v22 = vmul.f32 %v11564_v39, %v3412_v45  ;;  %v3442_v14 = vpop.permute.xlu1 %3441 }
 0xde8   :  { %9107 = vmatprep.subr.mxu1 %v3956_v26 }
 0xde9   :  { %9108 = vmatpush3.msra.mxu1 %v3956_v26 }
 0xdea   :  { %9052 = vmatmul.mubr.f32.gmra.mxu1 %v590_v61  ;;  %v2310_v61 = vmul.f32 %v2302_v4, %v11521_v18 }
 0xdeb   :  { %9054 = vmatprep.mubr.f32.mxu1 %v591_v23  ;;  %v11744_v23 = vpop.f32.mrf.mxu1 }
 0xdec   :  { %v2318_v44 = vmul.f32 %v2310_v61, %v11521_v18 }
 0xdee   :  { %9055 = vmatmul.mubr.f32.gmra.mxu1 %v592_v58  ;;  %v2330_v58 = vadd.f32 %v2322_v19, %v11535_v24  ;;  %v2326_v5 = vadd.f32 %v2318_v44, %v11521_v18  ;;  %v3484_v19 = vmul.f32 %v3407_v15, %v11566_v0 }
 0xdef   :  { %9057 = vmatprep.mubr.f32.mxu1 %v593_v50  ;;  %v2320_v50 = vmul.f32 %v2312_v35, %v11528_v48 }
 0xdf0   :  { %v2334_v60 = vmul.f32 0.7978846, %v2326_v5 }
 0xdf2   :  { %9058 = vmatmul.mubr.f32.gmra.mxu1 %v594_v25  ;;  %v2309_v25 = vmul.f32 %v2301_v51, %v11720_v1 }
 0xdf3   :  { %9060 = vmatprep.mubr.f32.mxu1 %v595_v63  ;;  %v2339_v63 = vmul.f32 0.7978846, %v2331_v34 }
 0xdf4   :  { %v2317_v9 = vmul.f32 %v2309_v25, %v11720_v1 }
 0xdf5   :  { %9629 = vtanh.f32 %v2339_v63 }
 0xdf6   :  { %9061 = vmatmul.mubr.f32.gmra.mxu1 %v596_v42  ;;  %v2329_v42 = vadd.f32 %v2321_v53, %v11703_v38  ;;  %v2325_v27 = vadd.f32 %v2317_v9, %v11720_v1 }
 0xdf7   :  { %9063 = vmatprep.mubr.f32.mxu1 %v597_v55  ;;  %v2319_v55 = vmul.f32 %v2311_v46, %v11711_v20  ;;  %v2299_v46 = vmul.f32 0.5, %v11697_v52  ;;  %v3486_v52 = vmul.f32 %v3417_v30, %v11570_v32  ;;  %v9835_v32 = vld [vmem:[%s13401_s6 + $0x30] sm:$0xff] }
 0xdf8   :  { %v2337_v33 = vmul.f32 0.7978846, %v2329_v42  ;;  %v2333_v13 = vmul.f32 0.7978846, %v2325_v27  ;;  %v2298_v42 = vmul.f32 0.5, %v11535_v24  ;;  %v3489_v24 = vmul.f32 %v11572_v54, %v3432_v7 }
 0xdf9   :  { %v2327_v43 = vadd.f32 %v2319_v55, %v11711_v20  ;;  %v2296_v27 = vmul.f32 0.5, %v11528_v48  ;;  %v3488_v54 = vmul.f32 %v3427_v40, %v11574_v49  ;;  %v3491_v49 = vmul.f32 %v11576_v31, %v3442_v14  ;;  %v9837_v40 = vld [vmem:[%s13401_s6 + $0x20] sm:$0xff] }
 0xdfa   :  { %9064 = vmatmul.mubr.f32.gmra.mxu1 %v598_v21  ;;  %v11751_v21 = vpop.f32.mrf.mxu1 }
 0xdfb   :  { %9066 = vmatprep.mubr.f32.mxu1 %v599_v37  ;;  %v2338_v37 = vmul.f32 0.7978846, %v2330_v58  ;;  %v2335_v11 = vmul.f32 0.7978846, %v2327_v43  ;;  %v3487_v58 = vmul.f32 %v11568_v56, %v3422_v17 }
 0xdfc   :  { %v11757_v59 = vpop.f32.mrf.mxu1 }
 0xdfd   :  { %9631 = vtanh.f32 %v2338_v37 }
 0xdfe   :  { %9067 = vmatmul.mubr.f32.gmra.mxu1 %v600_v8  ;;  %v2328_v8 = vadd.f32 %v2320_v50, %v11528_v48  ;;  %9633 = vtanh.f32 %v2337_v33  ;;  %v11761_v10 = vpop.f32.mrf.mxu1  ;;  %v3437_v50 = vpop.permute.xlu0 %3436  ;;  %v2297_v33 = vmul.f32 0.5, %v11703_v38 }
 0xdff   :  { %v3490_v31 = vmul.f32 %v3437_v50, %v11579_v47 }
 0xe00   :  { %v2336_v16 = vmul.f32 0.7978846, %v2328_v8  ;;  %v11766_v36 = vpop.f32.mrf.mxu1 }
 0xe02   :  { %9635 = vtanh.f32 %v2336_v16  ;;  %v9630_v12 = vpop.eup %9629  ;;  %v11768_v41 = vpop.f32.mrf.mxu1 }
 0xe03   :  { %9637 = vtanh.f32 %v2335_v11  ;;  %v2355_v3 = vadd.f32 1.0, %v9630_v12  ;;  %v3452_v16 = vpop.permute.xlu1 %3451  ;;  %v9836_v12 = vld [vmem:[%s13401_s6 + $0x28] sm:$0xff] }
 0xe04   :  { %9639 = vtanh.f32 %v2334_v60 }
 0xe05   :  { %9641 = vtanh.f32 %v2333_v13  ;;  %v2363_v63 = vmul.f32 %v2355_v3, %v2299_v46  ;;  %v3447_v13 = vpop.permute.xlu0 %3446 }
 0xe07   :  { %v2371_v38 = vadd.f32 %v9835_v32, %v2363_v63  ;;  %v3462_v14 = vpop.permute.xlu1 %3461 }
 0xe09   :  { %v3457_v47 = vpop.permute.xlu0 %3456 }
 0xe0a   :  { %v9632_v2 = vpop.eup %9631 }
 0xe0b   :  { %v9634_v4 = vpop.eup %9633  ;;  %v2354_v34 = vadd.f32 1.0, %v9632_v2 }
 0xe0c   :  { %v2353_v55 = vadd.f32 1.0, %v9634_v4 }
 0xe0d   :  { %v2362_v45 = vmul.f32 %v2354_v34, %v2298_v42  ;;  %v3467_v32 = vpop.permute.xlu0 %3466 }
 0xe0e   :  { %v2361_v11 = vmul.f32 %v2353_v55, %v2297_v33  ;;  %v9839_v55 = vld [vmem:[%s13401_s6 + $0x10] sm:$0xff]  ;;  %v3495_v33 = vmul.f32 %v11744_v23, %v3462_v14 }
 0xe0f   :  { %v9636_v53 = vpop.eup %9635  ;;  %v2370_v2 = vadd.f32 %v9836_v12, %v2362_v45  ;;  %v9852_v14 = vld [vmem:[%s13402_s7 + $0x50] sm:$0xff] }
 0xe10   :  { %v9638_v37 = vpop.eup %9637  ;;  %v2352_v43 = vadd.f32 1.0, %v9636_v53 }
 0xe11   :  { %v9640_v56 = vpop.eup %9639  ;;  %v2351_v17 = vadd.f32 1.0, %v9638_v37 }
 0xe12   :  { %v9642_v60 = vpop.eup %9641  ;;  %v2360_v48 = vmul.f32 %v2352_v43, %v2296_v27 }
 0xea2   :  { %v9047_v28 = vpop.f32.mrf.mxu1 }
 0xea3   :  { %v3572_v35 = vadd.f32 %v9047_v28, %v3485_v22  ;;  %v2295_v22 = vmul.f32 0.5, %v11711_v20  ;;  %v2350_v28 = vadd.f32 1.0, %v9640_v56  ;;  %v2294_v20 = vmul.f32 0.5, %v11521_v18  ;;  %v3472_v56 = vpop.permute.xlu1 %3471 }
 0xea4   :  { %v3566_v51 = vpop.f32.mrf.mxu1  ;;  %v2293_v18 = vmul.f32 0.5, %v11720_v1  ;;  %v3492_v1 = vmul.f32 %v3447_v13, %v11733_v6  ;;  %v3497_v27 = vmul.f32 %v11757_v59, %v3472_v56  ;;  %v9875_v56 = vld [vmem:[%s13399_s4 + $0x8] sm:$0xff] }
 0xea5   :  { %v3647_v61 = vadd.f32 %v11774_v29, %v3572_v35  ;;  %v3567_v39 = vadd.f32 %v3566_v51, %v3484_v19  ;;  %v2369_v35 = vadd.f32 %v9837_v40, %v2361_v11  ;;  %v2359_v19 = vmul.f32 %v2351_v17, %v2295_v22  ;;  %v4870_v11 = vld [vmem:[%s13405_s10 + $0x8] sm:$0xff]  ;;  %v9844_v40 = vld [vmem:[%s13402_s7 + $0x10] sm:$0xff] }
 0xea6   :  { %v9050_v25 = vpop.f32.mrf.mxu1  ;;  %v2349_v51 = vadd.f32 1.0, %v9642_v60 }
 0xea7   :  { %v3646_v0 = vadd.f32 %v11774_v29, %v3567_v39  ;;  %v3582_v8 = vadd.f32 %v9050_v25, %v3487_v58  ;;  %3963 = vrot.lane.b32.xlu1 %v3647_v61, %s9914_s18  ;;  %v2358_v58 = vmul.f32 %v2350_v28, %v2294_v20  ;;  %v3493_v25 = vmul.f32 %v11717_v62, %v3452_v16  ;;  %v3482_v13 = vpop.permute.xlu1 %3481  ;;  %v9847_v20 = vld [vmem:[%s13402_s7 + $0x28] sm:$0xff] }
 0xea8   :  { %v3576_v44 = vpop.f32.mrf.mxu1  ;;  %v2367_v37 = vadd.f32 %v9839_v55, %v2359_v19  ;;  %v3494_v16 = vmul.f32 %v3457_v47, %v11751_v21  ;;  %v9846_v19 = vld [vmem:[%s13402_s7 + $0x20] sm:$0xff]  ;;  %v9861_v47 = vld [vmem:[%s13402_s7 + $0x98] sm:$0xff]  ;;  %v9863_v55 = vld [vmem:[%s13402_s7 + $0xa8] sm:$0xff] }
 0xea9   :  { %v3649_v9 = vadd.f32 %v11774_v29, %v3582_v8  ;;  %v3577_v15 = vadd.f32 %v3576_v44, %v3486_v52  ;;  %3961 = vrot.lane.b32.xlu0 %v3646_v0, %s9914_s18  ;;  %9077 = vmatprep.mubr.msk.f32.mxu0 %vm340_vm1, %v3646_v0  ;;  %v2357_v0 = vmul.f32 %v2349_v51, %v2293_v18  ;;  %v9840_v44 = vld [vmem:[%s13401_s6 + $0x8] sm:$0xff]  ;;  %v9848_v51 = vld [vmem:[%s13402_s7 + $0x30] sm:$0xff]  ;;  %v9857_v18 = vld [vmem:[%s13402_s7 + $0x78] sm:$0xff] }
 0xeaa   :  { %v9053_v5 = vpop.f32.mrf.mxu1  ;;  %9078 = vmatmul.mubr.msk.f32.vlgmr.msra.gmra.mxu0 %vm340_vm1, %v3647_v61  ;;  %v9838_v61 = vld [vmem:[%s13401_s6 + $0x18] sm:$0xff]  ;;  %v2366_v45 = vadd.f32 %v9840_v44, %v2358_v58  ;;  %v9856_v58 = vld [vmem:[%s13402_s7 + $0x70] sm:$0xff]  ;;  %v9870_v44 = vld [vmem:[%s13402_s7 + $0xe0] sm:$0xff] }
 0xeab   :  { %v3648_v26 = vadd.f32 %v11774_v29, %v3577_v15  ;;  %v3592_v30 = vadd.f32 %v9053_v5, %v3489_v24  ;;  %9134 = vmatpush3.msra.mxu0 %v11617_v57  ;;  %3967 = vrot.lane.b32.xlu1 %v3649_v9, %s9914_s18  ;;  %v2368_v39 = vadd.f32 %v9838_v61, %v2360_v48  ;;  %v9841_v15 = vld [vmem:[%s13401_s6] sm:$0xff] }
 0xeac   :  { %9135 = vmatprep.subr.mxu0 %v2371_v38  ;;  %v3586_v7 = vpop.f32.mrf.mxu1  ;;  %v2365_v24 = vadd.f32 %v9841_v15, %v2357_v0  ;;  %v9854_v61 = vld [vmem:[%s13402_s7 + $0x60] sm:$0xff]  ;;  %v9865_v0 = vld [vmem:[%s13402_s7 + $0xb8] sm:$0xff] }
 0xead   :  { %v3651_v3 = vadd.f32 %v11774_v29, %v3592_v30  ;;  %v3587_v4 = vadd.f32 %v3586_v7, %v3488_v54  ;;  %9136 = vmatpush3.msra.mxu0 %v2371_v38  ;;  %3965 = vrot.lane.b32.xlu0 %v3648_v26, %s9914_s18  ;;  %v3499_v7 = vmul.f32 %v11766_v36, %v3482_v13  ;;  %v9877_v15 = vld [vmem:[%s13399_s4 + $0x18] sm:$0xff] }
 0xeae   :  { %9080 = vmatprep.mubr.msk.f32.mxu0 %vm340_vm1, %v3648_v26  ;;  %9137 = vmatprep.subr.mxu0 %v2370_v2  ;;  %v9056_v57 = vpop.f32.mrf.mxu1  ;;  %v3496_v26 = vmul.f32 %v3467_v32, %v11761_v10  ;;  %v3477_v10 = vpop.permute.xlu0 %3476  ;;  %v9882_v32 = vld [vmem:[%s13399_s4 + $0x40] sm:$0xff] }
 0xeaf   :  { %v3650_v46 = vadd.f32 %v11774_v29, %v3587_v4  ;;  %v3602_v34 = vadd.f32 %v9056_v57, %v3491_v49  ;;  %9081 = vmatmul.mubr.msk.f32.gmra.mxu0 %vm340_vm1, %v3649_v9  ;;  %3971 = vrot.lane.b32.xlu1 %v3651_v3, %s9914_s18  ;;  %v3498_v22 = vmul.f32 %v3477_v10, %v11768_v41  ;;  %v9842_v41 = vld [vmem:[%s13402_s7] sm:$0xff]  ;;  %v9889_v10 = vld [vmem:[%s13399_s4 + $0x78] sm:$0xff] }
 0xeb0   :  { %9138 = vmatpush3.msra.mxu0 %v2370_v2  ;;  %v3596_v53 = vpop.f32.mrf.mxu1 }
 0xeb1   :  { %v3653_v63 = vadd.f32 %v11774_v29, %v3602_v34  ;;  %9139 = vmatprep.subr.mxu0 %v2369_v35  ;;  %v3597_v42 = vadd.f32 %v3596_v53, %v3490_v31  ;;  %3969 = vrot.lane.b32.xlu0 %v3650_v46, %s9914_s18  ;;  %v9850_v34 = vld [vmem:[%s13402_s7 + $0x40] sm:$0xff]  ;;  %v9851_v31 = vld [vmem:[%s13402_s7 + $0x48] sm:$0xff]  ;;  %v9853_v53 = vld [vmem:[%s13402_s7 + $0x58] sm:$0xff] }
 0xeb2   :  { %9140 = vmatpush3.msra.mxu0 %v2369_v35  ;;  %9083 = vmatprep.mubr.msk.f32.mxu0 %vm340_vm1, %v3650_v46  ;;  %v9059_v50 = vpop.f32.mrf.mxu1  ;;  %v9845_v35 = vld [vmem:[%s13402_s7 + $0x18] sm:$0xff] }
 0xeb3   :  { %v3652_v62 = vadd.f32 %v11774_v29, %v3597_v42  ;;  %9141 = vmatprep.subr.mxu0 %v2368_v39  ;;  %v3612_v8 = vadd.f32 %v9059_v50, %v3493_v25  ;;  %9084 = vmatmul.mubr.msk.f32.gmra.mxu0 %vm340_vm1, %v3651_v3  ;;  %v9849_v46 = vld [vmem:[%s13402_s7 + $0x38] sm:$0xff]  ;;  %v9858_v25 = vld [vmem:[%s13402_s7 + $0x80] sm:$0xff]  ;;  %v9860_v42 = vld [vmem:[%s13402_s7 + $0x90] sm:$0xff] }
 0xeb4   :  { %9142 = vmatpush3.msra.mxu0 %v2368_v39  ;;  %3975 = vrot.lane.b32.xlu1 %v3653_v63, %s9914_s18  ;;  %v3606_v52 = vpop.f32.mrf.mxu1  ;;  %v9855_v39 = vld [vmem:[%s13402_s7 + $0x68] sm:$0xff]  ;;  %v9862_v50 = vld [vmem:[%s13402_s7 + $0xa0] sm:$0xff] }
 0xeb5   :  { %v3655_v43 = vadd.f32 %v11774_v29, %v3612_v8  ;;  %9143 = vmatprep.subr.mxu0 %v2367_v37  ;;  %v3607_v6 = vadd.f32 %v3606_v52, %v3492_v1  ;;  %3973 = vrot.lane.b32.xlu0 %v3652_v62, %s9914_s18  ;;  %v9866_v1 = vld [vmem:[%s13402_s7 + $0xc0] sm:$0xff]  ;;  %v9868_v8 = vld [vmem:[%s13402_s7 + $0xd0] sm:$0xff]  ;;  %v9869_v52 = vld [vmem:[%s13402_s7 + $0xd8] sm:$0xff] }
 0xeb6   :  { %9144 = vmatpush3.msra.mxu0 %v2367_v37  ;;  %9086 = vmatprep.mubr.msk.f32.mxu0 %vm340_vm1, %v3652_v62  ;;  %v9062_v9 = vpop.f32.mrf.mxu1  ;;  %v9864_v37 = vld [vmem:[%s13402_s7 + $0xb0] sm:$0xff]  ;;  %v9867_v62 = vld [vmem:[%s13402_s7 + $0xc8] sm:$0xff] }
 0xeb7   :  { %v3654_v23 = vadd.f32 %v11774_v29, %v3607_v6  ;;  %9145 = vmatprep.subr.mxu0 %v2366_v45  ;;  %v3622_v5 = vadd.f32 %v9062_v9, %v3495_v33  ;;  %9087 = vmatmul.mubr.msk.f32.gmra.mxu0 %vm340_vm1, %v3653_v63  ;;  %v9859_v63 = vld [vmem:[%s13402_s7 + $0x88] sm:$0xff]  ;;  %v9872_v33 = vld [vmem:[%s13402_s7 + $0xf0] sm:$0xff]  ;;  %v9874_v6 = vld [vmem:[%s13399_s4] sm:$0xff] }
 0xeb8   :  { %9146 = vmatpush3.msra.mxu0 %v2366_v45  ;;  %3979 = vrot.lane.b32.xlu1 %v3655_v43, %s9914_s18  ;;  %v3616_v38 = vpop.f32.mrf.mxu1  ;;  %v9871_v45 = vld [vmem:[%s13402_s7 + $0xe8] sm:$0xff]  ;;  %v9876_v9 = vld [vmem:[%s13399_s4 + $0x10] sm:$0xff] }
 0xeb9   :  { %v3657_v17 = vadd.f32 %v11774_v29, %v3622_v5  ;;  %9147 = vmatprep.subr.mxu0 %v2365_v24  ;;  %v3617_v21 = vadd.f32 %v3616_v38, %v3494_v16  ;;  %3977 = vrot.lane.b32.xlu0 %v3654_v23, %s9914_s18  ;;  %v9879_v16 = vld [vmem:[%s13399_s4 + $0x28] sm:$0xff]  ;;  %v9881_v5 = vld [vmem:[%s13399_s4 + $0x38] sm:$0xff] }
 0xeba   :  { %9148 = vmatpush3.msra.mxu0 %v2365_v24  ;;  %9089 = vmatprep.mubr.msk.f32.mxu0 %vm340_vm1, %v3654_v23  ;;  %v9065_v60 = vpop.f32.mrf.mxu1  ;;  %v9878_v24 = vld [vmem:[%s13399_s4 + $0x20] sm:$0xff]  ;;  %v9880_v23 = vld [vmem:[%s13399_s4 + $0x30] sm:$0xff] }
 0xebb   :  { %v3656_v30 = vadd.f32 %v11774_v29, %v3617_v21  ;;  %v3632_v54 = vadd.f32 %v9065_v60, %v3497_v27  ;;  %9090 = vmatmul.mubr.msk.f32.gmra.mxu0 %vm340_vm1, %v3655_v43  ;;  %9261 = vmatprep.subr.mxu0 %v4870_v11  ;;  %v9873_v43 = vld [vmem:[%s13402_s7 + $0xf8] sm:$0xff]  ;;  %v9883_v27 = vld [vmem:[%s13399_s4 + $0x48] sm:$0xff] }
 0xebc   :  { %3983 = vrot.lane.b32.xlu1 %v3657_v17, %s9914_s18  ;;  %v3626_v59 = vpop.f32.mrf.mxu1 }
 0xebd   :  { %v3659_v12 = vadd.f32 %v11774_v29, %v3632_v54  ;;  %v3627_v2 = vadd.f32 %v3626_v59, %v3496_v26  ;;  %3981 = vrot.lane.b32.xlu0 %v3656_v30, %s9914_s18  ;;  %9092 = vmatprep.mubr.msk.f32.mxu0 %vm340_vm1, %v3656_v30  ;;  %v9885_v26 = vld [vmem:[%s13399_s4 + $0x58] sm:$0xff]  ;;  %v9886_v30 = vld [vmem:[%s13399_s4 + $0x60] sm:$0xff]  ;;  %v9887_v59 = vld [vmem:[%s13399_s4 + $0x68] sm:$0xff] }
 0xebe   :  { %v9068_v48 = vpop.f32.mrf.mxu1 }
 0xebf   :  { %v3658_v28 = vadd.f32 %v11774_v29, %v3627_v2  ;;  %v3642_v3 = vadd.f32 %v9068_v48, %v3499_v7  ;;  %9093 = vmatmul.mubr.msk.f32.gmra.mxu0 %vm340_vm1, %v3657_v17  ;;  %v9884_v17 = vld [vmem:[%s13399_s4 + $0x50] sm:$0xff]  ;;  %v4466_v48 = vld [vmem:[%s13405_s10 + $0xd8] sm:$0xff] }
 0xec0   :  { %3987 = vrot.lane.b32.xlu1 %v3659_v12, %s9914_s18  ;;  %v3636_v4 = vpop.f32.mrf.mxu1  ;;  %v9888_v7 = vld [vmem:[%s13399_s4 + $0x70] sm:$0xff]  ;;  %9197 = vmatprep.subr.mxu1 %v4466_v48 }
 0xec1   :  { %v3661_v36 = vadd.f32 %v11774_v29, %v3642_v3  ;;  %v3637_v49 = vadd.f32 %v3636_v4, %v3498_v22  ;;  %3985 = vrot.lane.b32.xlu0 %v3658_v28, %s9914_s18  ;;  %9095 = vmatprep.mubr.msk.f32.mxu0 %vm340_vm1, %v3658_v28  ;;  %v4465_v3 = vld [vmem:[%s13405_s10 + $0xd0] sm:$0xff]  ;;  %v4464_v4 = vld [vmem:[%s13405_s10 + $0xc8] sm:$0xff] }
 0xec3   :  { %v3660_v57 = vadd.f32 %v11774_v29, %v3637_v49  ;;  %9096 = vmatmul.mubr.msk.f32.gmra.mxu0 %vm340_vm1, %v3659_v12  ;;  %v9843_v29 = vld [vmem:[%s13402_s7 + $0x8] sm:$0xff]  ;;  %v4463_v49 = vld [vmem:[%s13405_s10 + $0xc0] sm:$0xff] }
 0xec4   :  { %3991 = vrot.lane.b32.xlu1 %v3661_v36, %s9914_s18 }
 0xec5   :  { %3989 = vrot.lane.b32.xlu0 %v3660_v57, %s9914_s18  ;;  %9098 = vmatprep.mubr.msk.f32.mxu0 %vm340_vm1, %v3660_v57 }
 0xec7   :  { %9099 = vmatmul.mubr.msk.f32.gmra.mxu0 %vm340_vm1, %v3661_v36 }
 0xec8   :  { %9149 = vmatprep.mubr.msk.f32.mxu0 %vm113_vm0, %v9842_v41 }
 0xecb   :  { %9150 = vmatmul.mubr.msk.f32.vlgmr.msra.gmra.mxu0 %vm113_vm0, %v9843_v29 }
 0xecc   :  { %9152 = vmatprep.mubr.msk.f32.mxu0 %vm113_vm0, %v9844_v40  ;;  %9262 = vmatpush3.msra.mxu0 %v4870_v11 }
 0xecf   :  { %9153 = vmatmul.mubr.msk.f32.gmra.mxu0 %vm113_vm0, %v9845_v35 }
 0xed0   :  { %9155 = vmatprep.mubr.msk.f32.mxu0 %vm113_vm0, %v9846_v19  ;;  %v12094_v19 = vld [vmem:[%s13405_s10 + $0xb8] sm:$0xff] }
 0xed3   :  { %9156 = vmatmul.mubr.msk.f32.gmra.mxu0 %vm113_vm0, %v9847_v20  ;;  %v5315_v20 = vld [vmem:[%s13405_s10 + $0x138] sm:$0xff] }
 0xed4   :  { %9158 = vmatprep.mubr.msk.f32.mxu0 %vm113_vm0, %v9848_v51  ;;  %9319 = vmatprep.subr.mxu0 %v5315_v20  ;;  %v5314_v51 = vld [vmem:[%s13405_s10 + $0x130] sm:$0xff] }
 0xed7   :  { %9159 = vmatmul.mubr.msk.f32.gmra.mxu0 %vm113_vm0, %v9849_v46  ;;  %v5313_v46 = vld [vmem:[%s13405_s10 + $0x128] sm:$0xff] }
 0xed8   :  { %9161 = vmatprep.mubr.msk.f32.mxu0 %vm113_vm0, %v9850_v34  ;;  %v5312_v34 = vld [vmem:[%s13405_s10 + $0x120] sm:$0xff] }
 0xedb   :  { %9162 = vmatmul.mubr.msk.f32.gmra.mxu0 %vm113_vm0, %v9851_v31  ;;  %v5263_v31 = vld [vmem:[%s13400_s5] sm:$0xff] }
 0xedc   :  { %9164 = vmatprep.mubr.msk.f32.mxu0 %vm113_vm0, %v9852_v14  ;;  %v5264_v14 = vld [vmem:[%s13400_s5 + $0x8] sm:$0xff] }
 0xedf   :  { %9165 = vmatmul.mubr.msk.f32.gmra.mxu0 %vm113_vm0, %v9853_v53  ;;  %v5265_v53 = vld [vmem:[%s13400_s5 + $0x10] sm:$0xff] }
 0xee0   :  { %9167 = vmatprep.mubr.msk.f32.mxu0 %vm113_vm0, %v9854_v61  ;;  %v5266_v61 = vld [vmem:[%s13400_s5 + $0x18] sm:$0xff] }
 0xee3   :  { %9168 = vmatmul.mubr.msk.f32.gmra.mxu0 %vm113_vm0, %v9855_v39  ;;  %v5267_v39 = vld [vmem:[%s13400_s5 + $0x20] sm:$0xff] }
 0xee4   :  { %9170 = vmatprep.mubr.msk.f32.mxu0 %vm113_vm0, %v9856_v58  ;;  %v5268_v58 = vld [vmem:[%s13400_s5 + $0x28] sm:$0xff] }
 0xee7   :  { %9171 = vmatmul.mubr.msk.f32.gmra.mxu0 %vm113_vm0, %v9857_v18  ;;  %v5269_v18 = vld [vmem:[%s13400_s5 + $0x30] sm:$0xff] }
 0xee8   :  { %9173 = vmatprep.mubr.msk.f32.mxu0 %vm113_vm0, %v9858_v25  ;;  %v5270_v25 = vld [vmem:[%s13400_s5 + $0x38] sm:$0xff] }
 0xeeb   :  { %9174 = vmatmul.mubr.msk.f32.gmra.mxu0 %vm113_vm0, %v9859_v63  ;;  %v5271_v63 = vld [vmem:[%s13400_s5 + $0x40] sm:$0xff] }
 0xeec   :  { %9176 = vmatprep.mubr.msk.f32.mxu0 %vm113_vm0, %v9860_v42  ;;  %v5272_v42 = vld [vmem:[%s13400_s5 + $0x48] sm:$0xff] }
 0xeef   :  { %9177 = vmatmul.mubr.msk.f32.gmra.mxu0 %vm113_vm0, %v9861_v47 }
 0xef0   :  { %9179 = vmatprep.mubr.msk.f32.mxu0 %vm113_vm0, %v9862_v50  ;;  %v5273_v50 = vld [vmem:[%s13400_s5 + $0x50] sm:$0xff] }
 0xef3   :  { %9180 = vmatmul.mubr.msk.f32.gmra.mxu0 %vm113_vm0, %v9863_v55 }
 0xef4   :  { %9182 = vmatprep.mubr.msk.f32.mxu0 %vm113_vm0, %v9864_v37  ;;  %v5274_v37 = vld [vmem:[%s13400_s5 + $0x58] sm:$0xff] }
 0xef7   :  { %9183 = vmatmul.mubr.msk.f32.gmra.mxu0 %vm113_vm0, %v9865_v0 }
 0xef8   :  { %9185 = vmatprep.mubr.msk.f32.mxu0 %vm113_vm0, %v9866_v1  ;;  %v5275_v1 = vld [vmem:[%s13400_s5 + $0x60] sm:$0xff] }
 0xefb   :  { %9186 = vmatmul.mubr.msk.f32.gmra.mxu0 %vm113_vm0, %v9867_v62  ;;  %v5276_v62 = vld [vmem:[%s13400_s5 + $0x68] sm:$0xff] }
 0xefc   :  { %9188 = vmatprep.mubr.msk.f32.mxu0 %vm113_vm0, %v9868_v8  ;;  %v5741_v8 = vld [vmem:[%s13405_s10 + $0x178] sm:$0xff] }
 0xeff   :  { %9189 = vmatmul.mubr.msk.f32.gmra.mxu0 %vm113_vm0, %v9869_v52 }
 0xf00   :  { %9191 = vmatprep.mubr.msk.f32.mxu0 %vm113_vm0, %v9870_v44  ;;  %v5740_v44 = vld [vmem:[%s13405_s10 + $0x170] sm:$0xff] }
 0xf03   :  { %9192 = vmatmul.mubr.msk.f32.gmra.mxu0 %vm113_vm0, %v9871_v45  ;;  %v5277_v45 = vld [vmem:[%s13400_s5 + $0x70] sm:$0xff] }
 0xf04   :  { %9194 = vmatprep.mubr.msk.f32.mxu0 %vm113_vm0, %v9872_v33 }
 0xf07   :  { %9195 = vmatmul.mubr.msk.f32.gmra.mxu0 %vm113_vm0, %v9873_v43  ;;  %v5278_v43 = vld [vmem:[%s13400_s5 + $0x78] sm:$0xff] }
 0xf08   :  { %9263 = vmatprep.mubr.msk.f32.mxu0 %vm643_vm2, %v9874_v6  ;;  %v5739_v6 = vld [vmem:[%s13405_s10 + $0x168] sm:$0xff] }
 0xf0b   :  { %9264 = vmatmul.mubr.msk.f32.vlgmr.msra.gmra.mxu0 %vm643_vm2, %v9875_v56 }
 0xf0c   :  { %9266 = vmatprep.mubr.msk.f32.mxu0 %vm643_vm2, %v9876_v9  ;;  %9320 = vmatpush3.msra.mxu0 %v5315_v20  ;;  %v5738_v9 = vld [vmem:[%s13405_s10 + $0x160] sm:$0xff] }
 0xf0d   :  { %9321 = vmatprep.subr.mxu0 %v5314_v51 }
 0xf0e   :  { %9322 = vmatpush3.msra.mxu0 %v5314_v51  ;;  %v4459_v51 = vld [vmem:[%s13405_s10 + $0xa0] sm:$0xff] }
 0xf0f   :  { %9267 = vmatmul.mubr.msk.f32.gmra.mxu0 %vm643_vm2, %v9877_v15  ;;  %9323 = vmatprep.subr.mxu0 %v5313_v46 }
 0xf10   :  { %9269 = vmatprep.mubr.msk.f32.mxu0 %vm643_vm2, %v9878_v24  ;;  %9324 = vmatpush3.msra.mxu0 %v5313_v46 }
 0xf11   :  { %9325 = vmatprep.subr.mxu0 %v5312_v34 }
 0xf12   :  { %9326 = vmatpush3.msra.mxu0 %v5312_v34  ;;  %v12275_v34 = vld [vmem:[%s13405_s10 + $0x28] sm:$0xff] }
 0xf13   :  { %9270 = vmatmul.mubr.msk.f32.gmra.mxu0 %vm643_vm2, %v9879_v16  ;;  %9383 = vmatprep.subr.mxu0 %v5741_v8 }
 0xf14   :  { %9272 = vmatprep.mubr.msk.f32.mxu0 %vm643_vm2, %v9880_v23 }
 0xf17   :  { %9273 = vmatmul.mubr.msk.f32.gmra.mxu0 %vm643_vm2, %v9881_v5 }
 0xf18   :  { %9275 = vmatprep.mubr.msk.f32.mxu0 %vm643_vm2, %v9882_v32 }
 0xf19   :  { %v3964_v38 = vpop.permute.xlu1 %3963 }
 0xf1b   :  { %v3962_v11 = vpop.permute.xlu0 %3961  ;;  %9276 = vmatmul.mubr.msk.f32.gmra.mxu0 %vm643_vm2, %v9883_v27 }
 0xf1c   :  { %9109 = vmatprep.mubr.msk.f32.mxu1 %vm340_vm1, %v3962_v11  ;;  %9278 = vmatprep.mubr.msk.f32.mxu0 %vm643_vm2, %v9884_v17 }
 0xf1d   :  { %v3968_v21 = vpop.permute.xlu1 %3967  ;;  %9110 = vmatmul.mubr.msk.f32.vlgmr.msra.gmra.mxu1 %vm340_vm1, %v3964_v38 }
 0xf1e   :  { %9198 = vmatpush3.msra.mxu1 %v4466_v48 }
 0xf1f   :  { %v3966_v60 = vpop.permute.xlu0 %3965  ;;  %9279 = vmatmul.mubr.msk.f32.gmra.mxu0 %vm643_vm2, %v9885_v26  ;;  %9199 = vmatprep.subr.mxu1 %v4465_v3 }
 0xf20   :  { %9112 = vmatprep.mubr.msk.f32.mxu1 %vm340_vm1, %v3966_v60  ;;  %9281 = vmatprep.mubr.msk.f32.mxu0 %vm643_vm2, %v9886_v30 }
 0xf21   :  { %v3972_v54 = vpop.permute.xlu1 %3971  ;;  %9113 = vmatmul.mubr.msk.f32.gmra.mxu1 %vm340_vm1, %v3968_v21 }
 0xf22   :  { %9200 = vmatpush3.msra.mxu1 %v4465_v3 }
 0xf23   :  { %v3970_v13 = vpop.permute.xlu0 %3969  ;;  %9282 = vmatmul.mubr.msk.f32.gmra.mxu0 %vm643_vm2, %v9887_v59  ;;  %9201 = vmatprep.subr.mxu1 %v4464_v4 }
 0xf24   :  { %9115 = vmatprep.mubr.msk.f32.mxu1 %vm340_vm1, %v3970_v13  ;;  %9284 = vmatprep.mubr.msk.f32.mxu0 %vm643_vm2, %v9888_v7 }
 0xf25   :  { %9116 = vmatmul.mubr.msk.f32.gmra.mxu1 %vm340_vm1, %v3972_v54 }
 0xf26   :  { %v3976_v12 = vpop.permute.xlu1 %3975  ;;  %9202 = vmatpush3.msra.mxu1 %v4464_v4 }
 0xf27   :  { %v3974_v2 = vpop.permute.xlu0 %3973  ;;  %9285 = vmatmul.mubr.msk.f32.gmra.mxu0 %vm643_vm2, %v9889_v10  ;;  %9203 = vmatprep.subr.mxu1 %v4463_v49 }
 0xf28   :  { %9118 = vmatprep.mubr.msk.f32.mxu1 %vm340_vm1, %v3974_v2  ;;  %9204 = vmatpush3.msra.mxu1 %v4463_v49 }
 0xf29   :  { %9119 = vmatmul.mubr.msk.f32.gmra.mxu1 %vm340_vm1, %v3976_v12  ;;  %9229 = vmatprep.subr.mxu1 %v12094_v19 }
 0xf2a   :  { %v3980_v22 = vpop.permute.xlu1 %3979  ;;  %9327 = vmatprep.mubr.msk.f32.mxu0 %vm340_vm1, %v5263_v31 }
 0xf2b   :  { %v3978_v28 = vpop.permute.xlu0 %3977  ;;  %9328 = vmatmul.mubr.msk.f32.vlgmr.msra.gmra.mxu0 %vm340_vm1, %v5264_v14 }
 0xf2c   :  { %9121 = vmatprep.mubr.msk.f32.mxu1 %vm340_vm1, %v3978_v28  ;;  %9330 = vmatprep.mubr.msk.f32.mxu0 %vm340_vm1, %v5265_v53 }
 0xf2d   :  { %9122 = vmatmul.mubr.msk.f32.gmra.mxu1 %vm340_vm1, %v3980_v22  ;;  %9384 = vmatpush3.msra.mxu0 %v5741_v8 }
 0xf2e   :  { %v3984_v36 = vpop.permute.xlu1 %3983  ;;  %9385 = vmatprep.subr.mxu0 %v5740_v44 }
 0xf2f   :  { %v3982_v57 = vpop.permute.xlu0 %3981  ;;  %9331 = vmatmul.mubr.msk.f32.gmra.mxu0 %vm340_vm1, %v5266_v61 }
 0xf30   :  { %9124 = vmatprep.mubr.msk.f32.mxu1 %vm340_vm1, %v3982_v57  ;;  %9333 = vmatprep.mubr.msk.f32.mxu0 %vm340_vm1, %v5267_v39  ;;  %v4461_v57 = vld [vmem:[%s13405_s10 + $0xb0] sm:$0xff] }
 0xf31   :  { %9125 = vmatmul.mubr.msk.f32.gmra.mxu1 %vm340_vm1, %v3984_v36  ;;  %9386 = vmatpush3.msra.mxu0 %v5740_v44 }
 0xf32   :  { %v3988_v41 = vpop.permute.xlu1 %3987  ;;  %9387 = vmatprep.subr.mxu0 %v5739_v6 }
 0xf33   :  { %v3986_v29 = vpop.permute.xlu0 %3985  ;;  %9334 = vmatmul.mubr.msk.f32.gmra.mxu0 %vm340_vm1, %v5268_v58 }
 0xf34   :  { %9127 = vmatprep.mubr.msk.f32.mxu1 %vm340_vm1, %v3986_v29  ;;  %9336 = vmatprep.mubr.msk.f32.mxu0 %vm340_vm1, %v5269_v18 }
 0xf35   :  { %9128 = vmatmul.mubr.msk.f32.gmra.mxu1 %vm340_vm1, %v3988_v41  ;;  %9388 = vmatpush3.msra.mxu0 %v5739_v6  ;;  %v12256_v41 = vld [vmem:[%s13408_s13 + $0x15] ss:$0 sm:$0xff] }
 0xf36   :  { %v3992_v35 = vpop.permute.xlu1 %3991  ;;  %9389 = vmatprep.subr.mxu0 %v5738_v9 }
 0xf37   :  { %v3990_v40 = vpop.permute.xlu0 %3989  ;;  %9337 = vmatmul.mubr.msk.f32.gmra.mxu0 %vm340_vm1, %v5270_v25 }
 0xf38   :  { %9130 = vmatprep.mubr.msk.f32.mxu1 %vm340_vm1, %v3990_v40  ;;  %9339 = vmatprep.mubr.msk.f32.mxu0 %vm340_vm1, %v5271_v63  ;;  %v4460_v40 = vld [vmem:[%s13405_s10 + $0xa8] sm:$0xff] }
 0xf39   :  { %9131 = vmatmul.mubr.msk.f32.gmra.mxu1 %vm340_vm1, %v3992_v35  ;;  %9390 = vmatpush3.msra.mxu0 %v5738_v9 }
 0xf3b   :  { %9340 = vmatmul.mubr.msk.f32.gmra.mxu0 %vm340_vm1, %v5272_v42 }
 0xf3c   :  { %9342 = vmatprep.mubr.msk.f32.mxu0 %vm340_vm1, %v5273_v50 }
 0xf3f   :  { %9343 = vmatmul.mubr.msk.f32.gmra.mxu0 %vm340_vm1, %v5274_v37 }
 0xf40   :  { %9345 = vmatprep.mubr.msk.f32.mxu0 %vm340_vm1, %v5275_v1 }
 0xf43   :  { %9346 = vmatmul.mubr.msk.f32.gmra.mxu0 %vm340_vm1, %v5276_v62 }
 0xf44   :  { %9348 = vmatprep.mubr.msk.f32.mxu0 %vm340_vm1, %v5277_v45 }
 0xf47   :  { %9349 = vmatmul.mubr.msk.f32.gmra.mxu0 %vm340_vm1, %v5278_v43 }
 0xf6a   :  { %v12149_v47 = vpop.f32.mrf.mxu0 }
 0xf6b   :  { %v3787_v20 = vadd.f32 %v12149_v47, %v12256_v41 }
 0xf6c   :  { %v12154_v55 = vpop.f32.mrf.mxu0 }
 0xf6d   :  { %v7519_v14 = vmul.f32 -1.442695, %v3787_v20 }
 0xf6f   :  { %v12161_v0 = vpop.f32.mrf.mxu0  ;;  %9643 = vpow2.f32 %v7519_v14 }
 0xf70   :  { %v3797_v53 = vadd.f32 %v12161_v0, %v12256_v41 }
 0xf71   :  { %v12173_v52 = vpop.f32.mrf.mxu0 }
 0xf72   :  { %v3792_v58 = vadd.f32 %v12173_v52, %v12256_v41  ;;  %v7521_v25 = vmul.f32 -1.442695, %v3797_v53 }
 0xf73   :  { %v12182_v33 = vpop.f32.mrf.mxu0 }
 0xf74   :  { %v3807_v63 = vadd.f32 %v12182_v33, %v12256_v41  ;;  %v7520_v47 = vmul.f32 -1.442695, %v3792_v58  ;;  %v5066_v58 = vld [vmem:[%s13405_s10 + $0x18] sm:$0xff] }
 0xf75   :  { %v12191_v56 = vpop.f32.mrf.mxu0 }
 0xf76   :  { %v3802_v50 = vadd.f32 %v12191_v56, %v12256_v41  ;;  %v7523_v37 = vmul.f32 -1.442695, %v3807_v63  ;;  %v5065_v63 = vld [vmem:[%s13405_s10 + $0x10] sm:$0xff] }
 0xf77   :  { %v12197_v15 = vpop.f32.mrf.mxu0 }
 0xf78   :  { %v3817_v0 = vadd.f32 %v12197_v15, %v12256_v41  ;;  %v7522_v62 = vmul.f32 -1.442695, %v3802_v50 }
 0xf79   :  { %v12199_v24 = vpop.f32.mrf.mxu0 }
 0xf7a   :  { %v3812_v8 = vadd.f32 %v12199_v24, %v12256_v41  ;;  %v7525_v44 = vmul.f32 -1.442695, %v3817_v0 }
 0xf7b   :  { %v12201_v16 = vpop.f32.mrf.mxu0 }
 0xf7c   :  { %v3827_v45 = vadd.f32 %v12201_v16, %v12256_v41  ;;  %v7524_v43 = vmul.f32 -1.442695, %v3812_v8  ;;  %v9644_v9 = vpop.eup %9643 }
 0xf7d   :  { %v12203_v23 = vpop.f32.mrf.mxu0 }
 0xf7e   :  { %v3822_v6 = vadd.f32 %v12203_v23, %v12256_v41  ;;  %v7527_v15 = vmul.f32 -1.442695, %v3827_v45  ;;  %v3909_v23 = vadd.f32 1.0, %v9644_v9 }
 0xf7f   :  { %v12205_v5 = vpop.f32.mrf.mxu0 }
 0xf80   :  { %v3837_v24 = vadd.f32 %v12205_v5, %v12256_v41 }
 0xf81   :  { %v12207_v32 = vpop.f32.mrf.mxu0 }
 0xf83   :  { %v12209_v38 = vpop.f32.mrf.mxu0 }
 0xf84   :  { %v3847_v20 = vadd.f32 %v12209_v38, %v12256_v41  ;;  %v5067_v38 = vld [vmem:[%s13405_s10 + $0x20] sm:$0xff] }
 0xf85   :  { %v12211_v11 = vpop.f32.mrf.mxu0 }
 0xf87   :  { %v12213_v27 = vpop.f32.mrf.mxu0 }
 0xf89   :  { %v12215_v17 = vpop.f32.mrf.mxu0 }
 0xf8a   :  { %v3852_v0 = vadd.f32 %v12215_v17, %v12256_v41  ;;  %v12363_v17 = vld [vmem:[%s13408_s13 + $0x16] ss:$0 sm:$0xff] }
 0xf8b   :  { %v12217_v21 = vpop.f32.mrf.mxu0 }
 0xf8c   :  { %v7532_v8 = vmul.f32 -1.442695, %v3852_v0 }
 0xf8d   :  { %v12219_v60 = vpop.f32.mrf.mxu0 }
 0xf8f   :  { %v12221_v26 = vpop.f32.mrf.mxu0 }
 0xf91   :  { %v12223_v30 = vpop.f32.mrf.mxu0 }
 0xf93   :  { %v12225_v54 = vpop.f32.mrf.mxu0 }
 0xf95   :  { %v12227_v13 = vpop.f32.mrf.mxu0 }
 0xf97   :  { %v12229_v59 = vpop.f32.mrf.mxu0 }
 0xf99   :  { %v12231_v7 = vpop.f32.mrf.mxu0 }
 0xf9b   :  { %v12233_v12 = vpop.f32.mrf.mxu0 }
 0xf9d   :  { %v12235_v2 = vpop.f32.mrf.mxu0 }
 0xf9f   :  { %v12237_v10 = vpop.f32.mrf.mxu0 }
 0xfa1   :  { %v12239_v48 = vpop.f32.mrf.mxu0 }
 0xfa3   :  { %v12241_v22 = vpop.f32.mrf.mxu0 }
 0xfa5   :  { %v12243_v28 = vpop.f32.mrf.mxu0 }
 0xfa7   :  { %v12245_v3 = vpop.f32.mrf.mxu0 }
 0xfa9   :  { %v12247_v4 = vpop.f32.mrf.mxu0 }
 0xfab   :  { %v9175_v36 = vpop.f32.mrf.mxu0 }
 0xfad   :  { %v4380_v49 = vpop.f32.mrf.mxu0 }
 0xfae   :  { %9205 = vmatprep.mubr.msk.f32.mxu1 %vm340_vm1, %v4380_v49  ;;  %v7526_v49 = vmul.f32 -1.442695, %v3822_v6 }
 0xfaf   :  { %v9178_v29 = vpop.f32.mrf.mxu0  ;;  %9206 = vmatmul.mubr.msk.f32.vlgmr.msra.gmra.mxu1 %vm340_vm1, %v9175_v36 }
 0xfb0   :  { %9230 = vmatpush3.msra.mxu1 %v12094_v19  ;;  %v3782_v19 = vadd.f32 %v12154_v55, %v12256_v41 }
 0xfb1   :  { %v4390_v35 = vpop.f32.mrf.mxu0  ;;  %9231 = vmatprep.subr.mxu1 %v4461_v57 }
 0xfb2   :  { %9208 = vmatprep.mubr.msk.f32.mxu1 %vm340_vm1, %v4390_v35  ;;  %9232 = vmatpush3.msra.mxu1 %v4461_v57  ;;  %v7518_v39 = vmul.f32 -1.442695, %v3782_v19  ;;  %v3832_v57 = vadd.f32 %v12207_v32, %v12256_v41  ;;  %v7529_v35 = vmul.f32 -1.442695, %v3837_v24  ;;  %v3842_v19 = vadd.f32 %v12211_v11, %v12256_v41  ;;  %v12382_v24 = vld [vmem:[%s13408_s13 + $0x6] ss:$0 sm:$0xff] }
 0xfb3   :  { %v9181_v46 = vpop.f32.mrf.mxu0  ;;  %9209 = vmatmul.mubr.msk.f32.gmra.mxu1 %vm340_vm1, %v9178_v29  ;;  %9233 = vmatprep.subr.mxu1 %v4460_v40 }
 0xfb4   :  { %9234 = vmatpush3.msra.mxu1 %v4460_v40  ;;  %9645 = vpow2.f32 %v7518_v39  ;;  %v7528_v32 = vmul.f32 -1.442695, %v3832_v57 }
 0xfb5   :  { %v4400_v31 = vpop.f32.mrf.mxu0  ;;  %9235 = vmatprep.subr.mxu1 %v4459_v51  ;;  %9647 = vpow2.f32 %v7521_v25  ;;  %v7530_v25 = vmul.f32 -1.442695, %v3842_v19 }
 0xfb6   :  { %9211 = vmatprep.mubr.msk.f32.mxu1 %vm340_vm1, %v4400_v31  ;;  %9236 = vmatpush3.msra.mxu1 %v4459_v51  ;;  %9649 = vpow2.f32 %v7520_v47 }
 0xfb7   :  { %v9184_v61 = vpop.f32.mrf.mxu0  ;;  %9212 = vmatmul.mubr.msk.f32.gmra.mxu1 %vm340_vm1, %v9181_v46  ;;  %9287 = vmatprep.subr.mxu1 %v12275_v34  ;;  %9651 = vpow2.f32 %v7523_v37 }
 0xfb8   :  { %9653 = vpow2.f32 %v7522_v62 }
 0xfb9   :  { %v4410_v18 = vpop.f32.mrf.mxu0  ;;  %9655 = vpow2.f32 %v7525_v44 }
 0xfba   :  { %9214 = vmatprep.mubr.msk.f32.mxu1 %vm340_vm1, %v4410_v18  ;;  %9657 = vpow2.f32 %v7524_v43 }
 0xfbb   :  { %v9187_v42 = vpop.f32.mrf.mxu0  ;;  %9215 = vmatmul.mubr.msk.f32.gmra.mxu1 %vm340_vm1, %v9184_v61  ;;  %9659 = vpow2.f32 %v7527_v15  ;;  %v7531_v61 = vmul.f32 -1.442695, %v3847_v20 }
 0xfbc   :  { %9661 = vpow2.f32 %v7526_v49 }
 0xfbd   :  { %v4420_v55 = vpop.f32.mrf.mxu0  ;;  %9663 = vrcp.f32 %v3909_v23 }
 0xfbe   :  { %9217 = vmatprep.mubr.msk.f32.mxu1 %vm340_vm1, %v4420_v55  ;;  %9665 = vpow2.f32 %v7529_v35 }
 0xfbf   :  { %v9190_v1 = vpop.f32.mrf.mxu0  ;;  %9218 = vmatmul.mubr.msk.f32.gmra.mxu1 %vm340_vm1, %v9187_v42 }
 0xfc1   :  { %v4430_v52 = vpop.f32.mrf.mxu0  ;;  %v9646_v16 = vpop.eup %9645 }
 0xfc2   :  { %9220 = vmatprep.mubr.msk.f32.mxu1 %vm340_vm1, %v4430_v52  ;;  %v9648_v40 = vpop.eup %9647  ;;  %v3908_v51 = vadd.f32 1.0, %v9646_v16 }
 0xfc3   :  { %v9193_v33 = vpop.f32.mrf.mxu0  ;;  %9221 = vmatmul.mubr.msk.f32.gmra.mxu1 %vm340_vm1, %v9190_v1  ;;  %v9650_v46 = vpop.eup %9649  ;;  %v3911_v14 = vadd.f32 1.0, %v9648_v40 }
 0xfc4   :  { %v9652_v53 = vpop.eup %9651  ;;  %9667 = vrcp.f32 %v3908_v51  ;;  %v3910_v11 = vadd.f32 1.0, %v9650_v46 }
 0xfc5   :  { %v4440_v56 = vpop.f32.mrf.mxu0  ;;  %v9654_v18 = vpop.eup %9653  ;;  %9669 = vpow2.f32 %v7528_v32 }
 0xfc6   :  { %9223 = vmatprep.mubr.msk.f32.mxu1 %vm340_vm1, %v4440_v56  ;;  %9671 = vrcp.f32 %v3911_v14  ;;  %v3912_v47 = vadd.f32 1.0, %v9654_v18 }
 0xfc7   :  { %v9196_v36 = vpop.f32.mrf.mxu0  ;;  %9224 = vmatmul.mubr.msk.f32.gmra.mxu1 %vm340_vm1, %v9193_v33  ;;  %9673 = vpow2.f32 %v7531_v61 }
 0xfc8   :  { %9675 = vrcp.f32 %v3910_v11 }
 0xfc9   :  { %v4450_v29 = vpop.f32.mrf.mxu0  ;;  %9677 = vpow2.f32 %v7530_v25 }
 0xfca   :  { %9226 = vmatprep.mubr.msk.f32.mxu1 %vm340_vm1, %v4450_v29 }
 0xfcb   :  { %9227 = vmatmul.mubr.msk.f32.gmra.mxu1 %vm340_vm1, %v9196_v36  ;;  %v12312_v5 = vpop.f32.mrf.mxu0 }
 0xfcc   :  { %9237 = vmatprep.mubr.msk.f32.mxu1 %vm340_vm1, %v12219_v60  ;;  %v3857_v60 = vadd.f32 %v12213_v27, %v12256_v41 }
 0xfcd   :  { %v12318_v31 = vpop.f32.mrf.mxu0 }
 0xfce   :  { %v4939_v35 = vadd.f32 %v12318_v31, %v12382_v24 }
 0xfcf   :  { %9238 = vmatmul.mubr.msk.f32.vlgmr.msra.gmra.mxu1 %vm340_vm1, %v12217_v21  ;;  %v12327_v39 = vpop.f32.mrf.mxu0  ;;  %v3913_v21 = vadd.f32 1.0, %v9652_v53  ;;  %v4944_v53 = vadd.f32 %v12312_v5, %v12382_v24 }
 0xfd0   :  { %9240 = vmatprep.mubr.msk.f32.mxu1 %vm340_vm1, %v12223_v30  ;;  %9288 = vmatpush3.msra.mxu1 %v12275_v34  ;;  %v9656_v30 = vpop.eup %9655  ;;  %v7533_v34 = vmul.f32 -1.442695, %v3857_v60  ;;  %v5033_v25 = vmul.f32 0.01, %v4939_v35  ;;  %vm5017_vm7 = vcmp.gt.f32.partialorder %v4939_v35, 0.0 }
 0xfd1   :  { %9289 = vmatprep.subr.mxu1 %v5067_v38  ;;  %v12335_v27 = vpop.f32.mrf.mxu0  ;;  %v9658_v50 = vpop.eup %9657  ;;  %9679 = vrcp.f32 %v3913_v21  ;;  %v3915_v37 = vadd.f32 1.0, %v9656_v30  ;;  %vm5018_vm8 = vcmp.gt.f32.partialorder %v4944_v53, 0.0 }
 0xfd2   :  { %9290 = vmatpush3.msra.mxu1 %v5067_v38  ;;  %9681 = vpow2.f32 %v7533_v34  ;;  %v3914_v1 = vadd.f32 1.0, %v9658_v50  ;;  %v4949_v21 = vadd.f32 %v12335_v27, %v12382_v24  ;;  %v4954_v50 = vadd.f32 %v12327_v39, %v12382_v24 }
 0xfd3   :  { %9241 = vmatmul.mubr.msk.f32.gmra.mxu1 %vm340_vm1, %v12221_v26  ;;  %9291 = vmatprep.subr.mxu1 %v5066_v58  ;;  %v12342_v42 = vpop.f32.mrf.mxu0  ;;  %v9660_v26 = vpop.eup %9659  ;;  %9683 = vrcp.f32 %v3912_v47 }
 0xfd4   :  { %9243 = vmatprep.mubr.msk.f32.mxu1 %vm340_vm1, %v12227_v13  ;;  %9292 = vmatpush3.msra.mxu1 %v5066_v58  ;;  %v9662_v62 = vpop.eup %9661  ;;  %9685 = vrcp.f32 %v3915_v37  ;;  %v3917_v44 = vadd.f32 1.0, %v9660_v26  ;;  %v4964_v27 = vadd.f32 %v12342_v42, %v12382_v24  ;;  %vm5019_vm9 = vcmp.gt.f32.partialorder %v4949_v21, 0.0 }
 0xfd5   :  { %9293 = vmatprep.subr.mxu1 %v5065_v63  ;;  %v12346_v55 = vpop.f32.mrf.mxu0  ;;  %v12356_v52 = vpop.eup %9663  ;;  %9687 = vrcp.f32 %v3914_v1  ;;  %v3916_v45 = vadd.f32 1.0, %v9662_v62  ;;  %v5035_v1 = vmul.f32 0.01, %v4949_v21  ;;  %v5049_v62 = vsel %vm5017_vm7, %v4939_v35, %v5033_v25 }
 0xfd6   :  { %9294 = vmatpush3.msra.mxu1 %v5065_v63  ;;  %9689 = vpow2.f32 %v7532_v8  ;;  %v4187_v51 = vsub.f32 1.0, %v12356_v52  ;;  %v4959_v39 = vadd.f32 %v12346_v55, %v12382_v24  ;;  %vm5020_vm10 = vcmp.gt.f32.partialorder %v4954_v50, 0.0 }
 0xfd7   :  { %9244 = vmatmul.mubr.msk.f32.gmra.mxu1 %vm340_vm1, %v12225_v54  ;;  %v12354_v13 = vpop.f32.mrf.mxu0  ;;  %v9666_v54 = vpop.eup %9665  ;;  %9691 = vrcp.f32 %v3917_v44  ;;  %vm5022_vm11 = vcmp.gt.f32.partialorder %v4964_v27, 0.0 }
 0xfd8   :  { %9246 = vmatprep.mubr.msk.f32.mxu1 %vm340_vm1, %v12231_v7  ;;  %v12369_v41 = vpop.eup %9667  ;;  %v3919_v56 = vadd.f32 1.0, %v9666_v54  ;;  %vm5021_vm12 = vcmp.gt.f32.partialorder %v4959_v39, 0.0 }
 0xfd9   :  { %v12367_v7 = vpop.f32.mrf.mxu0  ;;  %v9670_v43 = vpop.eup %9669  ;;  %v4186_v32 = vsub.f32 1.0, %v12369_v41 }
 0xfda   :  { %v12372_v6 = vpop.eup %9671  ;;  %v3918_v49 = vadd.f32 1.0, %v9670_v43 }
 0xfdb   :  { %9247 = vmatmul.mubr.msk.f32.gmra.mxu1 %vm340_vm1, %v12229_v59  ;;  %v9674_v15 = vpop.eup %9673  ;;  %v12384_v36 = vpop.f32.mrf.mxu0 }
 0xfdc   :  { %9249 = vmatprep.mubr.msk.f32.mxu1 %vm340_vm1, %v12235_v2  ;;  %v12386_v16 = vpop.eup %9675 }
 0xfdd   :  { %v9111_v33 = vpop.f32.mrf.mxu1  ;;  %v9678_v57 = vpop.eup %9677 }
 0xfde   :  { %v4097_v59 = vadd.f32 %v9111_v33, %v12363_v17  ;;  %v12389_v23 = vpop.eup %9679  ;;  %v12400_v19 = vpop.f32.mrf.mxu0  ;;  %v3920_v38 = vadd.f32 1.0, %v9678_v57  ;;  %v5036_v33 = vmul.f32 0.01, %v4954_v50  ;;  %v5051_v57 = vsel %vm5019_vm9, %v4949_v21, %v5035_v1 }
 0xfdf   :  { %9250 = vmatmul.mubr.msk.f32.gmra.mxu1 %vm340_vm1, %v12233_v12  ;;  %v4091_v9 = vpop.f32.mrf.mxu1  ;;  %v9682_v20 = vpop.eup %9681  ;;  %v4191_v61 = vsub.f32 1.0, %v12389_v23 }
 0xfe0   :  { %9693 = vtanh.f32 %v4097_v59  ;;  %v4092_v2 = vadd.f32 %v4091_v9, %v12363_v17  ;;  %9252 = vmatprep.mubr.msk.f32.mxu1 %vm340_vm1, %v12239_v48  ;;  %v3921_v48 = vadd.f32 1.0, %v9674_v15  ;;  %v12402_v14 = vpop.eup %9683  ;;  %v3923_v58 = vadd.f32 1.0, %v9682_v20  ;;  %v12419_v63 = vpop.f32.mrf.mxu0 }
 0xfe1   :  { %9695 = vrcp.f32 %v3916_v45  ;;  %v9114_v12 = vpop.f32.mrf.mxu1  ;;  %v12410_v11 = vpop.eup %9685  ;;  %v4190_v30 = vsub.f32 1.0, %v12402_v14  ;;  %v5038_v59 = vmul.f32 0.01, %v4964_v27  ;;  %v4974_v9 = vadd.f32 %v12354_v13, %v12382_v24 }
 0xfe2   :  { %9697 = vtanh.f32 %v4092_v2  ;;  %v4107_v29 = vadd.f32 %v9114_v12, %v12363_v17  ;;  %v12422_v34 = vpop.eup %9687  ;;  %v4193_v37 = vsub.f32 1.0, %v12410_v11  ;;  %v12439_v44 = vpop.f32.mrf.mxu0  ;;  %v5037_v12 = vmul.f32 0.01, %v4959_v39 }
 0xfe3   :  { %9699 = vrcp.f32 %v3919_v56  ;;  %9253 = vmatmul.mubr.msk.f32.gmra.mxu1 %vm340_vm1, %v12237_v10  ;;  %v4101_v40 = vpop.f32.mrf.mxu1  ;;  %v4189_v10 = vsub.f32 1.0, %v12372_v6  ;;  %v9690_v0 = vpop.eup %9689  ;;  %v4192_v54 = vsub.f32 1.0, %v12422_v34  ;;  %vm5024_vm14 = vcmp.gt.f32.partialorder %v4974_v9, 0.0 }
 0xfe4   :  { %9701 = vtanh.f32 %v4107_v29  ;;  %v4102_v46 = vadd.f32 %v4101_v40, %v12363_v17  ;;  %9255 = vmatprep.mubr.msk.f32.mxu1 %vm340_vm1, %v12243_v28  ;;  %v4188_v28 = vsub.f32 1.0, %v12386_v16  ;;  %v12435_v8 = vpop.eup %9691  ;;  %v4969_v29 = vadd.f32 %v12367_v7, %v12382_v24  ;;  %v12460_v52 = vpop.f32.mrf.mxu0 }
 0xfe5   :  { %9703 = vrcp.f32 %v3918_v49  ;;  %v9117_v31 = vpop.f32.mrf.mxu1  ;;  %v3922_v20 = vadd.f32 1.0, %v9690_v0  ;;  %v5053_v21 = vsel %vm5021_vm12, %v4959_v39, %v5037_v12  ;;  %v4984_v6 = vadd.f32 %v12384_v36, %v12382_v24 }
 0xfe6   :  { %9705 = vtanh.f32 %v4102_v46  ;;  %v4117_v60 = vadd.f32 %v9117_v31, %v12363_v17  ;;  %v5054_v46 = vsel %vm5022_vm11, %v4964_v27, %v5038_v59  ;;  %v5039_v25 = vmul.f32 0.01, %v4969_v29 }
 0xfe7   :  { %9707 = vrcp.f32 %v3921_v48  ;;  %9256 = vmatmul.mubr.msk.f32.gmra.mxu1 %vm340_vm1, %v12241_v22  ;;  %v4111_v18 = vpop.f32.mrf.mxu1  ;;  %v5034_v22 = vmul.f32 0.01, %v4944_v53  ;;  %vm5023_vm13 = vcmp.gt.f32.partialorder %v4969_v29, 0.0  ;;  %v4989_v16 = vadd.f32 %v12439_v44, %v12382_v24 }
 0xfe8   :  { %9709 = vtanh.f32 %v4117_v60  ;;  %v4112_v5 = vadd.f32 %v4111_v18, %v12363_v17  ;;  %9258 = vmatprep.mubr.msk.f32.mxu1 %vm340_vm1, %v12247_v4  ;;  %v5040_v60 = vmul.f32 0.01, %v4974_v9  ;;  %v5055_v36 = vsel %vm5023_vm13, %v4969_v29, %v5039_v25 }
 0xfe9   :  { %9711 = vrcp.f32 %v3920_v38  ;;  %v9120_v47 = vpop.f32.mrf.mxu1  ;;  %v5050_v45 = vsel %vm5018_vm8, %v4944_v53, %v5034_v22  ;;  %v4979_v38 = vadd.f32 %v12400_v19, %v12382_v24  ;;  %vm5026_vm0 = vcmp.gt.f32.partialorder %v4984_v6, 0.0 }
 0xfea   :  { %9713 = vtanh.f32 %v4112_v5  ;;  %v4127_v4 = vadd.f32 %v9120_v47, %v12363_v17  ;;  %vm5027_vm2 = vcmp.gt.f32.partialorder %v4989_v16, 0.0  ;;  %v4195_v29 = vsub.f32 1.0, %v12435_v8 }
 0xfeb   :  { %9715 = vrcp.f32 %v3923_v58  ;;  %9259 = vmatmul.mubr.msk.f32.gmra.mxu1 %vm340_vm1, %v12245_v3  ;;  %v4121_v26 = vpop.f32.mrf.mxu1  ;;  %vm5025_vm15 = vcmp.gt.f32.partialorder %v4979_v38, 0.0 }
 0xfec   :  { %9717 = vtanh.f32 %v4127_v4  ;;  %v4122_v42 = vadd.f32 %v4121_v26, %v12363_v17  ;;  %9295 = vmatprep.mubr.msk.f32.mxu1 %vm340_vm1, %v5049_v62 }
 0xfed   :  { %v9694_v3 = vpop.eup %9693  ;;  %v9123_v43 = vpop.f32.mrf.mxu1 }
 0xfee   :  { %v12443_v55 = vpop.eup %9695  ;;  %9719 = vtanh.f32 %v4122_v42  ;;  %v4137_v56 = vadd.f32 %v9123_v43, %v12363_v17  ;;  %v4203_v2 = vmul.f32 %v9694_v3, %v4187_v51  ;;  %v5052_v51 = vsel %vm5020_vm10, %v4954_v50, %v5036_v33  ;;  %v4998_v50 = vpop.f32.mrf.mxu0 }
 0xfef   :  { %v9698_v15 = vpop.eup %9697  ;;  %9296 = vmatmul.mubr.msk.f32.vlgmr.msra.gmra.mxu1 %vm340_vm1, %v5050_v45  ;;  %v4131_v49 = vpop.f32.mrf.mxu1  ;;  %v5056_v45 = vsel %vm5024_vm14, %v4974_v9, %v5040_v60  ;;  %v4194_v11 = vsub.f32 1.0, %v12443_v55 }
 0xff0   :  { %v12454_v48 = vpop.eup %9699  ;;  %9721 = vtanh.f32 %v4137_v56  ;;  %v4132_v40 = vadd.f32 %v4131_v49, %v12363_v17  ;;  %9298 = vmatprep.mubr.msk.f32.mxu1 %vm340_vm1, %v5051_v57  ;;  %v4202_v13 = vmul.f32 %v9698_v15, %v4186_v32  ;;  %v4219_v58 = vmax.f32 %v4203_v2, 0.0  ;;  %v9286_v43 = vpop.f32.mrf.mxu0 }
 0xff1   :  { %v9702_v35 = vpop.eup %9701  ;;  %v9126_v7 = vpop.f32.mrf.mxu1  ;;  %v5042_v56 = vmul.f32 0.01, %v4984_v6  ;;  %v5043_v2 = vmul.f32 0.01, %v4989_v16  ;;  %v4999_v57 = vadd.f32 %v4998_v50, %v12382_v24 }
 0xff2   :  { %v12466_v31 = vpop.eup %9703  ;;  %9723 = vtanh.f32 %v4132_v40  ;;  %v4147_v53 = vadd.f32 %v9126_v7, %v12363_v17  ;;  %v4218_v41 = vmax.f32 %v4202_v13, 0.0  ;;  %v4205_v5 = vmul.f32 %v9702_v35, %v4189_v10  ;;  %v5008_v35 = vpop.f32.mrf.mxu0 }
 0xff3   :  { %v9706_v32 = vpop.eup %9705  ;;  %9299 = vmatmul.mubr.msk.f32.gmra.mxu1 %vm340_vm1, %v5052_v51  ;;  %v4141_v18 = vpop.f32.mrf.mxu1  ;;  %v5041_v10 = vmul.f32 0.01, %v4979_v38  ;;  %v5058_v51 = vsel %vm5026_vm0, %v4984_v6, %v5042_v56  ;;  %v5059_v8 = vsel %vm5027_vm2, %v4989_v16, %v5043_v2  ;;  %v5045_v34 = vmul.f32 0.01, %v4999_v57  ;;  %v12563_v2 = vld [vmem:[%s13405_s10 + $0x198] sm:$0xff] }
 0xff4   :  { %v12473_v22 = vpop.eup %9707  ;;  %9725 = vtanh.f32 %v4147_v53  ;;  %v4142_v19 = vadd.f32 %v4141_v18, %v12363_v17  ;;  %9391 = vmatprep.mubr.msk.f32.mxu0 %vm340_vm1, %v4218_v41  ;;  %9301 = vmatprep.mubr.msk.f32.mxu1 %vm340_vm1, %v5053_v21  ;;  %v4204_v47 = vmul.f32 %v9706_v32, %v4188_v28  ;;  %v4221_v39 = vmax.f32 %v4205_v5, 0.0 }
 0xff5   :  { %v9710_v27 = vpop.eup %9709  ;;  %v9129_v4 = vpop.f32.mrf.mxu1  ;;  %9392 = vmatmul.mubr.msk.f32.vlgmr.msra.gmra.mxu0 %vm340_vm1, %v4219_v58  ;;  %v5057_v9 = vsel %vm5025_vm15, %v4979_v38, %v5041_v10  ;;  %v5009_v38 = vadd.f32 %v5008_v35, %v12382_v24  ;;  %vm5029_vm4 = vcmp.gt.f32.partialorder %v4999_v57, 0.0  ;;  %v4196_v32 = vsub.f32 1.0, %v12466_v31  ;;  %v5284_v35 = vld [vmem:[%s13400_s5 + $0xa8] sm:$0xff] }
 0xff6   :  { %v12483_v0 = vpop.eup %9711  ;;  %9727 = vtanh.f32 %v4142_v19  ;;  %v4157_v26 = vadd.f32 %v9129_v4, %v12363_v17  ;;  %v4220_v1 = vmax.f32 %v4204_v47, 0.0  ;;  %v4207_v42 = vmul.f32 %v9710_v27, %v4191_v61 }
 0xff7   :  { %v9714_v28 = vpop.eup %9713  ;;  %9729 = vrcp.f32 %v3922_v20  ;;  %9302 = vmatmul.mubr.msk.f32.gmra.mxu1 %vm340_vm1, %v5054_v46  ;;  %v4151_v62 = vpop.f32.mrf.mxu1  ;;  %v4994_v61 = vadd.f32 %v12419_v63, %v12382_v24  ;;  %v5014_v18 = vadd.f32 %v9286_v43, %v12382_v24  ;;  %v5047_v5 = vmul.f32 0.01, %v5009_v38 }
 0xff8   :  { %v12492_v3 = vpop.eup %9715  ;;  %9731 = vtanh.f32 %v4157_v26  ;;  %v4152_v33 = vadd.f32 %v4151_v62, %v12363_v17  ;;  %9394 = vmatprep.mubr.msk.f32.mxu0 %vm340_vm1, %v4220_v1  ;;  %9304 = vmatprep.mubr.msk.f32.mxu1 %vm340_vm1, %v5055_v36  ;;  %v4206_v44 = vmul.f32 %v9714_v28, %v4190_v30  ;;  %v4223_v30 = vmax.f32 %v4207_v42, 0.0 }
 0xff9   :  { %v9718_v59 = vpop.eup %9717  ;;  %v9132_v23 = vpop.f32.mrf.mxu1  ;;  %9395 = vmatmul.mubr.msk.f32.gmra.mxu0 %vm340_vm1, %v4221_v39  ;;  %vm5028_vm3 = vcmp.gt.f32.partialorder %v4994_v61, 0.0  ;;  %v5044_v46 = vmul.f32 0.01, %v4994_v61  ;;  %v5061_v19 = vsel %vm5029_vm4, %v4999_v57, %v5045_v34  ;;  %vm5031_vm7 = vcmp.gt.f32.partialorder %v5009_v38, 0.0  ;;  %v5279_v57 = vld [vmem:[%s13400_s5 + $0x80] sm:$0xff] }
 0xffa   :  { %9733 = vtanh.f32 %v4152_v33  ;;  %v4167_v15 = vadd.f32 %v9132_v23, %v12363_v17  ;;  %v4222_v49 = vmax.f32 %v4206_v44, 0.0  ;;  %v4209_v63 = vmul.f32 %v9718_v59, %v4193_v37 }
 0xffb   :  { %v9720_v12 = vpop.eup %9719  ;;  %9305 = vmatmul.mubr.msk.f32.gmra.mxu1 %vm340_vm1, %v5056_v45  ;;  %v4161_v14 = vpop.f32.mrf.mxu1  ;;  %v5060_v41 = vsel %vm5028_vm3, %v4994_v61, %v5044_v46  ;;  %v4199_v4 = vsub.f32 1.0, %v12473_v22  ;;  %v5048_v6 = vmul.f32 0.01, %v5014_v18  ;;  %v4198_v26 = vsub.f32 1.0, %v12483_v0  ;;  %v5527_v61 = vld [vmem:[%s13405_s10 + $0x150] sm:$0xff]  ;;  %v5287_v46 = vld [vmem:[%s13400_s5 + $0xc0] sm:$0xff] }
 0xffc   :  { %9735 = vtanh.f32 %v4167_v15  ;;  %v4162_v40 = vadd.f32 %v4161_v14, %v12363_v17  ;;  %9397 = vmatprep.mubr.msk.f32.mxu0 %vm340_vm1, %v4222_v49  ;;  %9307 = vmatprep.mubr.msk.f32.mxu1 %vm340_vm1, %v5057_v9  ;;  %v4208_v13 = vmul.f32 %v9720_v12, %v4192_v54  ;;  %v5004_v17 = vadd.f32 %v12460_v52, %v12382_v24  ;;  %v5526_v9 = vld [vmem:[%s13405_s10 + $0x148] sm:$0xff]  ;;  %v5525_v15 = vld [vmem:[%s13405_s10 + $0x140] sm:$0xff]  ;;  %v6167_v49 = vld [vmem:[%s13405_s10 + $0x1b8] sm:$0xff] }
 0xffd   :  { %v9722_v20 = vpop.eup %9721  ;;  %9398 = vmatmul.mubr.msk.f32.gmra.mxu0 %vm340_vm1, %v4223_v30  ;;  %v4225_v54 = vmax.f32 %v4209_v63, 0.0  ;;  %v4197_v52 = vsub.f32 1.0, %v12454_v48  ;;  %vm5032_vm8 = vcmp.gt.f32.partialorder %v5014_v18, 0.0  ;;  %v5063_v16 = vsel %vm5031_vm7, %v5009_v38, %v5047_v5  ;;  %9447 = vmatprep.subr.mxu0 %v6167_v49  ;;  %v6166_v12 = vld [vmem:[%s13405_s10 + $0x1b0] sm:$0xff]  ;;  %v6165_v14 = vld [vmem:[%s13405_s10 + $0x1a8] sm:$0xff]  ;;  %v6164_v30 = vld [vmem:[%s13405_s10 + $0x1a0] sm:$0xff] }
 0xffe   :  { %9737 = vtanh.f32 %v4162_v40  ;;  %v4224_v37 = vmax.f32 %v4208_v13, 0.0  ;;  %v4211_v53 = vmul.f32 %v9722_v20, %v4195_v29  ;;  %vm5030_vm5 = vcmp.gt.f32.partialorder %v5004_v17, 0.0  ;;  %9448 = vmatpush3.msra.mxu0 %v6167_v49  ;;  %v5280_v63 = vld [vmem:[%s13400_s5 + $0x88] sm:$0xff]  ;;  %v5281_v29 = vld [vmem:[%s13400_s5 + $0x90] sm:$0xff]  ;;  %v5282_v40 = vld [vmem:[%s13400_s5 + $0x98] sm:$0xff] }
 0xfff   :  { %v9724_v7 = vpop.eup %9723  ;;  %9308 = vmatmul.mubr.msk.f32.gmra.mxu1 %vm340_vm1, %v5058_v51  ;;  %v5046_v58 = vmul.f32 0.01, %v5004_v17  ;;  %v4201_v39 = vsub.f32 1.0, %v12492_v3  ;;  %v5064_v42 = vsel %vm5032_vm8, %v5014_v18, %v5048_v6  ;;  %v5528_v3 = vld [vmem:[%s13405_s10 + $0x158] sm:$0xff]  ;;  %9449 = vmatprep.subr.mxu0 %v6166_v12  ;;  %v5283_v13 = vld [vmem:[%s13400_s5 + $0xa0] sm:$0xff]  ;;  %v5285_v20 = vld [vmem:[%s13400_s5 + $0xb0] sm:$0xff] }
0x1000   :  { %9400 = vmatprep.mubr.msk.f32.mxu0 %vm340_vm1, %v4224_v37  ;;  %9310 = vmatprep.mubr.msk.f32.mxu1 %vm340_vm1, %v5059_v8  ;;  %v4210_v55 = vmul.f32 %v9724_v7, %v4194_v11  ;;  %v4227_v47 = vmax.f32 %v4211_v53, 0.0  ;;  %v5286_v51 = vld [vmem:[%s13400_s5 + $0xb8] sm:$0xff]  ;;  %v5288_v11 = vld [vmem:[%s13400_s5 + $0xc8] sm:$0xff]  ;;  %v5291_v8 = vld [vmem:[%s13400_s5 + $0xe0] sm:$0xff] }
0x1001   :  { %v9726_v60 = vpop.eup %9725  ;;  %9401 = vmatmul.mubr.msk.f32.gmra.mxu0 %vm340_vm1, %v4225_v54  ;;  %v5062_v24 = vsel %vm5030_vm5, %v5004_v17, %v5046_v58  ;;  %9351 = vmatprep.subr.mxu1 %v5528_v3  ;;  %v5289_v17 = vld [vmem:[%s13400_s5 + $0xd0] sm:$0xff]  ;;  %v5290_v37 = vld [vmem:[%s13400_s5 + $0xd8] sm:$0xff]  ;;  %v5292_v7 = vld [vmem:[%s13400_s5 + $0xe8] sm:$0xff] }
0x1002   :  { %v4226_v25 = vmax.f32 %v4210_v55, 0.0  ;;  %v4213_v50 = vmul.f32 %v9726_v60, %v4197_v52  ;;  %9352 = vmatpush3.msra.mxu1 %v5528_v3  ;;  %9450 = vmatpush3.msra.mxu0 %v6166_v12  ;;  %v5293_v38 = vld [vmem:[%s13400_s5 + $0xf0] sm:$0xff]  ;;  %v5294_v53 = vld [vmem:[%s13400_s5 + $0xf8] sm:$0xff] }
0x1003   :  { %v9728_v21 = vpop.eup %9727  ;;  %9311 = vmatmul.mubr.msk.f32.gmra.mxu1 %vm340_vm1, %v5060_v41  ;;  %9353 = vmatprep.subr.mxu1 %v5527_v61 }
0x1004   :  { %v9730_v48 = vpop.eup %9729  ;;  %9403 = vmatprep.mubr.msk.f32.mxu0 %vm340_vm1, %v4226_v25  ;;  %9313 = vmatprep.mubr.msk.f32.mxu1 %vm340_vm1, %v5061_v19  ;;  %v4212_v31 = vmul.f32 %v9728_v21, %v4196_v32  ;;  %v4229_v28 = vmax.f32 %v4213_v50, 0.0 }
0x1005   :  { %v9732_v27 = vpop.eup %9731  ;;  %9404 = vmatmul.mubr.msk.f32.gmra.mxu0 %vm340_vm1, %v4227_v47  ;;  %v4200_v0 = vsub.f32 1.0, %v9730_v48  ;;  %9354 = vmatpush3.msra.mxu1 %v5527_v61 }
0x1006   :  { %v4228_v10 = vmax.f32 %v4212_v31, 0.0  ;;  %v4215_v62 = vmul.f32 %v9732_v27, %v4199_v4  ;;  %9355 = vmatprep.subr.mxu1 %v5526_v9  ;;  %9451 = vmatprep.subr.mxu0 %v6165_v14 }
0x1007   :  { %v9734_v1 = vpop.eup %9733  ;;  %9314 = vmatmul.mubr.msk.f32.gmra.mxu1 %vm340_vm1, %v5062_v24  ;;  %9452 = vmatpush3.msra.mxu0 %v6165_v14 }
0x1008   :  { %9406 = vmatprep.mubr.msk.f32.mxu0 %vm340_vm1, %v4228_v10  ;;  %9316 = vmatprep.mubr.msk.f32.mxu1 %vm340_vm1, %v5063_v16  ;;  %v4214_v22 = vmul.f32 %v9734_v1, %v4198_v26  ;;  %v4231_v44 = vmax.f32 %v4215_v62, 0.0 }
0x1009   :  { %v9736_v36 = vpop.eup %9735  ;;  %9407 = vmatmul.mubr.msk.f32.gmra.mxu0 %vm340_vm1, %v4229_v28  ;;  %9356 = vmatpush3.msra.mxu1 %v5526_v9  ;;  %v5069_v9 = vld [vmem:[%s13408_s13 + $0x7] ss:$0 sm:$0xff] }
0x100a   :  { %v4230_v45 = vmax.f32 %v4214_v22, 0.0  ;;  %v4217_v43 = vmul.f32 %v9736_v36, %v4201_v39  ;;  %9357 = vmatprep.subr.mxu1 %v5525_v15  ;;  %9453 = vmatprep.subr.mxu0 %v6164_v30 }
0x100b   :  { %v9738_v33 = vpop.eup %9737  ;;  %9317 = vmatmul.mubr.msk.f32.gmra.mxu1 %vm340_vm1, %v5064_v42  ;;  %9454 = vmatpush3.msra.mxu0 %v6164_v30  ;;  %v5953_v30 = vld [vmem:[%s13405_s10 + $0x190] sm:$0xff] }
0x100c   :  { %9409 = vmatprep.mubr.msk.f32.mxu0 %vm340_vm1, %v4230_v45  ;;  %v4216_v59 = vmul.f32 %v9738_v33, %v4200_v0  ;;  %v4233_v23 = vmax.f32 %v4217_v43, 0.0  ;;  %9358 = vmatpush3.msra.mxu1 %v5525_v15 }
0x100d   :  { %9410 = vmatmul.mubr.msk.f32.gmra.mxu0 %vm340_vm1, %v4231_v44  ;;  %9415 = vmatprep.subr.mxu1 %v12563_v2 }
0x100e   :  { %v4232_v56 = vmax.f32 %v4216_v59, 0.0 }
0x1010   :  { %9412 = vmatprep.mubr.msk.f32.mxu0 %vm340_vm1, %v4232_v56 }
0x1011   :  { %9413 = vmatmul.mubr.msk.f32.gmra.mxu0 %vm340_vm1, %v4233_v23 }
0x1012   :  { %9455 = vmatprep.mubr.msk.f32.mxu0 %vm340_vm1, %v5279_v57 }
0x1015   :  { %9456 = vmatmul.mubr.msk.f32.vlgmr.msra.gmra.mxu0 %vm340_vm1, %v5280_v63 }
0x1016   :  { %9458 = vmatprep.mubr.msk.f32.mxu0 %vm340_vm1, %v5281_v29  ;;  %v5952_v29 = vld [vmem:[%s13405_s10 + $0x188] sm:$0xff] }
0x1019   :  { %9459 = vmatmul.mubr.msk.f32.gmra.mxu0 %vm340_vm1, %v5282_v40 }
0x101a   :  { %9461 = vmatprep.mubr.msk.f32.mxu0 %vm340_vm1, %v5283_v13 }
0x101d   :  { %9462 = vmatmul.mubr.msk.f32.gmra.mxu0 %vm340_vm1, %v5284_v35  ;;  %v5951_v35 = vld [vmem:[%s13405_s10 + $0x180] sm:$0xff] }
0x101e   :  { %9464 = vmatprep.mubr.msk.f32.mxu0 %vm340_vm1, %v5285_v20 }
0x1021   :  { %9465 = vmatmul.mubr.msk.f32.gmra.mxu0 %vm340_vm1, %v5286_v51 }
0x1022   :  { %9467 = vmatprep.mubr.msk.f32.mxu0 %vm340_vm1, %v5287_v46 }
0x1025   :  { %9468 = vmatmul.mubr.msk.f32.gmra.mxu0 %vm340_vm1, %v5288_v11 }
0x1026   :  { %9470 = vmatprep.mubr.msk.f32.mxu0 %vm340_vm1, %v5289_v17 }
0x1029   :  { %9471 = vmatmul.mubr.msk.f32.gmra.mxu0 %vm340_vm1, %v5290_v37 }
0x102a   :  { %9473 = vmatprep.mubr.msk.f32.mxu0 %vm340_vm1, %v5291_v8 }
0x102d   :  { %9474 = vmatmul.mubr.msk.f32.gmra.mxu0 %vm340_vm1, %v5292_v7 }
0x102e   :  { %9476 = vmatprep.mubr.msk.f32.mxu0 %vm340_vm1, %v5293_v38 }
0x1031   :  { %9477 = vmatmul.mubr.msk.f32.gmra.mxu0 %vm340_vm1, %v5294_v53 }
0x106f   :  { %v9207_v34 = vpop.f32.mrf.mxu1 }
0x1071   :  { %v12634_v54 = vpop.f32.mrf.mxu1 }
0x1073   :  { %v9210_v55 = vpop.f32.mrf.mxu1 }
0x1075   :  { %v12644_v60 = vpop.f32.mrf.mxu1 }
0x1077   :  { %v9213_v52 = vpop.f32.mrf.mxu1 }
0x1079   :  { %v12646_v41 = vpop.f32.mrf.mxu1 }
0x107b   :  { %v9216_v32 = vpop.f32.mrf.mxu1 }
0x107d   :  { %v12648_v58 = vpop.f32.mrf.mxu1 }
0x107f   :  { %v9219_v18 = vpop.f32.mrf.mxu1 }
0x1081   :  { %v12650_v25 = vpop.f32.mrf.mxu1 }
0x1083   :  { %v9222_v21 = vpop.f32.mrf.mxu1 }
0x1085   :  { %v12652_v5 = vpop.f32.mrf.mxu1 }
0x1087   :  { %v9225_v19 = vpop.f32.mrf.mxu1 }
0x1089   :  { %v12654_v47 = vpop.f32.mrf.mxu1 }
0x108b   :  { %v9228_v50 = vpop.f32.mrf.mxu1 }
0x108d   :  { %v12656_v48 = vpop.f32.mrf.mxu1 }
0x108f   :  { %v9239_v31 = vpop.f32.mrf.mxu1 }
0x1090   :  { %v12658_v27 = vadd.f32 %v9239_v31, %v9207_v34 }
0x1091   :  { %v12660_v4 = vpop.f32.mrf.mxu1 }
0x1093   :  { %v9242_v24 = vpop.f32.mrf.mxu1 }
0x1094   :  { %v12662_v6 = vadd.f32 %v9242_v24, %v9210_v55 }
0x1095   :  { %v12664_v10 = vpop.f32.mrf.mxu1 }
0x1097   :  { %v9245_v26 = vpop.f32.mrf.mxu1 }
0x1098   :  { %v12666_v1 = vadd.f32 %v9245_v26, %v9213_v52  ;;  %v4775_v26 = vadd.f32 %v12660_v4, %v12634_v54 }
0x1099   :  { %v12668_v16 = vpop.f32.mrf.mxu1 }
0x109b   :  { %v9248_v28 = vpop.f32.mrf.mxu1 }
0x109c   :  { %v12670_v62 = vadd.f32 %v9248_v28, %v9216_v32 }
0x109d   :  { %v12672_v22 = vpop.f32.mrf.mxu1 }
0x109f   :  { %v9251_v36 = vpop.f32.mrf.mxu1 }
0x10a0   :  { %v12674_v39 = vadd.f32 %v9251_v36, %v9219_v18 }
0x10a1   :  { %v12676_v42 = vpop.f32.mrf.mxu1 }
0x10a3   :  { %v9254_v45 = vpop.f32.mrf.mxu1 }
0x10a4   :  { %v12678_v0 = vadd.f32 %v9254_v45, %v9222_v21  ;;  %v4853_v45 = vld [vmem:[%s13408_s13 + $0x14] ss:$0 sm:$0xff] }
0x10a5   :  { %v12680_v33 = vpop.f32.mrf.mxu1  ;;  %v4855_v54 = vadd.f32 %v4853_v45, %v12658_v27 }
0x10a7   :  { %v9257_v44 = vpop.f32.mrf.mxu1 }
0x10a8   :  { %v12682_v43 = vadd.f32 %v9257_v44, %v9225_v19 }
0x10a9   :  { %v12684_v59 = vpop.f32.mrf.mxu1 }
0x10ab   :  { %v9260_v56 = vpop.f32.mrf.mxu1 }
0x10ac   :  { %v12686_v23 = vadd.f32 %v9260_v56, %v9228_v50  ;;  %v4854_v56 = vadd.f32 %v4853_v45, %v4775_v26  ;;  %v6737_v26 = vld [vmem:[%s13405_s10 + $0x1f8] sm:$0xff] }
0x10ad   :  { %v12688_v3 = vpop.f32.mrf.mxu1  ;;  %9511 = vmatprep.subr.mxu0 %v6737_v26 }
0x10ae   :  { %9512 = vmatpush3.msra.mxu0 %v6737_v26 }
0x10af   :  { %v9297_v61 = vpop.f32.mrf.mxu1 }
0x10b0   :  { %v5190_v12 = vadd.f32 %v9297_v61, %v5069_v9  ;;  %v4785_v61 = vadd.f32 %v12664_v10, %v12644_v60  ;;  %v6378_v60 = vld [vmem:[%s13405_s10 + $0x1c8] sm:$0xff]  ;;  %v4857_v10 = vadd.f32 %v4853_v45, %v12662_v6 }
0x10b1   :  { %v5184_v15 = vpop.f32.mrf.mxu1 }
0x10b2   :  { %v5185_v49 = vadd.f32 %v5184_v15, %v5069_v9  ;;  %v4856_v4 = vadd.f32 %v4853_v45, %v4785_v61  ;;  %v4795_v15 = vadd.f32 %v12668_v16, %v12646_v41  ;;  %v4805_v41 = vadd.f32 %v12672_v22, %v12648_v58  ;;  %v6377_v16 = vld [vmem:[%s13405_s10 + $0x1c0] sm:$0xff] }
0x10b3   :  { %v9300_v14 = vpop.f32.mrf.mxu1  ;;  %v4861_v58 = vadd.f32 %v4853_v45, %v12670_v62  ;;  %v4865_v62 = vadd.f32 %v4853_v45, %v12678_v0  ;;  %v5295_v0 = vld [vmem:[%s13400_s5 + $0x100] sm:$0xff] }
0x10b4   :  { %9359 = vmatprep.mubr.msk.f32.mxu1 %vm340_vm1, %v5185_v49  ;;  %v5200_v40 = vadd.f32 %v9300_v14, %v5069_v9  ;;  %v4858_v27 = vadd.f32 %v4853_v45, %v4795_v15  ;;  %v4859_v49 = vadd.f32 %v4853_v45, %v12666_v1  ;;  %v4860_v6 = vadd.f32 %v4853_v45, %v4805_v41 }
0x10b5   :  { %v5194_v57 = vpop.f32.mrf.mxu1  ;;  %9360 = vmatmul.mubr.msk.f32.vlgmr.msra.gmra.mxu1 %vm340_vm1, %v5190_v12  ;;  %v4815_v12 = vadd.f32 %v12676_v42, %v12650_v25  ;;  %v4825_v14 = vadd.f32 %v12680_v33, %v12652_v5  ;;  %v4863_v1 = vadd.f32 %v4853_v45, %v12674_v39  ;;  %v4835_v25 = vadd.f32 %v12684_v59, %v12654_v47  ;;  %v5298_v59 = vld [vmem:[%s13400_s5 + $0x118] sm:$0xff] }
0x10b6   :  { %v5195_v63 = vadd.f32 %v5194_v57, %v5069_v9  ;;  %9416 = vmatpush3.msra.mxu1 %v12563_v2  ;;  %v6380_v2 = vld [vmem:[%s13405_s10 + $0x1d8] sm:$0xff]  ;;  %v4845_v5 = vadd.f32 %v12688_v3, %v12656_v48  ;;  %v4867_v39 = vadd.f32 %v4853_v45, %v12682_v43  ;;  %v4869_v47 = vadd.f32 %v4853_v45, %v12686_v23  ;;  %v5296_v48 = vld [vmem:[%s13400_s5 + $0x108] sm:$0xff]  ;;  %v5297_v43 = vld [vmem:[%s13400_s5 + $0x110] sm:$0xff] }
0x10b7   :  { %v9303_v13 = vpop.f32.mrf.mxu1  ;;  %9417 = vmatprep.subr.mxu1 %v5953_v30  ;;  %v4862_v22 = vadd.f32 %v4853_v45, %v4815_v12  ;;  %v4866_v42 = vadd.f32 %v4853_v45, %v4835_v25  ;;  %v5299_v23 = vld [vmem:[%s13400_s5 + $0x120] sm:$0xff]  ;;  %v5300_v3 = vld [vmem:[%s13400_s5 + $0x128] sm:$0xff]  ;;  %v5301_v57 = vld [vmem:[%s13400_s5 + $0x130] sm:$0xff] }
0x10b8   :  { %9362 = vmatprep.mubr.msk.f32.mxu1 %vm340_vm1, %v5195_v63  ;;  %9418 = vmatpush3.msra.mxu1 %v5953_v30  ;;  %v5210_v46 = vadd.f32 %v9303_v13, %v5069_v9  ;;  %v4864_v30 = vadd.f32 %v4853_v45, %v4825_v14  ;;  %v4868_v33 = vadd.f32 %v4853_v45, %v4845_v5  ;;  %v5302_v63 = vld [vmem:[%s13400_s5 + $0x138] sm:$0xff]  ;;  %v5305_v13 = vld [vmem:[%s13400_s5 + $0x150] sm:$0xff]  ;;  %v6735_v45 = vld [vmem:[%s13405_s10 + $0x1e8] sm:$0xff] }
0x10b9   :  { %v5204_v20 = vpop.f32.mrf.mxu1  ;;  %9363 = vmatmul.mubr.msk.f32.gmra.mxu1 %vm340_vm1, %v5200_v40  ;;  %9419 = vmatprep.subr.mxu1 %v5952_v29  ;;  %v5304_v40 = vld [vmem:[%s13400_s5 + $0x148] sm:$0xff]  ;;  %v12897_v12 = vld [vmem:[%s13408_s13 + $0x17] ss:$0 sm:$0xff] }
0x10ba   :  { %v5205_v51 = vadd.f32 %v5204_v20, %v5069_v9  ;;  %9420 = vmatpush3.msra.mxu1 %v5952_v29  ;;  %v5303_v29 = vld [vmem:[%s13400_s5 + $0x140] sm:$0xff] }
0x10bb   :  { %v9306_v11 = vpop.f32.mrf.mxu1  ;;  %9421 = vmatprep.subr.mxu1 %v5951_v35  ;;  %v5307_v20 = vld [vmem:[%s13400_s5 + $0x160] sm:$0xff] }
0x10bc   :  { %9365 = vmatprep.mubr.msk.f32.mxu1 %vm340_vm1, %v5205_v51  ;;  %9422 = vmatpush3.msra.mxu1 %v5951_v35  ;;  %v5220_v8 = vadd.f32 %v9306_v11, %v5069_v9  ;;  %v5306_v35 = vld [vmem:[%s13400_s5 + $0x158] sm:$0xff]  ;;  %v5308_v51 = vld [vmem:[%s13400_s5 + $0x168] sm:$0xff]  ;;  %v12837_v11 = vpop.f32.mrf.mxu0 }
0x10bd   :  { %v5214_v17 = vpop.f32.mrf.mxu1  ;;  %9366 = vmatmul.mubr.msk.f32.gmra.mxu1 %vm340_vm1, %v5210_v46  ;;  %9479 = vmatprep.subr.mxu1 %v6380_v2  ;;  %v5310_v46 = vld [vmem:[%s13400_s5 + $0x178] sm:$0xff] }
0x10be   :  { %v5215_v37 = vadd.f32 %v5214_v17, %v5069_v9  ;;  %v12840_v17 = vpop.f32.mrf.mxu0 }
0x10bf   :  { %v9309_v7 = vpop.f32.mrf.mxu1 }
0x10c0   :  { %9368 = vmatprep.mubr.msk.f32.mxu1 %vm340_vm1, %v5215_v37  ;;  %v5230_v53 = vadd.f32 %v9309_v7, %v5069_v9  ;;  %v12842_v37 = vpop.f32.mrf.mxu0 }
0x10c1   :  { %v5224_v34 = vpop.f32.mrf.mxu1  ;;  %9369 = vmatmul.mubr.msk.f32.gmra.mxu1 %vm340_vm1, %v5220_v8 }
0x10c2   :  { %v5225_v38 = vadd.f32 %v5224_v34, %v5069_v9  ;;  %v12844_v8 = vpop.f32.mrf.mxu0 }
0x10c3   :  { %v9312_v55 = vpop.f32.mrf.mxu1 }
0x10c4   :  { %9371 = vmatprep.mubr.msk.f32.mxu1 %vm340_vm1, %v5225_v38  ;;  %v5240_v18 = vadd.f32 %v9312_v55, %v5069_v9  ;;  %v12846_v7 = vpop.f32.mrf.mxu0 }
0x10c5   :  { %v5234_v52 = vpop.f32.mrf.mxu1  ;;  %9372 = vmatmul.mubr.msk.f32.gmra.mxu1 %vm340_vm1, %v5230_v53 }
0x10c6   :  { %v5235_v32 = vadd.f32 %v5234_v52, %v5069_v9  ;;  %v12848_v34 = vpop.f32.mrf.mxu0 }
0x10c7   :  { %v9315_v21 = vpop.f32.mrf.mxu1 }
0x10c8   :  { %9374 = vmatprep.mubr.msk.f32.mxu1 %vm340_vm1, %v5235_v32  ;;  %v5250_v31 = vadd.f32 %v9315_v21, %v5069_v9  ;;  %v9338_v38 = vpop.f32.mrf.mxu0 }
0x10c9   :  { %v5244_v19 = vpop.f32.mrf.mxu1  ;;  %9375 = vmatmul.mubr.msk.f32.gmra.mxu1 %vm340_vm1, %v5240_v18  ;;  %v5516_v14 = vadd.f32 %v9338_v38, %v12897_v12 }
0x10ca   :  { %v5245_v50 = vadd.f32 %v5244_v19, %v5069_v9  ;;  %v5460_v53 = vpop.f32.mrf.mxu0 }
0x10cb   :  { %v9318_v24 = vpop.f32.mrf.mxu1 }
0x10cc   :  { %9377 = vmatprep.mubr.msk.f32.mxu1 %vm340_vm1, %v5245_v50  ;;  %v5260_v44 = vadd.f32 %v9318_v24, %v5069_v9  ;;  %v9341_v55 = vpop.f32.mrf.mxu0 }
0x10cd   :  { %v5254_v28 = vpop.f32.mrf.mxu1  ;;  %9378 = vmatmul.mubr.msk.f32.gmra.mxu1 %vm340_vm1, %v5250_v31 }
0x10ce   :  { %v5255_v36 = vadd.f32 %v5254_v28, %v5069_v9  ;;  %v6379_v9 = vld [vmem:[%s13405_s10 + $0x1d0] sm:$0xff]  ;;  %v12850_v52 = vpop.f32.mrf.mxu0 }
0x10cf   :  { %v6736_v28 = vld [vmem:[%s13405_s10 + $0x1f0] sm:$0xff] }
0x10d0   :  { %9380 = vmatprep.mubr.msk.f32.mxu1 %vm340_vm1, %v5255_v36  ;;  %v9344_v32 = vpop.f32.mrf.mxu0  ;;  %9513 = vmatprep.subr.mxu0 %v6736_v28 }
0x10d1   :  { %9381 = vmatmul.mubr.msk.f32.gmra.mxu1 %vm340_vm1, %v5260_v44  ;;  %9514 = vmatpush3.msra.mxu0 %v6736_v28  ;;  %v6734_v44 = vld [vmem:[%s13405_s10 + $0x1e0] sm:$0xff] }
0x10d2   :  { %9423 = vmatprep.mubr.msk.f32.mxu1 %vm340_vm1, %v4854_v56  ;;  %v12852_v18 = vpop.f32.mrf.mxu0  ;;  %9515 = vmatprep.subr.mxu0 %v6735_v45 }
0x10d3   :  { %9516 = vmatpush3.msra.mxu0 %v6735_v45 }
0x10d4   :  { %v9347_v21 = vpop.f32.mrf.mxu0  ;;  %9517 = vmatprep.subr.mxu0 %v6734_v44 }
0x10d5   :  { %9424 = vmatmul.mubr.msk.f32.vlgmr.msra.gmra.mxu1 %vm340_vm1, %v4855_v54  ;;  %9518 = vmatpush3.msra.mxu0 %v6734_v44 }
0x10d6   :  { %9426 = vmatprep.mubr.msk.f32.mxu1 %vm340_vm1, %v4856_v4  ;;  %9480 = vmatpush3.msra.mxu1 %v6380_v2  ;;  %v5309_v2 = vld [vmem:[%s13400_s5 + $0x170] sm:$0xff]  ;;  %v12854_v19 = vpop.f32.mrf.mxu0 }
0x10d7   :  { %9481 = vmatprep.subr.mxu1 %v6379_v9 }
0x10d8   :  { %9482 = vmatpush3.msra.mxu1 %v6379_v9  ;;  %v9350_v50 = vpop.f32.mrf.mxu0 }
0x10d9   :  { %9427 = vmatmul.mubr.msk.f32.gmra.mxu1 %vm340_vm1, %v4857_v10  ;;  %9483 = vmatprep.subr.mxu1 %v6378_v60 }
0x10da   :  { %9429 = vmatprep.mubr.msk.f32.mxu1 %vm340_vm1, %v4858_v27  ;;  %9484 = vmatpush3.msra.mxu1 %v6378_v60  ;;  %v12856_v31 = vpop.f32.mrf.mxu0 }
0x10db   :  { %9485 = vmatprep.subr.mxu1 %v6377_v16 }
0x10dc   :  { %9486 = vmatpush3.msra.mxu1 %v6377_v16  ;;  %v12858_v24 = vpop.f32.mrf.mxu0 }
0x10dd   :  { %9430 = vmatmul.mubr.msk.f32.gmra.mxu1 %vm340_vm1, %v4859_v49 }
0x10de   :  { %9432 = vmatprep.mubr.msk.f32.mxu1 %vm340_vm1, %v4860_v6  ;;  %v12866_v36 = vpop.f32.mrf.mxu0 }
0x10e0   :  { %v12874_v56 = vpop.f32.mrf.mxu0 }
0x10e1   :  { %9433 = vmatmul.mubr.msk.f32.gmra.mxu1 %vm340_vm1, %v4861_v58 }
0x10e2   :  { %9435 = vmatprep.mubr.msk.f32.mxu1 %vm340_vm1, %v4862_v22  ;;  %v12876_v61 = vpop.f32.mrf.mxu0 }
0x10e4   :  { %v12878_v54 = vpop.f32.mrf.mxu0 }
0x10e5   :  { %9436 = vmatmul.mubr.msk.f32.gmra.mxu1 %vm340_vm1, %v4863_v1 }
0x10e6   :  { %9438 = vmatprep.mubr.msk.f32.mxu1 %vm340_vm1, %v4864_v30  ;;  %v12880_v4 = vpop.f32.mrf.mxu0 }
0x10e8   :  { %v12882_v15 = vpop.f32.mrf.mxu0 }
0x10e9   :  { %9439 = vmatmul.mubr.msk.f32.gmra.mxu1 %vm340_vm1, %v4865_v62  ;;  %v5515_v62 = vadd.f32 %v5460_v53, %v12897_v12 }
0x10ea   :  { %9441 = vmatprep.mubr.msk.f32.mxu1 %vm340_vm1, %v4866_v42  ;;  %v12884_v9 = vpop.f32.mrf.mxu0  ;;  %v5518_v42 = vadd.f32 %v9341_v55, %v12897_v12 }
0x10ec   :  { %v12886_v60 = vpop.f32.mrf.mxu0 }
0x10ed   :  { %9442 = vmatmul.mubr.msk.f32.gmra.mxu1 %vm340_vm1, %v4867_v39 }
0x10ee   :  { %9444 = vmatprep.mubr.msk.f32.mxu1 %vm340_vm1, %v4868_v33  ;;  %v12888_v10 = vpop.f32.mrf.mxu0 }
0x10f0   :  { %v12890_v16 = vpop.f32.mrf.mxu0 }
0x10f1   :  { %9445 = vmatmul.mubr.msk.f32.gmra.mxu1 %vm340_vm1, %v4869_v47 }
0x10f2   :  { %9487 = vmatprep.mubr.msk.f32.mxu1 %vm340_vm1, %v5295_v0  ;;  %v12899_v58 = vpop.f32.mrf.mxu0 }
0x10f4   :  { %v12904_v30 = vpop.f32.mrf.mxu0 }
0x10f5   :  { %9488 = vmatmul.mubr.msk.f32.vlgmr.msra.gmra.mxu1 %vm340_vm1, %v5296_v48  ;;  %v5520_v48 = vadd.f32 %v9344_v32, %v12897_v12 }
0x10f6   :  { %9490 = vmatprep.mubr.msk.f32.mxu1 %vm340_vm1, %v5297_v43  ;;  %v12912_v47 = vpop.f32.mrf.mxu0 }
0x10f9   :  { %9491 = vmatmul.mubr.msk.f32.gmra.mxu1 %vm340_vm1, %v5298_v59 }
0x10fa   :  { %9493 = vmatprep.mubr.msk.f32.mxu1 %vm340_vm1, %v5299_v23  ;;  %v12917_v23 = vpop.f32.mrf.mxu0 }
0x10fd   :  { %9494 = vmatmul.mubr.msk.f32.gmra.mxu1 %vm340_vm1, %v5300_v3 }
0x10fe   :  { %9496 = vmatprep.mubr.msk.f32.mxu1 %vm340_vm1, %v5301_v57  ;;  %v5522_v57 = vadd.f32 %v9347_v21, %v12897_v12 }
0x1101   :  { %9497 = vmatmul.mubr.msk.f32.gmra.mxu1 %vm340_vm1, %v5302_v63 }
0x1102   :  { %9499 = vmatprep.mubr.msk.f32.mxu1 %vm340_vm1, %v5303_v29 }
0x1105   :  { %9500 = vmatmul.mubr.msk.f32.gmra.mxu1 %vm340_vm1, %v5304_v40  ;;  %v12922_v40 = vpop.f32.mrf.mxu0 }
0x1106   :  { %9502 = vmatprep.mubr.msk.f32.mxu1 %vm340_vm1, %v5305_v13 }
0x1109   :  { %9503 = vmatmul.mubr.msk.f32.gmra.mxu1 %vm340_vm1, %v5306_v35  ;;  %v5524_v35 = vadd.f32 %v9350_v50, %v12897_v12 }
0x110a   :  { %9505 = vmatprep.mubr.msk.f32.mxu1 %vm340_vm1, %v5307_v20 }
0x110d   :  { %9506 = vmatmul.mubr.msk.f32.gmra.mxu1 %vm340_vm1, %v5308_v51 }
0x110e   :  { %9508 = vmatprep.mubr.msk.f32.mxu1 %vm340_vm1, %v5309_v2  ;;  %v9457_v2 = vpop.f32.mrf.mxu0 }
0x1110   :  { %v6282_v55 = vpop.f32.mrf.mxu0 }
0x1111   :  { %9509 = vmatmul.mubr.msk.f32.gmra.mxu1 %vm340_vm1, %v5310_v46 }
0x1112   :  { %v12929_v21 = vpop.f32.mrf.mxu0 }
0x1114   :  { %v12931_v44 = vpop.f32.mrf.mxu0 }
0x1116   :  { %v12935_v50 = vpop.f32.mrf.mxu0 }
0x1117   :  { %13492 = vst [vmem:[#allocation12_spill] sm:$0xff] %v12935_v50 }
0x1175   :  { %v9361_v27 = vpop.f32.mrf.mxu1 }
0x1177   :  { %v5643_v41 = vpop.f32.mrf.mxu1 }
0x1179   :  { %v9364_v49 = vpop.f32.mrf.mxu1 }
0x117b   :  { %v12892_v6 = vpop.f32.mrf.mxu1 }
0x117d   :  { %v12901_v22 = vpop.f32.mrf.mxu1 }
0x117f   :  { %v5663_v1 = vpop.f32.mrf.mxu1 }
0x1181   :  { %v9370_v25 = vpop.f32.mrf.mxu1 }
0x1182   :  { %v12908_v5 = vadd.f32 %v9370_v25, %v5516_v14 }
0x1183   :  { %v5673_v39 = vpop.f32.mrf.mxu1 }
0x1184   :  { %v12910_v33 = vadd.f32 %v5673_v39, %v5515_v62 }
0x1185   :  { %v9373_v0 = vpop.f32.mrf.mxu1 }
0x1186   :  { %v12915_v43 = vadd.f32 %v9373_v0, %v5518_v42  ;;  %v12939_v42 = vpop.f32.mrf.mxu0 }
0x1187   :  { %v5683_v59 = vpop.f32.mrf.mxu1  ;;  %13493 = vst [vmem:[#allocation13_spill] sm:$0xff] %v12939_v42 }
0x1189   :  { %v9376_v3 = vpop.f32.mrf.mxu1 }
0x118a   :  { %v12920_v63 = vadd.f32 %v9376_v3, %v5520_v48  ;;  %v5510_v48 = vadd.f32 %v12837_v11, %v12897_v12  ;;  %v12947_v3 = vpop.f32.mrf.mxu0  ;;  %v5514_v11 = vadd.f32 %v12846_v7, %v12897_v12 }
0x118b   :  { %v5693_v29 = vpop.f32.mrf.mxu1  ;;  %13496 = vst [vmem:[#allocation16_spill] sm:$0xff] %v12947_v3  ;;  %v5511_v3 = vadd.f32 %v12844_v8, %v12897_v12 }
0x118c   :  { %v5723_v42 = vadd.f32 %v9361_v27, %v5510_v48  ;;  %v12957_v50 = vpop.f32.mrf.mxu0  ;;  %v5517_v27 = vadd.f32 %v12850_v52, %v12897_v12 }
0x118d   :  { %v9379_v13 = vpop.f32.mrf.mxu1  ;;  %v5724_v48 = vadd.f32 %v12892_v6, %v5511_v3  ;;  %v5521_v6 = vadd.f32 %v12854_v19, %v12897_v12  ;;  %v5523_v3 = vadd.f32 %v12856_v31, %v12897_v12  ;;  %v5941_v19 = vadd.f32 %v12884_v9, %v12910_v33 }
0x118e   :  { %v12925_v20 = vadd.f32 %v9379_v13, %v5522_v57  ;;  %v5944_v31 = vadd.f32 %v12886_v60, %v12915_v43 }
0x118f   :  { %v5703_v51 = vpop.f32.mrf.mxu1 }
0x1190   :  { %v5948_v9 = vadd.f32 %v12904_v30, %v12925_v20 }
0x1191   :  { %v9382_v46 = vpop.f32.mrf.mxu1 }
0x1192   :  { %v12927_v38 = vadd.f32 %v9382_v46, %v5524_v35  ;;  %v5509_v35 = vadd.f32 %v12840_v17, %v12897_v12  ;;  %v5512_v46 = vadd.f32 %v12842_v37, %v12897_v12  ;;  %v5513_v17 = vadd.f32 %v12848_v34, %v12897_v12 }
0x1193   :  { %v5713_v53 = vpop.f32.mrf.mxu1  ;;  %v5936_v37 = vadd.f32 %v12858_v24, %v5723_v42  ;;  %v5519_v34 = vadd.f32 %v12852_v18, %v12897_v12  ;;  %v5730_v24 = vadd.f32 %v5683_v59, %v5517_v27 }
0x1194   :  { %v5726_v8 = vadd.f32 %v5663_v1, %v5513_v17  ;;  %v5937_v1 = vadd.f32 %v12876_v61, %v5724_v48  ;;  %v5736_v12 = vadd.f32 %v5713_v53, %v5523_v3  ;;  %v13504_v17 = vld [vmem:[#allocation12_spill] sm:$0xff] }
0x1195   :  { %v9425_v32 = vpop.f32.mrf.mxu1 }
0x1196   :  { %v5939_v59 = vadd.f32 %v12880_v4, %v5726_v8  ;;  %v5946_v4 = vadd.f32 %v12890_v16, %v12920_v63  ;;  %v13021_v63 = vadd.f32 %v12922_v40, %v5736_v12 }
0x1197   :  { %v6069_v26 = vpop.f32.mrf.mxu1 }
0x1199   :  { %v9428_v28 = vpop.f32.mrf.mxu1 }
0x119b   :  { %v6079_v45 = vpop.f32.mrf.mxu1 }
0x119d   :  { %v9431_v14 = vpop.f32.mrf.mxu1 }
0x119f   :  { %v12933_v25 = vpop.f32.mrf.mxu1 }
0x11a1   :  { %v12937_v62 = vpop.f32.mrf.mxu1 }
0x11a3   :  { %v12941_v39 = vpop.f32.mrf.mxu1 }
0x11a4   :  { %13494 = vst [vmem:[#allocation14_spill] sm:$0xff] %v12941_v39 }
0x11a5   :  { %v12943_v0 = vpop.f32.mrf.mxu1 }
0x11a6   :  { %13495 = vst [vmem:[#allocation15_spill] sm:$0xff] %v12943_v0  ;;  %v5722_v0 = vadd.f32 %v5643_v41, %v5509_v35  ;;  %v5727_v41 = vadd.f32 %v12901_v22, %v5514_v11  ;;  %v6149_v35 = vadd.f32 %v9425_v32, %v5936_v37  ;;  %v5732_v22 = vadd.f32 %v5693_v29, %v5519_v34 }
0x11a7   :  { %v12949_v57 = vpop.f32.mrf.mxu1 }
0x11a8   :  { %13497 = vst [vmem:[#allocation6_spill] sm:$0xff] %v12949_v57 }
0x11a9   :  { %v12951_v13 = vpop.f32.mrf.mxu1 }
0x11aa   :  { %13498 = vst [vmem:[#allocation18_spill] sm:$0xff] %v12951_v13  ;;  %v5725_v13 = vadd.f32 %v9364_v49, %v5512_v46  ;;  %v5940_v46 = vadd.f32 %v12878_v54, %v5727_v41  ;;  %v6150_v54 = vadd.f32 %v6079_v45, %v5937_v1  ;;  %v13505_v41 = vld [vmem:[#allocation13_spill] sm:$0xff] }
0x11ab   :  { %v12959_v39 = vpop.f32.mrf.mxu1 }
0x11ac   :  { %13499 = vst [vmem:[#allocation19_spill] sm:$0xff] %v12959_v39  ;;  %v12973_v39 = vpop.f32.mrf.mxu0  ;;  %v5938_v52 = vadd.f32 %v12874_v56, %v5725_v13  ;;  %v5942_v56 = vadd.f32 %v12882_v15, %v12908_v5  ;;  %v6153_v33 = vadd.f32 %v9431_v14, %v5940_v46  ;;  %v6363_v14 = vadd.f32 %v12931_v44, %v6150_v54 }
0x11ad   :  { %v12965_v57 = vpop.f32.mrf.mxu1 }
0x11ae   :  { %13500 = vst [vmem:[#allocation21_spill] sm:$0xff] %v12965_v57  ;;  %v5935_v57 = vadd.f32 %v12866_v36, %v5722_v0  ;;  %v6322_v32 = vpop.f32.mrf.mxu0  ;;  %v6362_v0 = vadd.f32 %v9457_v2, %v6149_v35  ;;  %v6151_v18 = vadd.f32 %v9428_v28, %v5938_v52  ;;  %v5943_v2 = vadd.f32 %v12888_v10, %v5730_v24  ;;  %v13506_v35 = vld [vmem:[#allocation16_spill] sm:$0xff] }
0x11af   :  { %v12975_v7 = vpop.f32.mrf.mxu1  ;;  %v6152_v10 = vadd.f32 %v12933_v25, %v5939_v59  ;;  %v13501_v25 = vld [vmem:[#allocation14_spill] sm:$0xff]  ;;  %v6366_v37 = vadd.f32 %v13504_v17, %v6153_v33 }
0x11b0   :  { %v6148_v42 = vadd.f32 %v6069_v26, %v5935_v57  ;;  %v5734_v26 = vadd.f32 %v5703_v51, %v5521_v6  ;;  %v5945_v51 = vadd.f32 %v12899_v58, %v5732_v22  ;;  %v9472_v15 = vpop.f32.mrf.mxu0  ;;  %v6364_v60 = vadd.f32 %v12929_v21, %v6151_v18  ;;  %v13503_v13 = vld [vmem:[#allocation6_spill] sm:$0xff] }
0x11b1   :  { %v12981_v49 = vpop.f32.mrf.mxu1  ;;  %v13018_v58 = vadd.f32 %v12917_v23, %v12927_v38  ;;  %v6156_v11 = vadd.f32 %v13503_v13, %v5943_v2  ;;  %v6365_v8 = vadd.f32 %v13505_v41, %v6152_v10  ;;  %v13507_v34 = vld [vmem:[#allocation18_spill] sm:$0xff] }
0x11b2   :  { %v6361_v29 = vadd.f32 %v6282_v55, %v6148_v42  ;;  %v6155_v55 = vadd.f32 %v12937_v62, %v5942_v56  ;;  %v13014_v16 = vadd.f32 %v12912_v47, %v5734_v26  ;;  %v6154_v62 = vadd.f32 %v13501_v25, %v5941_v19  ;;  %v13502_v47 = vld [vmem:[#allocation15_spill] sm:$0xff]  ;;  %v6332_v23 = vpop.f32.mrf.mxu0 }
0x11b3   :  { %v12989_v36 = vpop.f32.mrf.mxu1  ;;  %v6157_v57 = vadd.f32 %v13502_v47, %v5944_v31  ;;  %v6159_v24 = vadd.f32 %v13507_v34, %v5946_v4  ;;  %v6369_v46 = vadd.f32 %v6322_v32, %v6156_v11  ;;  %v13508_v19 = vld [vmem:[#allocation19_spill] sm:$0xff]  ;;  %v6163_v41 = vadd.f32 %v12981_v49, %v13018_v58 }
0x11b4   :  { %v6368_v44 = vadd.f32 %v13506_v35, %v6155_v55  ;;  %v9475_v59 = vpop.f32.mrf.mxu0  ;;  %v6158_v31 = vadd.f32 %v13508_v19, %v5945_v51 }
0x11b5   :  { %v9489_v61 = vpop.f32.mrf.mxu1  ;;  %v6370_v18 = vadd.f32 %v12973_v39, %v6157_v57  ;;  %v6372_v2 = vadd.f32 %v9472_v15, %v6159_v24  ;;  %v13509_v51 = vld [vmem:[#allocation21_spill] sm:$0xff] }
0x11b6   :  { %v13000_v28 = vadd.f32 %v9489_v61, %v6362_v0  ;;  %v6367_v0 = vadd.f32 %v12957_v50, %v6154_v62  ;;  %v6161_v33 = vadd.f32 %v13509_v51, %v5948_v9 }
0x11b7   :  { %v6495_v5 = vpop.f32.mrf.mxu1 }
0x11b8   :  { %v6607_v43 = vmul.f32 0.044715, %v13000_v28  ;;  %v13009_v53 = vadd.f32 %v6495_v5, %v6361_v29 }
0x11b9   :  { %v9492_v30 = vpop.f32.mrf.mxu1 }
0x11ba   :  { %v6623_v20 = vmul.f32 %v6607_v43, %v13000_v28  ;;  %v6606_v21 = vmul.f32 0.044715, %v13009_v53  ;;  %v13025_v45 = vadd.f32 %v9492_v30, %v6364_v60  ;;  %v6342_v43 = vpop.f32.mrf.mxu0 }
0x11bb   :  { %v6505_v38 = vpop.f32.mrf.mxu1 }
0x11bc   :  { %v6639_v40 = vmul.f32 %v6623_v20, %v13000_v28  ;;  %v6622_v27 = vmul.f32 %v6606_v21, %v13009_v53  ;;  %v6609_v48 = vmul.f32 0.044715, %v13025_v45  ;;  %v13038_v42 = vadd.f32 %v6505_v38, %v6363_v14  ;;  %v9478_v17 = vpop.f32.mrf.mxu0 }
0x11bd   :  { %v9495_v52 = vpop.f32.mrf.mxu1  ;;  %v6371_v20 = vadd.f32 %v6332_v23, %v6158_v31  ;;  %v6160_v23 = vadd.f32 %v12975_v7, %v13014_v16 }
0x11be   :  { %v6655_v6 = vadd.f32 %v6639_v40, %v13000_v28  ;;  %v6638_v3 = vmul.f32 %v6622_v27, %v13009_v53  ;;  %v6625_v22 = vmul.f32 %v6609_v48, %v13025_v45  ;;  %v13043_v1 = vadd.f32 %v9495_v52, %v6366_v37 }
0x11bf   :  { %v6608_v26 = vmul.f32 0.044715, %v13038_v42  ;;  %v6515_v56 = vpop.f32.mrf.mxu1  ;;  %v6162_v52 = vadd.f32 %v12989_v36, %v13021_v63 }
0x11c0   :  { %v6671_v61 = vmul.f32 0.7978846, %v6655_v6  ;;  %v6654_v12 = vadd.f32 %v6638_v3, %v13009_v53  ;;  %v6641_v29 = vmul.f32 %v6625_v22, %v13025_v45  ;;  %v6611_v4 = vmul.f32 0.044715, %v13043_v1  ;;  %v6352_v22 = vpop.f32.mrf.mxu0 }
0x11c1   :  { %v6624_v54 = vmul.f32 %v6608_v26, %v13038_v42  ;;  %v13053_v50 = vadd.f32 %v6515_v56, %v6365_v8  ;;  %v9498_v39 = vpop.f32.mrf.mxu1  ;;  %v6374_v3 = vadd.f32 %v9475_v59, %v6161_v33  ;;  %v6376_v56 = vadd.f32 %v9478_v17, %v6163_v41 }
0x11c2   :  { %9739 = vtanh.f32 %v6671_v61  ;;  %v6657_v32 = vadd.f32 %v6641_v29, %v13025_v45  ;;  %v13056_v5 = vadd.f32 %v9498_v39, %v6368_v44  ;;  %v6670_v60 = vmul.f32 0.7978846, %v6654_v12 }
0x11c3   :  { %v6640_v10 = vmul.f32 %v6624_v54, %v13038_v42  ;;  %v6627_v15 = vmul.f32 %v6611_v4, %v13043_v1  ;;  %v6610_v55 = vmul.f32 0.044715, %v13053_v50  ;;  %v6525_v30 = vpop.f32.mrf.mxu1  ;;  %v6375_v59 = vadd.f32 %v6352_v22, %v6162_v52 }
0x11c4   :  { %v6673_v21 = vmul.f32 0.7978846, %v6657_v32  ;;  %v6613_v14 = vmul.f32 0.044715, %v13056_v5  ;;  %v13063_v25 = vadd.f32 %v6525_v30, %v6367_v0  ;;  %9741 = vtanh.f32 %v6670_v60 }
0x11c5   :  { %v6656_v62 = vadd.f32 %v6640_v10, %v13038_v42  ;;  %v6643_v47 = vmul.f32 %v6627_v15, %v13043_v1  ;;  %v6626_v9 = vmul.f32 %v6610_v55, %v13053_v50  ;;  %v9501_v57 = vpop.f32.mrf.mxu1  ;;  %v6591_v39 = vmul.f32 0.5, %v13000_v28 }
0x11c6   :  { %9743 = vtanh.f32 %v6673_v21  ;;  %v6629_v13 = vmul.f32 %v6613_v14, %v13056_v5  ;;  %v6612_v11 = vmul.f32 0.044715, %v13063_v25  ;;  %v13070_v38 = vadd.f32 %v9501_v57, %v6370_v18 }
0x11c7   :  { %v6659_v37 = vadd.f32 %v6643_v47, %v13043_v1  ;;  %v6642_v40 = vmul.f32 %v6626_v9, %v13053_v50  ;;  %v6535_v27 = vpop.f32.mrf.mxu1  ;;  %v6672_v48 = vmul.f32 0.7978846, %v6656_v62  ;;  %v6590_v55 = vmul.f32 0.5, %v13009_v53 }
0x11c8   :  { %v6645_v8 = vmul.f32 %v6629_v13, %v13056_v5  ;;  %v6628_v35 = vmul.f32 %v6612_v11, %v13063_v25  ;;  %v6615_v44 = vmul.f32 0.044715, %v13070_v38  ;;  %v13082_v7 = vadd.f32 %v6535_v27, %v6369_v46 }
0x11c9   :  { %v6675_v34 = vmul.f32 0.7978846, %v6659_v37  ;;  %v6658_v24 = vadd.f32 %v6642_v40, %v13053_v50  ;;  %v9504_v16 = vpop.f32.mrf.mxu1  ;;  %9745 = vtanh.f32 %v6672_v48  ;;  %v6373_v46 = vadd.f32 %v6342_v43, %v6160_v23 }
0x11ca   :  { %v6661_v6 = vadd.f32 %v6645_v8, %v13056_v5  ;;  %v6631_v49 = vmul.f32 %v6615_v44, %v13070_v38  ;;  %v13088_v58 = vadd.f32 %v9504_v16, %v6372_v2  ;;  %v6614_v0 = vmul.f32 0.044715, %v13082_v7 }
0x11cb   :  { %9747 = vtanh.f32 %v6675_v34  ;;  %v6545_v18 = vpop.f32.mrf.mxu1  ;;  %v6674_v26 = vmul.f32 0.7978846, %v6658_v24  ;;  %v6644_v19 = vmul.f32 %v6628_v35, %v13063_v25  ;;  %v6593_v43 = vmul.f32 0.5, %v13025_v45 }
0x11cc   :  { %v6647_v31 = vmul.f32 %v6631_v49, %v13070_v38  ;;  %v6630_v36 = vmul.f32 %v6614_v0, %v13082_v7  ;;  %v6617_v63 = vmul.f32 0.044715, %v13088_v58  ;;  %v13095_v61 = vadd.f32 %v6545_v18, %v6371_v20 }
0x11cd   :  { %v9507_v12 = vpop.f32.mrf.mxu1  ;;  %9749 = vtanh.f32 %v6674_v26  ;;  %v6677_v29 = vmul.f32 0.7978846, %v6661_v6  ;;  %v6660_v10 = vadd.f32 %v6644_v19, %v13063_v25 }
0x11ce   :  { %v6663_v2 = vadd.f32 %v6647_v31, %v13070_v38  ;;  %v13098_v54 = vadd.f32 %v9507_v12, %v6374_v3  ;;  %v6646_v32 = vmul.f32 %v6630_v36, %v13082_v7  ;;  %v6633_v60 = vmul.f32 %v6617_v63, %v13088_v58 }
0x11cf   :  { %v9740_v4 = vpop.eup %9739  ;;  %v6616_v51 = vmul.f32 0.044715, %v13095_v61  ;;  %v6555_v33 = vpop.f32.mrf.mxu1  ;;  %9751 = vtanh.f32 %v6677_v29  ;;  %v6676_v44 = vmul.f32 0.7978846, %v6660_v10  ;;  %v6592_v3 = vmul.f32 0.5, %v13038_v42 }
0x11d0   :  { %v6619_v15 = vmul.f32 0.044715, %v13098_v54  ;;  %v6703_v30 = vadd.f32 1.0, %v9740_v4  ;;  %v6649_v20 = vmul.f32 %v6633_v60, %v13088_v58  ;;  %v13110_v21 = vadd.f32 %v6555_v33, %v6373_v46 }
0x11d1   :  { %v6632_v28 = vmul.f32 %v6616_v51, %v13095_v61  ;;  %v9510_v14 = vpop.f32.mrf.mxu1  ;;  %v9742_v62 = vpop.eup %9741  ;;  %v6679_v47 = vmul.f32 0.7978846, %v6663_v2  ;;  %v6662_v13 = vadd.f32 %v6646_v32, %v13082_v7  ;;  %v6594_v2 = vmul.f32 0.5, %v13053_v50 }
0x11d2   :  { %v6635_v9 = vmul.f32 %v6619_v15, %v13098_v54  ;;  %v13113_v45 = vadd.f32 %v9510_v14, %v6376_v56  ;;  %v6618_v11 = vmul.f32 0.044715, %v13110_v21  ;;  %v6702_v17 = vadd.f32 1.0, %v9742_v62 }
0x11d3   :  { %v9744_v57 = vpop.eup %9743  ;;  %v6648_v53 = vmul.f32 %v6632_v28, %v13095_v61  ;;  %v6565_v23 = vpop.f32.mrf.mxu1  ;;  %v6665_v37 = vadd.f32 %v6649_v20, %v13088_v58  ;;  %v6719_v41 = vmul.f32 %v6703_v30, %v6591_v39  ;;  %v6678_v0 = vmul.f32 0.7978846, %v6662_v13 }
0x11d4   :  { %v6651_v40 = vmul.f32 %v6635_v9, %v13098_v54  ;;  %v6621_v27 = vmul.f32 0.044715, %v13113_v45  ;;  %v13121_v48 = vadd.f32 %v6565_v23, %v6375_v59  ;;  %v6634_v8 = vmul.f32 %v6618_v11, %v13110_v21 }
0x11d5   :  { %v6718_v35 = vmul.f32 %v6702_v17, %v6590_v55  ;;  %v6664_v24 = vadd.f32 %v6648_v53, %v13095_v61  ;;  %v6705_v6 = vadd.f32 1.0, %v9744_v57  ;;  %9753 = vtanh.f32 %v6679_v47 }
0x11d6   :  { %v9746_v34 = vpop.eup %9745  ;;  %v6637_v16 = vmul.f32 %v6621_v27, %v13113_v45  ;;  %v6620_v52 = vmul.f32 0.044715, %v13121_v48  ;;  %v6650_v49 = vmul.f32 %v6634_v8, %v13110_v21  ;;  %v6681_v26 = vmul.f32 0.7978846, %v6665_v37 }
0x11d7   :  { %9519 = vmatprep.mubr.msk.f32.mxu0 %vm340_vm1, %v6718_v35  ;;  %v6704_v22 = vadd.f32 1.0, %v9746_v34  ;;  %v6667_v46 = vadd.f32 %v6651_v40, %v13098_v54  ;;  %9755 = vtanh.f32 %v6676_v44  ;;  %v6721_v12 = vmul.f32 %v6705_v6, %v6593_v43 }
0x11d8   :  { %v9748_v18 = vpop.eup %9747  ;;  %v6636_v56 = vmul.f32 %v6620_v52, %v13121_v48  ;;  %9520 = vmatmul.mubr.msk.f32.vlgmr.msra.gmra.mxu0 %vm340_vm1, %v6719_v41  ;;  %v6666_v19 = vadd.f32 %v6650_v49, %v13110_v21  ;;  %v6653_v31 = vmul.f32 %v6637_v16, %v13113_v45  ;;  %v6680_v29 = vmul.f32 0.7978846, %v6664_v24 }
0x11d9   :  { %v6720_v36 = vmul.f32 %v6704_v22, %v6592_v3  ;;  %v6707_v59 = vadd.f32 1.0, %v9748_v18  ;;  %9757 = vtanh.f32 %v6678_v0  ;;  %v6595_v39 = vmul.f32 0.5, %v13043_v1 }
0x11da   :  { %v9750_v63 = vpop.eup %9749  ;;  %v6652_v42 = vmul.f32 %v6636_v56, %v13121_v48  ;;  %9759 = vtanh.f32 %v6680_v29  ;;  %v6682_v51 = vmul.f32 0.7978846, %v6666_v19  ;;  %v6683_v33 = vmul.f32 0.7978846, %v6667_v46  ;;  %v7076_v46 = vld [vmem:[%s13405_s10 + $0x200] sm:$0xff] }
0x11db   :  { %9522 = vmatprep.mubr.msk.f32.mxu0 %vm340_vm1, %v6720_v36  ;;  %v6706_v4 = vadd.f32 1.0, %v9750_v63  ;;  %9761 = vtanh.f32 %v6681_v26  ;;  %v6669_v43 = vadd.f32 %v6653_v31, %v13113_v45  ;;  %v6723_v10 = vmul.f32 %v6707_v59, %v6595_v39  ;;  %v13179_v56 = vld [vmem:[%s13408_s13 + $0x20] ss:$0 sm:$0xff] }
0x11dc   :  { %v6668_v32 = vadd.f32 %v6652_v42, %v13121_v48  ;;  %9523 = vmatmul.mubr.msk.f32.gmra.mxu0 %vm340_vm1, %v6721_v12  ;;  %v9752_v55 = vpop.eup %9751  ;;  %9763 = vtanh.f32 %v6682_v51  ;;  %v6596_v28 = vmul.f32 0.5, %v13063_v25  ;;  %v6597_v47 = vmul.f32 0.5, %v13056_v5 }
0x11dd   :  { %v6722_v60 = vmul.f32 %v6706_v4, %v6594_v2  ;;  %v6685_v1 = vmul.f32 0.7978846, %v6669_v43  ;;  %v6709_v20 = vadd.f32 1.0, %v9752_v55  ;;  %v6598_v13 = vmul.f32 0.5, %v13082_v7 }
0x11de   :  { %v6684_v15 = vmul.f32 0.7978846, %v6668_v32  ;;  %v6600_v27 = vmul.f32 0.5, %v13095_v61  ;;  %v6599_v25 = vmul.f32 0.5, %v13070_v38  ;;  %v6602_v24 = vmul.f32 0.5, %v13110_v21 }
0x11df   :  { %9525 = vmatprep.mubr.msk.f32.mxu0 %vm340_vm1, %v6722_v60  ;;  %v6725_v23 = vmul.f32 %v6709_v20, %v6597_v47  ;;  %v6601_v16 = vmul.f32 0.5, %v13088_v58  ;;  %v6604_v3 = vmul.f32 0.5, %v13121_v48  ;;  %v6603_v22 = vmul.f32 0.5, %v13098_v54  ;;  %v7079_v54 = vld [vmem:[%s13405_s10 + $0x218] sm:$0xff]  ;;  %v7078_v48 = vld [vmem:[%s13405_s10 + $0x210] sm:$0xff] }
0x11e0   :  { %9526 = vmatmul.mubr.msk.f32.gmra.mxu0 %vm340_vm1, %v6723_v10  ;;  %9765 = vtanh.f32 %v6684_v15  ;;  %v6605_v18 = vmul.f32 0.5, %v13113_v45  ;;  %9543 = vmatprep.subr.mxu1 %v7079_v54  ;;  %v7077_v45 = vld [vmem:[%s13405_s10 + $0x208] sm:$0xff]  ;;  %s9915_s10 = smov [#allocation3]  }
0x11e1   :  { %9767 = vtanh.f32 %v6683_v33  ;;  %9544 = vmatpush3.msra.mxu1 %v7079_v54  ;;  %s7296_s19 = sshll.u32 %s9915_s10, 4  ;;  %s7297_s19 = int_to_ptr.vmem [resolvable:$true] %s7296_s19 }
0x11e2   :  { %v9754_v50 = vpop.eup %9753  ;;  %9769 = vtanh.f32 %v6685_v1  ;;  %9545 = vmatprep.subr.mxu1 %v7078_v48  ;;  %s9890_s20 = scalar_lea.vmem %s7297_s19, 64  ;;  %p9895_p1 = scmp.lt.s32.totalorder %s7297_s19, %s7297_s19 }
0x11e3   :  { %v6711_v17 = vadd.f32 1.0, %v9754_v50  ;;  %9546 = vmatpush3.msra.mxu1 %v7078_v48  ;;  %p9891_p0 = scmp.ne.s32.totalorder %s7297_s19, %s9890_s20  ;;  %p9896_p2 = scmp.lt.s32.totalorder %s9890_s20, %s9890_s20 }
0x11e4   :  { %v9756_v30 = vpop.eup %9755  ;;  %9547 = vmatprep.subr.mxu1 %v7077_v45 }
0x11e5   :  { %v6708_v14 = vadd.f32 1.0, %v9756_v30  ;;  %v6727_v35 = vmul.f32 %v6711_v17, %v6599_v25  ;;  %9548 = vmatpush3.msra.mxu1 %v7077_v45  ;;  %p9897_p3 = por %p9896_p2, %p9895_p1 }
0x11e6   :  { %v9758_v62 = vpop.eup %9757  ;;  %9549 = vmatprep.subr.mxu1 %v7076_v46 }
0x11e7   :  { %v9760_v9 = vpop.eup %9759  ;;  %v6724_v57 = vmul.f32 %v6708_v14, %v6596_v28  ;;  %v6710_v53 = vadd.f32 1.0, %v9758_v62  ;;  %9550 = vmatpush3.msra.mxu1 %v7076_v46  ;;  %p9898_p4 = pnand %p9897_p3, %p9891_p0 }
0x11e8   :  { %v9762_v11 = vpop.eup %9761  ;;  %v6712_v37 = vadd.f32 1.0, %v9760_v9 }
0x11e9   :  { %9528 = vmatprep.mubr.msk.f32.mxu0 %vm340_vm1, %v6724_v57  ;;  %v6726_v40 = vmul.f32 %v6710_v53, %v6598_v13  ;;  %v9764_v41 = vpop.eup %9763  ;;  %v6713_v44 = vadd.f32 1.0, %v9762_v11 }
0x11ea   :  { %9529 = vmatmul.mubr.msk.f32.gmra.mxu0 %vm340_vm1, %v6725_v23  ;;  %v6728_v5 = vmul.f32 %v6712_v37, %v6600_v27  ;;  %v6714_v8 = vadd.f32 1.0, %v9764_v41 }
0x11eb   :  { %9531 = vmatprep.mubr.msk.f32.mxu0 %vm340_vm1, %v6726_v40  ;;  %v6729_v52 = vmul.f32 %v6713_v44, %v6601_v16 }
0x11ec   :  { %v6730_v61 = vmul.f32 %v6714_v8, %v6602_v24 }
0x11ed   :  { %v9766_v7 = vpop.eup %9765 }
0x11ee   :  { %v9768_v34 = vpop.eup %9767  ;;  %9532 = vmatmul.mubr.msk.f32.gmra.mxu0 %vm340_vm1, %v6727_v35  ;;  %v6716_v38 = vadd.f32 1.0, %v9766_v7 }
0x11ef   :  { %9534 = vmatprep.mubr.msk.f32.mxu0 %vm340_vm1, %v6728_v5  ;;  %v6715_v6 = vadd.f32 1.0, %v9768_v34  ;;  %v9770_v49 = vpop.eup %9769 }
0x11f0   :  { %v6732_v21 = vmul.f32 %v6716_v38, %v6604_v3  ;;  %v6717_v58 = vadd.f32 1.0, %v9770_v49 }
0x11f1   :  { %v6731_v0 = vmul.f32 %v6715_v6, %v6603_v22 }
0x11f2   :  { %9535 = vmatmul.mubr.msk.f32.gmra.mxu0 %vm340_vm1, %v6729_v52  ;;  %v6733_v26 = vmul.f32 %v6717_v58, %v6605_v18 }
0x11f3   :  { %9537 = vmatprep.mubr.msk.f32.mxu0 %vm340_vm1, %v6730_v61 }
0x11f6   :  { %9538 = vmatmul.mubr.msk.f32.gmra.mxu0 %vm340_vm1, %v6731_v0 }
0x11f7   :  { %9540 = vmatprep.mubr.msk.f32.mxu0 %vm340_vm1, %v6732_v21 }
0x11fa   :  { %9541 = vmatmul.mubr.msk.f32.gmra.mxu0 %vm340_vm1, %v6733_v26 }
0x1298   :  { %v9521_v19 = vpop.f32.mrf.mxu0 }
0x1299   :  { %v13182_v31 = vadd.f32 %v9521_v19, %v13179_v56 }
0x129a   :  { %v6853_v36 = vpop.f32.mrf.mxu0 }
0x129b   :  { %v6949_v63 = vmul.f32 0.044715, %v13182_v31  ;;  %v13186_v42 = vadd.f32 %v6853_v36, %v13179_v56  ;;  %v6933_v54 = vmul.f32 0.5, %v13182_v31 }
0x129c   :  { %v9524_v12 = vpop.f32.mrf.mxu0 }
0x129d   :  { %v6965_v59 = vmul.f32 %v6949_v63, %v13182_v31  ;;  %v6948_v29 = vmul.f32 0.044715, %v13186_v42  ;;  %v13191_v2 = vadd.f32 %v9524_v12, %v13179_v56  ;;  %v6932_v63 = vmul.f32 0.5, %v13186_v42 }
0x129e   :  { %v6863_v4 = vpop.f32.mrf.mxu0 }
0x129f   :  { %v6981_v39 = vmul.f32 %v6965_v59, %v13182_v31  ;;  %v6964_v32 = vmul.f32 %v6948_v29, %v13186_v42  ;;  %v6951_v60 = vmul.f32 0.044715, %v13191_v2  ;;  %v13197_v51 = vadd.f32 %v6863_v4, %v13179_v56 }
0x12a0   :  { %v9527_v33 = vpop.f32.mrf.mxu0  ;;  %v6935_v29 = vmul.f32 0.5, %v13191_v2 }
0x12a1   :  { %v6997_v43 = vadd.f32 %v6981_v39, %v13182_v31  ;;  %v6980_v10 = vmul.f32 %v6964_v32, %v13186_v42  ;;  %v6967_v15 = vmul.f32 %v6951_v60, %v13191_v2  ;;  %v13203_v55 = vadd.f32 %v9527_v33, %v13179_v56 }
0x12a2   :  { %v6950_v1 = vmul.f32 0.044715, %v13197_v51  ;;  %v6873_v50 = vpop.f32.mrf.mxu0 }
0x12a3   :  { %v7013_v30 = vmul.f32 0.7978846, %v6997_v43  ;;  %v6996_v20 = vadd.f32 %v6980_v10, %v13186_v42  ;;  %v6983_v28 = vmul.f32 %v6967_v15, %v13191_v2  ;;  %v6953_v62 = vmul.f32 0.044715, %v13203_v55 }
0x12a4   :  { %v6966_v14 = vmul.f32 %v6950_v1, %v13197_v51  ;;  %v13211_v47 = vadd.f32 %v6873_v50, %v13179_v56  ;;  %v6934_v50 = vmul.f32 0.5, %v13197_v51 }
0x12a5   :  { %9771 = vtanh.f32 %v7013_v30  ;;  %v6999_v9 = vadd.f32 %v6983_v28, %v13191_v2  ;;  %v7012_v57 = vmul.f32 0.7978846, %v6996_v20  ;;  %v6969_v53 = vmul.f32 %v6953_v62, %v13203_v55 }
0x12a6   :  { %v6982_v13 = vmul.f32 %v6966_v14, %v13197_v51  ;;  %v6952_v11 = vmul.f32 0.044715, %v13211_v47 }
0x12a7   :  { %v7015_v23 = vmul.f32 0.7978846, %v6999_v9  ;;  %9773 = vtanh.f32 %v7012_v57  ;;  %v6985_v37 = vmul.f32 %v6969_v53, %v13203_v55 }
0x12a8   :  { %v6998_v17 = vadd.f32 %v6982_v13, %v13197_v51  ;;  %v6968_v40 = vmul.f32 %v6952_v11, %v13211_v47 }
0x12a9   :  { %9775 = vtanh.f32 %v7015_v23  ;;  %v7001_v27 = vadd.f32 %v6985_v37, %v13203_v55  ;;  %v6936_v37 = vmul.f32 0.5, %v13211_v47 }
0x12aa   :  { %v6984_v41 = vmul.f32 %v6968_v40, %v13211_v47  ;;  %v7014_v25 = vmul.f32 0.7978846, %v6998_v17  ;;  %v9530_v8 = vpop.f32.mrf.mxu0 }
0x12ab   :  { %v7017_v7 = vmul.f32 0.7978846, %v7001_v27  ;;  %v13224_v35 = vadd.f32 %v9530_v8, %v13179_v56 }
0x12ac   :  { %v7000_v5 = vadd.f32 %v6984_v41, %v13211_v47  ;;  %9777 = vtanh.f32 %v7014_v25  ;;  %v6883_v44 = vpop.f32.mrf.mxu0 }
0x12ad   :  { %v6955_v24 = vmul.f32 0.044715, %v13224_v35  ;;  %v13228_v16 = vadd.f32 %v6883_v44, %v13179_v56 }
0x12ae   :  { %v7016_v34 = vmul.f32 0.7978846, %v7000_v5  ;;  %v9533_v61 = vpop.f32.mrf.mxu0 }
0x12af   :  { %v6971_v38 = vmul.f32 %v6955_v24, %v13224_v35  ;;  %v6954_v52 = vmul.f32 0.044715, %v13228_v16  ;;  %v13233_v6 = vadd.f32 %v9533_v61, %v13179_v56  ;;  %v6937_v61 = vmul.f32 0.5, %v13203_v55 }
0x12b0   :  { %9779 = vtanh.f32 %v7016_v34  ;;  %v6893_v3 = vpop.f32.mrf.mxu0 }
0x12b1   :  { %9781 = vtanh.f32 %v7017_v7  ;;  %v6987_v22 = vmul.f32 %v6971_v38, %v13224_v35  ;;  %v6970_v21 = vmul.f32 %v6954_v52, %v13228_v16  ;;  %v6957_v58 = vmul.f32 0.044715, %v13233_v6 }
0x12b2   :  { %v9772_v49 = vpop.eup %9771  ;;  %v13239_v18 = vadd.f32 %v6893_v3, %v13179_v56  ;;  %v9536_v26 = vpop.f32.mrf.mxu0 }
0x12b3   :  { %v7045_v48 = vadd.f32 1.0, %v9772_v49  ;;  %v13243_v45 = vadd.f32 %v9536_v26, %v13179_v56  ;;  %v6973_v46 = vmul.f32 %v6957_v58, %v13233_v6  ;;  %v7003_v4 = vadd.f32 %v6987_v22, %v13224_v35 }
0x12b4   :  { %v9774_v0 = vpop.eup %9773  ;;  %v6956_v19 = vmul.f32 0.044715, %v13239_v18  ;;  %v6903_v36 = vpop.f32.mrf.mxu0  ;;  %v6986_v39 = vmul.f32 %v6970_v21, %v13228_v16 }
0x12b5   :  { %v7044_v12 = vadd.f32 1.0, %v9774_v0  ;;  %v6959_v31 = vmul.f32 0.044715, %v13243_v45  ;;  %v6989_v32 = vmul.f32 %v6973_v46, %v13233_v6  ;;  %v13255_v33 = vadd.f32 %v6903_v36, %v13179_v56 }
0x12b6   :  { %v9776_v59 = vpop.eup %9775  ;;  %v6972_v60 = vmul.f32 %v6956_v19, %v13239_v18  ;;  %v9539_v43 = vpop.f32.mrf.mxu0  ;;  %v7061_v15 = vmul.f32 %v7045_v48, %v6933_v54  ;;  %v7019_v9 = vmul.f32 0.7978846, %v7003_v4  ;;  %v7002_v51 = vadd.f32 %v6986_v39, %v13228_v16 }
0x12b7   :  { %v7060_v10 = vmul.f32 %v7044_v12, %v6932_v63  ;;  %v6975_v1 = vmul.f32 %v6959_v31, %v13243_v45  ;;  %v13259_v2 = vadd.f32 %v9539_v43, %v13179_v56  ;;  %v6958_v20 = vmul.f32 0.044715, %v13255_v33 }
0x12b8   :  { %v6988_v30 = vmul.f32 %v6972_v60, %v13239_v18  ;;  %v6913_v28 = vpop.f32.mrf.mxu0  ;;  %v7047_v62 = vadd.f32 1.0, %v9776_v59  ;;  %v7005_v57 = vadd.f32 %v6989_v32, %v13233_v6  ;;  %9783 = vtanh.f32 %v7019_v9 }
0x12b9   :  { %v9778_v42 = vpop.eup %9777  ;;  %9551 = vmatprep.mubr.msk.f32.mxu1 %vm340_vm1, %v7060_v10  ;;  %v6961_v13 = vmul.f32 0.044715, %v13259_v2  ;;  %v13268_v53 = vadd.f32 %v6913_v28, %v13179_v56  ;;  %v6974_v11 = vmul.f32 %v6958_v20, %v13255_v33  ;;  %v6991_v27 = vmul.f32 %v6975_v1, %v13243_v45 }
0x12ba   :  { %v7046_v14 = vadd.f32 1.0, %v9778_v42  ;;  %9552 = vmatmul.mubr.msk.f32.vlgmr.msra.gmra.mxu1 %vm340_vm1, %v7061_v15  ;;  %v9542_v23 = vpop.f32.mrf.mxu0  ;;  %v7004_v7 = vadd.f32 %v6988_v30, %v13239_v18  ;;  %v7063_v24 = vmul.f32 %v7047_v62, %v6935_v29  ;;  %v7021_v38 = vmul.f32 0.7978846, %v7005_v57 }
0x12bb   :  { %v6977_v41 = vmul.f32 %v6961_v13, %v13259_v2  ;;  %v6960_v25 = vmul.f32 0.044715, %v13268_v53  ;;  %v13278_v5 = vadd.f32 %v9542_v23, %v13179_v56  ;;  %v6990_v44 = vmul.f32 %v6974_v11, %v13255_v33 }
0x12bc   :  { %v7062_v17 = vmul.f32 %v7046_v14, %v6934_v50  ;;  %v6923_v34 = vpop.f32.mrf.mxu0  ;;  %v7007_v0 = vadd.f32 %v6991_v27, %v13243_v45  ;;  %v7018_v46 = vmul.f32 0.7978846, %v7002_v51  ;;  %v7020_v19 = vmul.f32 0.7978846, %v7004_v7 }
0x12bd   :  { %v9780_v40 = vpop.eup %9779  ;;  %v6976_v52 = vmul.f32 %v6960_v25, %v13268_v53  ;;  %v7006_v49 = vadd.f32 %v6990_v44, %v13255_v33  ;;  %v6963_v3 = vmul.f32 0.044715, %v13278_v5  ;;  %v13288_v22 = vadd.f32 %v6923_v34, %v13179_v56 }
0x12be   :  { %v9782_v8 = vpop.eup %9781  ;;  %9554 = vmatprep.mubr.msk.f32.mxu1 %vm340_vm1, %v7062_v17  ;;  %v7048_v47 = vadd.f32 1.0, %v9780_v40  ;;  %v6993_v58 = vmul.f32 %v6977_v41, %v13259_v2  ;;  %9785 = vtanh.f32 %v7021_v38  ;;  %v7023_v59 = vmul.f32 0.7978846, %v7007_v0 }
0x12bf   :  { %9555 = vmatmul.mubr.msk.f32.gmra.mxu1 %vm340_vm1, %v7063_v24  ;;  %v6992_v55 = vmul.f32 %v6976_v52, %v13268_v53  ;;  %v7049_v26 = vadd.f32 1.0, %v9782_v8  ;;  %v6979_v54 = vmul.f32 %v6963_v3, %v13278_v5  ;;  %v6962_v48 = vmul.f32 0.044715, %v13288_v22 }
0x12c0   :  { %v7064_v21 = vmul.f32 %v7048_v47, %v6936_v37  ;;  %9787 = vtanh.f32 %v7018_v46  ;;  %v7022_v12 = vmul.f32 0.7978846, %v7006_v49  ;;  %v7009_v29 = vadd.f32 %v6993_v58, %v13259_v2 }
0x12c1   :  { %v7008_v56 = vadd.f32 %v6992_v55, %v13268_v53  ;;  %v7065_v36 = vmul.f32 %v7049_v26, %v6937_v61  ;;  %v6978_v63 = vmul.f32 %v6962_v48, %v13288_v22  ;;  %v6995_v4 = vmul.f32 %v6979_v54, %v13278_v5 }
0x12c2   :  { %9557 = vmatprep.mubr.msk.f32.mxu1 %vm340_vm1, %v7064_v21  ;;  %9789 = vtanh.f32 %v7020_v19  ;;  %v7025_v60 = vmul.f32 0.7978846, %v7009_v29  ;;  %v6938_v20 = vmul.f32 0.5, %v13228_v16  ;;  %v6939_v62 = vmul.f32 0.5, %v13224_v35 }
0x12c3   :  { %9558 = vmatmul.mubr.msk.f32.gmra.mxu1 %vm340_vm1, %v7065_v36  ;;  %v7024_v39 = vmul.f32 0.7978846, %v7008_v56  ;;  %v6994_v31 = vmul.f32 %v6978_v63, %v13288_v22  ;;  %9791 = vtanh.f32 %v7022_v12  ;;  %v7011_v43 = vadd.f32 %v6995_v4, %v13278_v5 }
0x12c4   :  { %v6940_v13 = vmul.f32 0.5, %v13239_v18  ;;  %v6942_v41 = vmul.f32 0.5, %v13255_v33  ;;  %v6941_v16 = vmul.f32 0.5, %v13233_v6  ;;  %v6944_v34 = vmul.f32 0.5, %v13268_v53 }
0x12c5   :  { %v7010_v32 = vadd.f32 %v6994_v31, %v13288_v22  ;;  %9793 = vtanh.f32 %v7024_v39  ;;  %v9784_v42 = vpop.eup %9783  ;;  %v7027_v15 = vmul.f32 0.7978846, %v7011_v43  ;;  %v6943_v24 = vmul.f32 0.5, %v13243_v45 }
0x12c6   :  { %9795 = vtanh.f32 %v7023_v59  ;;  %v7051_v30 = vadd.f32 1.0, %v9784_v42  ;;  %v6946_v52 = vmul.f32 0.5, %v13288_v22  ;;  %v6945_v49 = vmul.f32 0.5, %v13259_v2 }
0x12c7   :  { %v7026_v10 = vmul.f32 0.7978846, %v7010_v32  ;;  %v6947_v21 = vmul.f32 0.5, %v13278_v5 }
0x12c8   :  { %v7067_v23 = vmul.f32 %v7051_v30, %v6939_v62 }
0x12c9   :  { %9797 = vtanh.f32 %v7026_v10 }
0x12ca   :  { %9799 = vtanh.f32 %v7025_v60 }
0x12cb   :  { %v9786_v1 = vpop.eup %9785  ;;  %9801 = vtanh.f32 %v7027_v15 }
0x12cc   :  { %v7053_v17 = vadd.f32 1.0, %v9786_v1 }
0x12cd   :  { %v9788_v50 = vpop.eup %9787 }
0x12ce   :  { %v7050_v28 = vadd.f32 1.0, %v9788_v50  ;;  %v7069_v8 = vmul.f32 %v7053_v17, %v6941_v16 }
0x12cf   :  { %v9790_v14 = vpop.eup %9789 }
0x12d0   :  { %v9792_v9 = vpop.eup %9791  ;;  %v7066_v57 = vmul.f32 %v7050_v28, %v6938_v20  ;;  %v7052_v51 = vadd.f32 1.0, %v9790_v14 }
0x12d1   :  { %v7054_v37 = vadd.f32 1.0, %v9792_v9 }
0x12d2   :  { %v9794_v11 = vpop.eup %9793  ;;  %9560 = vmatprep.mubr.msk.f32.mxu1 %vm340_vm1, %v7066_v57  ;;  %v7068_v27 = vmul.f32 %v7052_v51, %v6940_v13 }
0x12d3   :  { %v9796_v40 = vpop.eup %9795  ;;  %9561 = vmatmul.mubr.msk.f32.gmra.mxu1 %vm340_vm1, %v7067_v23  ;;  %v7070_v35 = vmul.f32 %v7054_v37, %v6942_v41  ;;  %v7056_v25 = vadd.f32 1.0, %v9794_v11 }
0x12d4   :  { %9563 = vmatprep.mubr.msk.f32.mxu1 %vm340_vm1, %v7068_v27  ;;  %v7055_v7 = vadd.f32 1.0, %v9796_v40 }
0x12d5   :  { %v7072_v33 = vmul.f32 %v7056_v25, %v6944_v34 }
0x12d6   :  { %v9798_v18 = vpop.eup %9797  ;;  %v7071_v47 = vmul.f32 %v7055_v7, %v6943_v24 }
0x12d7   :  { %v9800_v44 = vpop.eup %9799  ;;  %9564 = vmatmul.mubr.msk.f32.gmra.mxu1 %vm340_vm1, %v7069_v8  ;;  %v7058_v6 = vadd.f32 1.0, %v9798_v18 }
0x12d8   :  { %9566 = vmatprep.mubr.msk.f32.mxu1 %vm340_vm1, %v7070_v35  ;;  %v7057_v61 = vadd.f32 1.0, %v9800_v44  ;;  %v9802_v38 = vpop.eup %9801 }
0x12d9   :  { %v7074_v53 = vmul.f32 %v7058_v6, %v6946_v52  ;;  %v7059_v45 = vadd.f32 1.0, %v9802_v38 }
0x12da   :  { %v7073_v3 = vmul.f32 %v7057_v61, %v6945_v49 }
0x12db   :  { %9567 = vmatmul.mubr.msk.f32.gmra.mxu1 %vm340_vm1, %v7071_v47  ;;  %v7075_v0 = vmul.f32 %v7059_v45, %v6947_v21 }
0x12dc   :  { %9569 = vmatprep.mubr.msk.f32.mxu1 %vm340_vm1, %v7072_v33 }
0x12df   :  { %9570 = vmatmul.mubr.msk.f32.gmra.mxu1 %vm340_vm1, %v7073_v3 }
0x12e0   :  { %9572 = vmatprep.mubr.msk.f32.mxu1 %vm340_vm1, %v7074_v53 }
0x12e3   :  { %9573 = vmatmul.mubr.msk.f32.gmra.mxu1 %vm340_vm1, %v7075_v0 }
0x12e4   :  { %9901 = shalt.err (!%p9898_p4)
}
0x12e5   :  { %7299 = dma.vmem_to_hbm [thread:$0]  %s7297_s19, 64, %s13409_s14, [#allocation4]   ;;  %v7080_v2 = vld [vmem:[%s13408_s13 + $0x21] ss:$0 sm:$0xff] }
0x137a   :  { %v9553_v5 = vpop.f32.mrf.mxu1 }
0x137b   :  { %v7201_v22 = vadd.f32 %v9553_v5, %v7080_v2 }
0x137c   :  { %v7195_v58 = vpop.f32.mrf.mxu1 }
0x137d   :  { %7275 = vst.msk [vmem:[%s13410_s15 + $0x8] sm:$0xff] %vm2651_vm6, %v7201_v22  ;;  %v7196_v55 = vadd.f32 %v7195_v58, %v7080_v2 }
0x137f   :  { %7274 = vst.msk [vmem:[%s13410_s15] sm:$0xff] %vm2651_vm6, %v7196_v55  ;;  %v9556_v26 = vpop.f32.mrf.mxu1 }
0x1380   :  { %v7211_v54 = vadd.f32 %v9556_v26, %v7080_v2 }
0x1381   :  { %v7205_v48 = vpop.f32.mrf.mxu1 }
0x1382   :  { %7277 = vst.msk [vmem:[%s13410_s15 + $0x18] sm:$0xff] %vm2651_vm6, %v7211_v54  ;;  %v7206_v46 = vadd.f32 %v7205_v48, %v7080_v2 }
0x1383   :  { %v9559_v19 = vpop.f32.mrf.mxu1 }
0x1384   :  { %7276 = vst.msk [vmem:[%s13410_s15 + $0x10] sm:$0xff] %vm2651_vm6, %v7206_v46  ;;  %v7221_v56 = vadd.f32 %v9559_v19, %v7080_v2 }
0x1385   :  { %v7215_v36 = vpop.f32.mrf.mxu1 }
0x1386   :  { %7279 = vst.msk [vmem:[%s13410_s15 + $0x28] sm:$0xff] %vm2651_vm6, %v7221_v56  ;;  %v7216_v63 = vadd.f32 %v7215_v36, %v7080_v2 }
0x1388   :  { %7278 = vst.msk [vmem:[%s13410_s15 + $0x20] sm:$0xff] %vm2651_vm6, %v7216_v63 }
0x1393   :  { %v9562_v12 = vpop.f32.mrf.mxu1 }
0x1394   :  { %v7231_v59 = vadd.f32 %v9562_v12, %v7080_v2 }
0x1395   :  { %v7225_v29 = vpop.f32.mrf.mxu1 }
0x1396   :  { %7281 = vst.msk [vmem:[%s13410_s15 + $0x38] sm:$0xff] %vm2651_vm6, %v7231_v59  ;;  %v7226_v4 = vadd.f32 %v7225_v29, %v7080_v2 }
0x1397   :  { %v9565_v39 = vpop.f32.mrf.mxu1 }
0x1398   :  { %7280 = vst.msk [vmem:[%s13410_s15 + $0x30] sm:$0xff] %vm2651_vm6, %v7226_v4  ;;  %v7241_v31 = vadd.f32 %v9565_v39, %v7080_v2 }
0x1399   :  { %v7235_v32 = vpop.f32.mrf.mxu1 }
0x139a   :  { %7283 = vst.msk [vmem:[%s13410_s15 + $0x48] sm:$0xff] %vm2651_vm6, %v7241_v31  ;;  %v7236_v60 = vadd.f32 %v7235_v32, %v7080_v2 }
0x139b   :  { %v9568_v43 = vpop.f32.mrf.mxu1 }
0x139c   :  { %7282 = vst.msk [vmem:[%s13410_s15 + $0x40] sm:$0xff] %vm2651_vm6, %v7236_v60  ;;  %v7251_v10 = vadd.f32 %v9568_v43, %v7080_v2 }
0x139d   :  { %v7245_v42 = vpop.f32.mrf.mxu1 }
0x139e   :  { %7285 = vst.msk [vmem:[%s13410_s15 + $0x58] sm:$0xff] %vm2651_vm6, %v7251_v10  ;;  %v7246_v15 = vadd.f32 %v7245_v42, %v7080_v2 }
0x139f   :  { %v9571_v1 = vpop.f32.mrf.mxu1 }
0x13a0   :  { %7284 = vst.msk [vmem:[%s13410_s15 + $0x50] sm:$0xff] %vm2651_vm6, %v7246_v15  ;;  %v7261_v50 = vadd.f32 %v9571_v1, %v7080_v2 }
0x13a1   :  { %v7255_v30 = vpop.f32.mrf.mxu1 }
0x13a2   :  { %7287 = vst.msk [vmem:[%s13410_s15 + $0x68] sm:$0xff] %vm2651_vm6, %v7261_v50  ;;  %v7256_v20 = vadd.f32 %v7255_v30, %v7080_v2 }
0x13a3   :  { %v9574_v28 = vpop.f32.mrf.mxu1 }
0x13a4   :  { %7286 = vst.msk [vmem:[%s13410_s15 + $0x60] sm:$0xff] %vm2651_vm6, %v7256_v20  ;;  %v7271_v14 = vadd.f32 %v9574_v28, %v7080_v2 }
0x13a5   :  { %v7265_v62 = vpop.f32.mrf.mxu1 }
0x13a6   :  { %7289 = vst.msk [vmem:[%s13410_s15 + $0x78] sm:$0xff] %vm2651_vm6, %v7271_v14  ;;  %v7266_v9 = vadd.f32 %v7265_v62, %v7080_v2 }
0x13a8   :  { %7288 = vst.msk [vmem:[%s13410_s15 + $0x70] sm:$0xff] %vm2651_vm6, %v7266_v9 }
0x13a9   :  { %9910 = dma.done.wait [#allocation4], 64  }
0x13aa   :  { %9911 = vsyncadd [#allocation4], 4294967232 }
0x13ab   :  { %7307 = vsyncpa [#allocation4], 1 }

</bundles_post_ra>
